<compile_context>
chip_gen: v5e
topology: v5e:2x2
jax: 0.10.0
libtpu: 0.0.40
codegen_flags: <defaults>
</compile_context>

<pallas_src>
import numpy as np
import jax
import jax.numpy as jnp
from jax.experimental import pallas as pl
from jax.experimental.pallas import tpu as pltpu

BN_EPS = 1e-5
LANES = 128


def _vmem_spec():
    # Whole-array block resident in VMEM (all operands here are tiny; no grid needed).
    return pl.BlockSpec(memory_space=pltpu.MemorySpace.VMEM)


def _round_up(x, m):
    return (x + m - 1) // m * m


# ---------------------------------------------------------------------------
# Static per-layer geometry + trace-time constants (BN masks / selection matrices)
# ---------------------------------------------------------------------------
def _layer_cfgs(params, n, h, w):
    depth = len(params)
    cfgs = []
    for i, (wgt, _b, _g, _bt, padding, pool) in enumerate(params):
        cout, cin = wgt.shape[0], wgt.shape[1]
        hp, wp = h + 2 * padding, w + 2 * padding            # padded frame of this layer
        ho, wo = hp - 2, wp - 2                              # valid 3x3 conv output size
        mfull = n * hp * wp
        mv = mfull - 2 * wp - 2                              # flat conv-output window length
        if pool:
            hq, wq = ho // 2, wo // 2                        # MaxPool2d(2) floors
            mp = mv - wp - 1                                 # flat pooled window length
            h_out, w_out = hq, wq
        else:
            hq = wq = mp = None
            h_out, w_out = ho, wo

        # BN mask (1, mv): 1.0 at flat positions that are real conv outputs (no wrap).
        mask = np.zeros((1, mv), np.float32)
        nn_, hh, ww = np.meshgrid(np.arange(n), np.arange(ho), np.arange(wo), indexing="ij")
        src_valid = (nn_ * hp * wp + hh * wp + ww).reshape(-1)
        mask[0, src_valid] = 1.0

        # Exact 0/1 selection: valid (pooled) pixels -> next layer's zero-padded flat
        # frame, or the lane-dense final feature slab for the last layer.
        if pool:
            nn_, hh, ww = np.meshgrid(np.arange(n), np.arange(hq), np.arange(wq), indexing="ij")
            src = (nn_ * hp * wp + 2 * hh * wp + 2 * ww).reshape(-1)
            src_len = mp
        else:
            src = src_valid
            src_len = mv
        if i + 1 < depth:
            pad_n = params[i + 1][4]
            hpn, wpn = h_out + 2 * pad_n, w_out + 2 * pad_n
            dst = (nn_ * hpn * wpn + (hh + pad_n) * wpn + (ww + pad_n)).reshape(-1)
            dst_len = n * hpn * wpn
        else:
            dst = (nn_ * h_out * w_out + hh * w_out + ww).reshape(-1)
            dst_len = _round_up(n * h_out * w_out, LANES)    # lane-dense final output
        sel = np.zeros((src_len, dst_len), np.float32)
        sel[src, dst] = 1.0

        cfgs.append(dict(cin=cin, cout=cout, wp=wp, mv=mv, mp=mp, pool=pool,
                         count=n * ho * wo, mask=mask, sel=sel,
                         h_out=h_out, w_out=w_out, dst_len=dst_len))
        h, w = h_out, w_out
    return cfgs


# ---------------------------------------------------------------------------
# The fused kernel: depth x (conv3x3 -> BN(train) -> ReLU -> [maxpool2]) in VMEM
# ---------------------------------------------------------------------------
def _make_fused_kernel(cfgs):
    def kernel(*refs):
        x_ref, out_ref = refs[0], refs[-1]
        cur = x_ref[...]                                     # (Cin0, N*Hp0*Wp0) f32, lane-dense
        for li, cfg in enumerate(cfgs):
            w_ref, g_ref, b_ref, m_ref, s_ref = refs[1 + 5 * li: 6 + 5 * li]
            cin, cout, wp, mv = cfg["cin"], cfg["cout"], cfg["wp"], cfg["mv"]

            # ---- 3x3 conv: ONE stacked-K bf16 MXU dot, f32 accumulation -------------
            cur_b = cur.astype(jnp.bfloat16)                 # cast once per layer
            slab = jnp.concatenate(
                [cur_b[:, (k // 3) * wp + (k % 3):(k // 3) * wp + (k % 3) + mv]
                 for k in range(9)],
                axis=0)                                      # (9*Cin, M) bf16 shifted slab
            z = jnp.dot(w_ref[...], slab,
                        preferred_element_type=jnp.float32)  # (Cout, M) f32
            # NOTE: conv bias omitted -- exactly cancelled by train-mode BN mean sub.

            # ---- train-mode BN: masked VPU mul + XLU row reductions (off the MXU) ----
            mask = m_ref[...]                                # (1, M) 0/1 f32
            zm = z * mask
            inv_n = 1.0 / cfg["count"]                       # N*Ho*Wo valid pixels
            mu = jnp.sum(zm, axis=-1, keepdims=True) * inv_n            # (Cout, 1)
            ex2 = jnp.sum(zm * z, axis=-1, keepdims=True) * inv_n       # E[z^2]
            var = jnp.maximum(ex2 - mu * mu, 0.0)            # biased variance
            scale = g_ref[...] * jax.lax.rsqrt(var + BN_EPS)
            shift = b_ref[...] - mu * scale
            y = jnp.maximum(z * scale + shift, 0.0)          # BN + ReLU (f32)

            # ---- fused MaxPool2d(2): max of 4 lane-shifted views ---------------------
            if cfg["pool"]:
                mp = cfg["mp"]
                y = jnp.maximum(jnp.maximum(y[:, 0:mp], y[:, 1:mp + 1]),
                                jnp.maximum(y[:, wp:wp + mp], y[:, wp + 1:wp + 1 + mp]))

            # ---- exact 0/1 selection matmul (bf16) -> next layer's padded flat frame -
            cur = jnp.dot(y.astype(jnp.bfloat16), s_ref[...],
                          preferred_element_type=jnp.float32)
        out_ref[...] = cur                                   # (Cout_last, lane-dense slab)
    return kernel


# ---------------------------------------------------------------------------
# Parameters (shapes match the PyTorch module) + forward
# ---------------------------------------------------------------------------
def init_convnet_nopool_params(key, depth, outdim):
    params = []
    for i in range(depth):
        indim = 3 if i == 0 else outdim
        key, k1, k2, k3, k4 = jax.random.split(key, 5)
        fan_in = indim * 9
        w = jax.random.normal(k1, (outdim, indim, 3, 3), jnp.float32) * (2.0 / fan_in) ** 0.5
        b = 0.01 * jax.random.normal(k2, (outdim,), jnp.float32)   # no-op under train BN
        gamma = 1.0 + 0.1 * jax.random.normal(k3, (outdim,), jnp.float32)
        beta = 0.1 * jax.random.normal(k4, (outdim,), jnp.float32)
        padding = 0 if i in (0, 1) else 1
        pool = i in (0, 1)
        params.append((w, b, gamma, beta, padding, pool))
    return params


def convnet_nopool_forward(x_nchw, params, flatten=False):
    n, c, h, w = x_nchw.shape
    cfgs = _layer_cfgs(params, n, h, w)

    # Only wrapper-side glue: transpose/pad/reshape the input once to (Cin, N*Hp0*Wp0).
    pad0 = params[0][4]
    x = jnp.transpose(x_nchw.astype(jnp.float32), (1, 0, 2, 3))      # (C, N, H, W)
    if pad0:
        x = jnp.pad(x, ((0, 0), (0, 0), (pad0, pad0), (pad0, pad0)))
    x_flat = x.reshape(c, -1)

    inputs = [x_flat]
    for (wgt, _b, gamma, beta, _pad, _pool), cfg in zip(params, cfgs):
        cout, cin = wgt.shape[0], wgt.shape[1]
        # (Cout, Cin, 3, 3) -> (Cout, ky, kx, Cin) -> (Cout, 9*Cin), k-major, pre-cast bf16
        w_mat = jnp.transpose(wgt, (0, 2, 3, 1)).reshape(cout, 9 * cin).astype(jnp.bfloat16)
        inputs += [w_mat, gamma.reshape(cout, 1), beta.reshape(cout, 1),
                   jnp.asarray(cfg["mask"]),                           # (1, M) f32
                   jnp.asarray(cfg["sel"], dtype=jnp.bfloat16)]        # 0/1 exact in bf16

    cout_f = params[-1][0].shape[0]
    hf, wf = cfgs[-1]["h_out"], cfgs[-1]["w_out"]
    m_out = n * hf * wf
    m_pad = cfgs[-1]["dst_len"]                                        # lane-dense out slab

    out_flat = pl.pallas_call(
        _make_fused_kernel(cfgs),
        out_shape=jax.ShapeDtypeStruct((cout_f, m_pad), jnp.float32),
        in_specs=[_vmem_spec()] * len(inputs),
        out_specs=_vmem_spec(),
    )(*inputs)

    out = jnp.transpose(out_flat[:, :m_out].reshape(cout_f, n, hf, wf), (1, 0, 2, 3))
    if flatten:
        out = out.reshape(n, -1)
    return out


# ---------------------------------------------------------------------------
# Pure-JAX reference (PyTorch semantics, train-mode BN) for a tolerance check
# ---------------------------------------------------------------------------
def _reference_forward(x, params):
    for (wgt, b, gamma, beta, padding, pool) in params:
        x = jax.lax.conv_general_dilated(
            x, wgt, window_strides=(1, 1),
            padding=[(padding, padding), (padding, padding)],
            dimension_numbers=("NCHW", "OIHW", "NCHW")) + b.reshape(1, -1, 1, 1)
        mu = x.mean(axis=(0, 2, 3), keepdims=True)
        var = x.var(axis=(0, 2, 3), keepdims=True)           # biased, train-mode BN
        x = (x - mu) * jax.lax.rsqrt(var + BN_EPS) * gamma.reshape(1, -1, 1, 1) \
            + beta.reshape(1, -1, 1, 1)
        x = jnp.maximum(x, 0.0)
        if pool:
            n_, c_, hh, ww = x.shape
            x = x[:, :, :hh // 2 * 2, :ww // 2 * 2] \
                .reshape(n_, c_, hh // 2, 2, ww // 2, 2).max(axis=(3, 5))
    return x


if __name__ == "__main__":
    key = jax.random.PRNGKey(0)
    kx, kp = jax.random.split(key)

    # Small shapes consistent with the module: NCHW input with 3 channels.
    # depth=4, outdim=8; spatial 24 -> (conv pad0 ->22, pool ->11)
    #                              -> (conv pad0 -> 9, pool -> 4)
    #                              -> (conv pad1 keep 4) x2
    x = jax.random.normal(kx, (2, 3, 24, 24), jnp.float32)
    params = init_convnet_nopool_params(kp, depth=4, outdim=8)

    out = convnet_nopool_forward(x, params, flatten=False)
    out = jax.block_until_ready(out)
    assert out.shape == (2, 8, 4, 4), out.shape
    assert out.dtype == jnp.float32
    assert bool(jnp.isfinite(out).all())

    # Loose tolerance: conv / relayout MXU operands are intentionally bf16.
    ref = jax.block_until_ready(_reference_forward(x, params))
    assert np.allclose(np.asarray(out), np.asarray(ref), atol=1e-1, rtol=1e-1), (
        float(np.max(np.abs(np.asarray(out) - np.asarray(ref)))))

    print("KERNEL_OK")
</pallas_src>

<mosaic_0001>
module attributes {stable_mosaic.version = 11 : i64} {
  func.func @kernel(%arg0: memref<3x1152xf32, #tpu.memory_space<vmem>>, %arg1: memref<8x27xbf16, #tpu.memory_space<vmem>>, %arg2: memref<8x1xf32, #tpu.memory_space<vmem>>, %arg3: memref<8x1xf32, #tpu.memory_space<vmem>>, %arg4: memref<1x1102xf32, #tpu.memory_space<vmem>>, %arg5: memref<1077x242xbf16, #tpu.memory_space<vmem>>, %arg6: memref<8x72xbf16, #tpu.memory_space<vmem>>, %arg7: memref<8x1xf32, #tpu.memory_space<vmem>>, %arg8: memref<8x1xf32, #tpu.memory_space<vmem>>, %arg9: memref<1x218xf32, #tpu.memory_space<vmem>>, %arg10: memref<206x72xbf16, #tpu.memory_space<vmem>>, %arg11: memref<8x72xbf16, #tpu.memory_space<vmem>>, %arg12: memref<8x1xf32, #tpu.memory_space<vmem>>, %arg13: memref<8x1xf32, #tpu.memory_space<vmem>>, %arg14: memref<1x58xf32, #tpu.memory_space<vmem>>, %arg15: memref<58x72xbf16, #tpu.memory_space<vmem>>, %arg16: memref<8x72xbf16, #tpu.memory_space<vmem>>, %arg17: memref<8x1xf32, #tpu.memory_space<vmem>>, %arg18: memref<8x1xf32, #tpu.memory_space<vmem>>, %arg19: memref<1x58xf32, #tpu.memory_space<vmem>>, %arg20: memref<58x128xbf16, #tpu.memory_space<vmem>>, %arg21: memref<8x128xf32, #tpu.memory_space<vmem>>) attributes {dimension_semantics = [], scalar_prefetch = 0 : i64, scratch_operands = 0 : i64, tpu.core_type = #tpu.core_type<tc>} {
    %c0 = arith.constant 0 : index
    %c0_0 = arith.constant 0 : index
    %0 = vector.load %arg0[%c0, %c0_0] : memref<3x1152xf32, #tpu.memory_space<vmem>>, vector<3x1152xf32>
    %1 = arith.truncf %0 : vector<3x1152xf32> to vector<3x1152xbf16>
    %2 = vector.extract_strided_slice %1 {offsets = [0, 0], sizes = [3, 1102], strides = [1, 1]} : vector<3x1152xbf16> to vector<3x1102xbf16>
    %3 = vector.extract_strided_slice %1 {offsets = [0, 1], sizes = [3, 1102], strides = [1, 1]} : vector<3x1152xbf16> to vector<3x1102xbf16>
    %4 = vector.extract_strided_slice %1 {offsets = [0, 2], sizes = [3, 1102], strides = [1, 1]} : vector<3x1152xbf16> to vector<3x1102xbf16>
    %5 = vector.extract_strided_slice %1 {offsets = [0, 24], sizes = [3, 1102], strides = [1, 1]} : vector<3x1152xbf16> to vector<3x1102xbf16>
    %6 = vector.extract_strided_slice %1 {offsets = [0, 25], sizes = [3, 1102], strides = [1, 1]} : vector<3x1152xbf16> to vector<3x1102xbf16>
    %7 = vector.extract_strided_slice %1 {offsets = [0, 26], sizes = [3, 1102], strides = [1, 1]} : vector<3x1152xbf16> to vector<3x1102xbf16>
    %8 = vector.extract_strided_slice %1 {offsets = [0, 48], sizes = [3, 1102], strides = [1, 1]} : vector<3x1152xbf16> to vector<3x1102xbf16>
    %9 = vector.extract_strided_slice %1 {offsets = [0, 49], sizes = [3, 1102], strides = [1, 1]} : vector<3x1152xbf16> to vector<3x1102xbf16>
    %10 = vector.extract_strided_slice %1 {offsets = [0, 50], sizes = [3, 1102], strides = [1, 1]} : vector<3x1152xbf16> to vector<3x1102xbf16>
    %11 = tpu.concatenate %2, %3, %4, %5, %6, %7, %8, %9, %10 in 0 : vector<3x1102xbf16>, vector<3x1102xbf16>, vector<3x1102xbf16>, vector<3x1102xbf16>, vector<3x1102xbf16>, vector<3x1102xbf16>, vector<3x1102xbf16>, vector<3x1102xbf16>, vector<3x1102xbf16> -> vector<27x1102xbf16>
    %c0_1 = arith.constant 0 : index
    %c0_2 = arith.constant 0 : index
    %12 = vector.load %arg1[%c0_1, %c0_2] : memref<8x27xbf16, #tpu.memory_space<vmem>>, vector<8x27xbf16>
    %cst = arith.constant dense<0.000000e+00> : vector<8x1102xf32>
    %13 = tpu.matmul %12, %11, %cst {dimension_numbers = #tpu.dot_dimension_numbers<[1], [0], [0], [1], [0, 0, 1, 1], [], []>} : vector<8x27xbf16>, vector<27x1102xbf16>, vector<8x1102xf32> -> vector<8x1102xf32>
    %c0_3 = arith.constant 0 : index
    %c0_4 = arith.constant 0 : index
    %14 = vector.load %arg4[%c0_3, %c0_4] : memref<1x1102xf32, #tpu.memory_space<vmem>>, vector<1x1102xf32>
    %15 = vector.broadcast %14 : vector<1x1102xf32> to vector<8x1102xf32>
    %16 = arith.mulf %13, %15 : vector<8x1102xf32>
    %cst_5 = arith.constant dense<0.000000e+00> : vector<8xf32>
    %17 = vector.multi_reduction <add>, %16, %cst_5 [1] : vector<8x1102xf32> to vector<8xf32>
    %18 = vector.shape_cast %17 : vector<8xf32> to vector<8x1xf32>
    %cst_6 = arith.constant 0.00103305781 : f32
    %19 = vector.broadcast %cst_6 : f32 to vector<8x1xf32>
    %20 = arith.mulf %18, %19 : vector<8x1xf32>
    %21 = arith.mulf %16, %13 : vector<8x1102xf32>
    %cst_7 = arith.constant dense<0.000000e+00> : vector<8xf32>
    %22 = vector.multi_reduction <add>, %21, %cst_7 [1] : vector<8x1102xf32> to vector<8xf32>
    %23 = vector.shape_cast %22 : vector<8xf32> to vector<8x1xf32>
    %cst_8 = arith.constant 0.00103305781 : f32
    %24 = vector.broadcast %cst_8 : f32 to vector<8x1xf32>
    %25 = arith.mulf %23, %24 : vector<8x1xf32>
    %26 = arith.mulf %20, %20 : vector<8x1xf32>
    %27 = arith.subf %25, %26 : vector<8x1xf32>
    %cst_9 = arith.constant 0.000000e+00 : f32
    %28 = vector.broadcast %cst_9 : f32 to vector<8x1xf32>
    %29 = arith.maximumf %27, %28 : vector<8x1xf32>
    %c0_10 = arith.constant 0 : index
    %c0_11 = arith.constant 0 : index
    %30 = vector.load %arg2[%c0_10, %c0_11] : memref<8x1xf32, #tpu.memory_space<vmem>>, vector<8x1xf32>
    %cst_12 = arith.constant 9.99999974E-6 : f32
    %31 = vector.broadcast %cst_12 : f32 to vector<8x1xf32>
    %32 = arith.addf %29, %31 : vector<8x1xf32>
    %33 = math.rsqrt %32 : vector<8x1xf32>
    %34 = arith.mulf %30, %33 : vector<8x1xf32>
    %c0_13 = arith.constant 0 : index
    %c0_14 = arith.constant 0 : index
    %35 = vector.load %arg3[%c0_13, %c0_14] : memref<8x1xf32, #tpu.memory_space<vmem>>, vector<8x1xf32>
    %36 = arith.mulf %20, %34 : vector<8x1xf32>
    %37 = arith.subf %35, %36 : vector<8x1xf32>
    %38 = vector.broadcast %34 : vector<8x1xf32> to vector<8x1102xf32>
    %39 = arith.mulf %13, %38 : vector<8x1102xf32>
    %40 = vector.broadcast %37 : vector<8x1xf32> to vector<8x1102xf32>
    %41 = arith.addf %39, %40 : vector<8x1102xf32>
    %cst_15 = arith.constant 0.000000e+00 : f32
    %42 = vector.broadcast %cst_15 : f32 to vector<8x1102xf32>
    %43 = arith.maximumf %41, %42 : vector<8x1102xf32>
    %44 = vector.extract_strided_slice %43 {offsets = [0, 0], sizes = [8, 1077], strides = [1, 1]} : vector<8x1102xf32> to vector<8x1077xf32>
    %45 = vector.extract_strided_slice %43 {offsets = [0, 1], sizes = [8, 1077], strides = [1, 1]} : vector<8x1102xf32> to vector<8x1077xf32>
    %46 = arith.maximumf %44, %45 : vector<8x1077xf32>
    %47 = vector.extract_strided_slice %43 {offsets = [0, 24], sizes = [8, 1077], strides = [1, 1]} : vector<8x1102xf32> to vector<8x1077xf32>
    %48 = vector.extract_strided_slice %43 {offsets = [0, 25], sizes = [8, 1077], strides = [1, 1]} : vector<8x1102xf32> to vector<8x1077xf32>
    %49 = arith.maximumf %47, %48 : vector<8x1077xf32>
    %50 = arith.maximumf %46, %49 : vector<8x1077xf32>
    %51 = arith.truncf %50 : vector<8x1077xf32> to vector<8x1077xbf16>
    %c0_16 = arith.constant 0 : index
    %c0_17 = arith.constant 0 : index
    %52 = vector.load %arg5[%c0_16, %c0_17] : memref<1077x242xbf16, #tpu.memory_space<vmem>>, vector<1077x242xbf16>
    %cst_18 = arith.constant dense<0.000000e+00> : vector<8x242xf32>
    %53 = tpu.matmul %51, %52, %cst_18 {dimension_numbers = #tpu.dot_dimension_numbers<[1], [0], [0], [1], [0, 0, 1, 1], [], []>} : vector<8x1077xbf16>, vector<1077x242xbf16>, vector<8x242xf32> -> vector<8x242xf32>
    %54 = arith.truncf %53 : vector<8x242xf32> to vector<8x242xbf16>
    %55 = vector.extract_strided_slice %54 {offsets = [0, 0], sizes = [8, 218], strides = [1, 1]} : vector<8x242xbf16> to vector<8x218xbf16>
    %56 = vector.extract_strided_slice %54 {offsets = [0, 1], sizes = [8, 218], strides = [1, 1]} : vector<8x242xbf16> to vector<8x218xbf16>
    %57 = vector.extract_strided_slice %54 {offsets = [0, 2], sizes = [8, 218], strides = [1, 1]} : vector<8x242xbf16> to vector<8x218xbf16>
    %58 = vector.extract_strided_slice %54 {offsets = [0, 11], sizes = [8, 218], strides = [1, 1]} : vector<8x242xbf16> to vector<8x218xbf16>
    %59 = vector.extract_strided_slice %54 {offsets = [0, 12], sizes = [8, 218], strides = [1, 1]} : vector<8x242xbf16> to vector<8x218xbf16>
    %60 = vector.extract_strided_slice %54 {offsets = [0, 13], sizes = [8, 218], strides = [1, 1]} : vector<8x242xbf16> to vector<8x218xbf16>
    %61 = vector.extract_strided_slice %54 {offsets = [0, 22], sizes = [8, 218], strides = [1, 1]} : vector<8x242xbf16> to vector<8x218xbf16>
    %62 = vector.extract_strided_slice %54 {offsets = [0, 23], sizes = [8, 218], strides = [1, 1]} : vector<8x242xbf16> to vector<8x218xbf16>
    %63 = vector.extract_strided_slice %54 {offsets = [0, 24], sizes = [8, 218], strides = [1, 1]} : vector<8x242xbf16> to vector<8x218xbf16>
    %64 = tpu.concatenate %55, %56, %57, %58, %59, %60, %61, %62, %63 in 0 : vector<8x218xbf16>, vector<8x218xbf16>, vector<8x218xbf16>, vector<8x218xbf16>, vector<8x218xbf16>, vector<8x218xbf16>, vector<8x218xbf16>, vector<8x218xbf16>, vector<8x218xbf16> -> vector<72x218xbf16>
    %c0_19 = arith.constant 0 : index
    %c0_20 = arith.constant 0 : index
    %65 = vector.load %arg6[%c0_19, %c0_20] : memref<8x72xbf16, #tpu.memory_space<vmem>>, vector<8x72xbf16>
    %cst_21 = arith.constant dense<0.000000e+00> : vector<8x218xf32>
    %66 = tpu.matmul %65, %64, %cst_21 {dimension_numbers = #tpu.dot_dimension_numbers<[1], [0], [0], [1], [0, 0, 1, 1], [], []>} : vector<8x72xbf16>, vector<72x218xbf16>, vector<8x218xf32> -> vector<8x218xf32>
    %c0_22 = arith.constant 0 : index
    %c0_23 = arith.constant 0 : index
    %67 = vector.load %arg9[%c0_22, %c0_23] : memref<1x218xf32, #tpu.memory_space<vmem>>, vector<1x218xf32>
    %68 = vector.broadcast %67 : vector<1x218xf32> to vector<8x218xf32>
    %69 = arith.mulf %66, %68 : vector<8x218xf32>
    %cst_24 = arith.constant dense<0.000000e+00> : vector<8xf32>
    %70 = vector.multi_reduction <add>, %69, %cst_24 [1] : vector<8x218xf32> to vector<8xf32>
    %71 = vector.shape_cast %70 : vector<8xf32> to vector<8x1xf32>
    %cst_25 = arith.constant 0.00617283955 : f32
    %72 = vector.broadcast %cst_25 : f32 to vector<8x1xf32>
    %73 = arith.mulf %71, %72 : vector<8x1xf32>
    %74 = arith.mulf %69, %66 : vector<8x218xf32>
    %cst_26 = arith.constant dense<0.000000e+00> : vector<8xf32>
    %75 = vector.multi_reduction <add>, %74, %cst_26 [1] : vector<8x218xf32> to vector<8xf32>
    %76 = vector.shape_cast %75 : vector<8xf32> to vector<8x1xf32>
    %cst_27 = arith.constant 0.00617283955 : f32
    %77 = vector.broadcast %cst_27 : f32 to vector<8x1xf32>
    %78 = arith.mulf %76, %77 : vector<8x1xf32>
    %79 = arith.mulf %73, %73 : vector<8x1xf32>
    %80 = arith.subf %78, %79 : vector<8x1xf32>
    %cst_28 = arith.constant 0.000000e+00 : f32
    %81 = vector.broadcast %cst_28 : f32 to vector<8x1xf32>
    %82 = arith.maximumf %80, %81 : vector<8x1xf32>
    %c0_29 = arith.constant 0 : index
    %c0_30 = arith.constant 0 : index
    %83 = vector.load %arg7[%c0_29, %c0_30] : memref<8x1xf32, #tpu.memory_space<vmem>>, vector<8x1xf32>
    %cst_31 = arith.constant 9.99999974E-6 : f32
    %84 = vector.broadcast %cst_31 : f32 to vector<8x1xf32>
    %85 = arith.addf %82, %84 : vector<8x1xf32>
    %86 = math.rsqrt %85 : vector<8x1xf32>
    %87 = arith.mulf %83, %86 : vector<8x1xf32>
    %c0_32 = arith.constant 0 : index
    %c0_33 = arith.constant 0 : index
    %88 = vector.load %arg8[%c0_32, %c0_33] : memref<8x1xf32, #tpu.memory_space<vmem>>, vector<8x1xf32>
    %89 = arith.mulf %73, %87 : vector<8x1xf32>
    %90 = arith.subf %88, %89 : vector<8x1xf32>
    %91 = vector.broadcast %87 : vector<8x1xf32> to vector<8x218xf32>
    %92 = arith.mulf %66, %91 : vector<8x218xf32>
    %93 = vector.broadcast %90 : vector<8x1xf32> to vector<8x218xf32>
    %94 = arith.addf %92, %93 : vector<8x218xf32>
    %cst_34 = arith.constant 0.000000e+00 : f32
    %95 = vector.broadcast %cst_34 : f32 to vector<8x218xf32>
    %96 = arith.maximumf %94, %95 : vector<8x218xf32>
    %97 = vector.extract_strided_slice %96 {offsets = [0, 0], sizes = [8, 206], strides = [1, 1]} : vector<8x218xf32> to vector<8x206xf32>
    %98 = vector.extract_strided_slice %96 {offsets = [0, 1], sizes = [8, 206], strides = [1, 1]} : vector<8x218xf32> to vector<8x206xf32>
    %99 = arith.maximumf %97, %98 : vector<8x206xf32>
    %100 = vector.extract_strided_slice %96 {offsets = [0, 11], sizes = [8, 206], strides = [1, 1]} : vector<8x218xf32> to vector<8x206xf32>
    %101 = vector.extract_strided_slice %96 {offsets = [0, 12], sizes = [8, 206], strides = [1, 1]} : vector<8x218xf32> to vector<8x206xf32>
    %102 = arith.maximumf %100, %101 : vector<8x206xf32>
    %103 = arith.maximumf %99, %102 : vector<8x206xf32>
    %104 = arith.truncf %103 : vector<8x206xf32> to vector<8x206xbf16>
    %c0_35 = arith.constant 0 : index
    %c0_36 = arith.constant 0 : index
    %105 = vector.load %arg10[%c0_35, %c0_36] : memref<206x72xbf16, #tpu.memory_space<vmem>>, vector<206x72xbf16>
    %cst_37 = arith.constant dense<0.000000e+00> : vector<8x72xf32>
    %106 = tpu.matmul %104, %105, %cst_37 {dimension_numbers = #tpu.dot_dimension_numbers<[1], [0], [0], [1], [0, 0, 1, 1], [], []>} : vector<8x206xbf16>, vector<206x72xbf16>, vector<8x72xf32> -> vector<8x72xf32>
    %107 = arith.truncf %106 : vector<8x72xf32> to vector<8x72xbf16>
    %108 = vector.extract_strided_slice %107 {offsets = [0, 0], sizes = [8, 58], strides = [1, 1]} : vector<8x72xbf16> to vector<8x58xbf16>
    %109 = vector.extract_strided_slice %107 {offsets = [0, 1], sizes = [8, 58], strides = [1, 1]} : vector<8x72xbf16> to vector<8x58xbf16>
    %110 = vector.extract_strided_slice %107 {offsets = [0, 2], sizes = [8, 58], strides = [1, 1]} : vector<8x72xbf16> to vector<8x58xbf16>
    %111 = vector.extract_strided_slice %107 {offsets = [0, 6], sizes = [8, 58], strides = [1, 1]} : vector<8x72xbf16> to vector<8x58xbf16>
    %112 = vector.extract_strided_slice %107 {offsets = [0, 7], sizes = [8, 58], strides = [1, 1]} : vector<8x72xbf16> to vector<8x58xbf16>
    %113 = vector.extract_strided_slice %107 {offsets = [0, 8], sizes = [8, 58], strides = [1, 1]} : vector<8x72xbf16> to vector<8x58xbf16>
    %114 = vector.extract_strided_slice %107 {offsets = [0, 12], sizes = [8, 58], strides = [1, 1]} : vector<8x72xbf16> to vector<8x58xbf16>
    %115 = vector.extract_strided_slice %107 {offsets = [0, 13], sizes = [8, 58], strides = [1, 1]} : vector<8x72xbf16> to vector<8x58xbf16>
    %116 = vector.extract_strided_slice %107 {offsets = [0, 14], sizes = [8, 58], strides = [1, 1]} : vector<8x72xbf16> to vector<8x58xbf16>
    %117 = tpu.concatenate %108, %109, %110, %111, %112, %113, %114, %115, %116 in 0 : vector<8x58xbf16>, vector<8x58xbf16>, vector<8x58xbf16>, vector<8x58xbf16>, vector<8x58xbf16>, vector<8x58xbf16>, vector<8x58xbf16>, vector<8x58xbf16>, vector<8x58xbf16> -> vector<72x58xbf16>
    %c0_38 = arith.constant 0 : index
    %c0_39 = arith.constant 0 : index
    %118 = vector.load %arg11[%c0_38, %c0_39] : memref<8x72xbf16, #tpu.memory_space<vmem>>, vector<8x72xbf16>
    %cst_40 = arith.constant dense<0.000000e+00> : vector<8x58xf32>
    %119 = tpu.matmul %118, %117, %cst_40 {dimension_numbers = #tpu.dot_dimension_numbers<[1], [0], [0], [1], [0, 0, 1, 1], [], []>} : vector<8x72xbf16>, vector<72x58xbf16>, vector<8x58xf32> -> vector<8x58xf32>
    %c0_41 = arith.constant 0 : index
    %c0_42 = arith.constant 0 : index
    %120 = vector.load %arg14[%c0_41, %c0_42] : memref<1x58xf32, #tpu.memory_space<vmem>>, vector<1x58xf32>
    %121 = vector.broadcast %120 : vector<1x58xf32> to vector<8x58xf32>
    %122 = arith.mulf %119, %121 : vector<8x58xf32>
    %cst_43 = arith.constant dense<0.000000e+00> : vector<8xf32>
    %123 = vector.multi_reduction <add>, %122, %cst_43 [1] : vector<8x58xf32> to vector<8xf32>
    %124 = vector.shape_cast %123 : vector<8xf32> to vector<8x1xf32>
    %cst_44 = arith.constant 3.125000e-02 : f32
    %125 = vector.broadcast %cst_44 : f32 to vector<8x1xf32>
    %126 = arith.mulf %124, %125 : vector<8x1xf32>
    %127 = arith.mulf %122, %119 : vector<8x58xf32>
    %cst_45 = arith.constant dense<0.000000e+00> : vector<8xf32>
    %128 = vector.multi_reduction <add>, %127, %cst_45 [1] : vector<8x58xf32> to vector<8xf32>
    %129 = vector.shape_cast %128 : vector<8xf32> to vector<8x1xf32>
    %cst_46 = arith.constant 3.125000e-02 : f32
    %130 = vector.broadcast %cst_46 : f32 to vector<8x1xf32>
    %131 = arith.mulf %129, %130 : vector<8x1xf32>
    %132 = arith.mulf %126, %126 : vector<8x1xf32>
    %133 = arith.subf %131, %132 : vector<8x1xf32>
    %cst_47 = arith.constant 0.000000e+00 : f32
    %134 = vector.broadcast %cst_47 : f32 to vector<8x1xf32>
    %135 = arith.maximumf %133, %134 : vector<8x1xf32>
    %c0_48 = arith.constant 0 : index
    %c0_49 = arith.constant 0 : index
    %136 = vector.load %arg12[%c0_48, %c0_49] : memref<8x1xf32, #tpu.memory_space<vmem>>, vector<8x1xf32>
    %cst_50 = arith.constant 9.99999974E-6 : f32
    %137 = vector.broadcast %cst_50 : f32 to vector<8x1xf32>
    %138 = arith.addf %135, %137 : vector<8x1xf32>
    %139 = math.rsqrt %138 : vector<8x1xf32>
    %140 = arith.mulf %136, %139 : vector<8x1xf32>
    %c0_51 = arith.constant 0 : index
    %c0_52 = arith.constant 0 : index
    %141 = vector.load %arg13[%c0_51, %c0_52] : memref<8x1xf32, #tpu.memory_space<vmem>>, vector<8x1xf32>
    %142 = arith.mulf %126, %140 : vector<8x1xf32>
    %143 = arith.subf %141, %142 : vector<8x1xf32>
    %144 = vector.broadcast %140 : vector<8x1xf32> to vector<8x58xf32>
    %145 = arith.mulf %119, %144 : vector<8x58xf32>
    %146 = vector.broadcast %143 : vector<8x1xf32> to vector<8x58xf32>
    %147 = arith.addf %145, %146 : vector<8x58xf32>
    %cst_53 = arith.constant 0.000000e+00 : f32
    %148 = vector.broadcast %cst_53 : f32 to vector<8x58xf32>
    %149 = arith.maximumf %147, %148 : vector<8x58xf32>
    %150 = arith.truncf %149 : vector<8x58xf32> to vector<8x58xbf16>
    %c0_54 = arith.constant 0 : index
    %c0_55 = arith.constant 0 : index
    %151 = vector.load %arg15[%c0_54, %c0_55] : memref<58x72xbf16, #tpu.memory_space<vmem>>, vector<58x72xbf16>
    %cst_56 = arith.constant dense<0.000000e+00> : vector<8x72xf32>
    %152 = tpu.matmul %150, %151, %cst_56 {dimension_numbers = #tpu.dot_dimension_numbers<[1], [0], [0], [1], [0, 0, 1, 1], [], []>} : vector<8x58xbf16>, vector<58x72xbf16>, vector<8x72xf32> -> vector<8x72xf32>
    %153 = arith.truncf %152 : vector<8x72xf32> to vector<8x72xbf16>
    %154 = vector.extract_strided_slice %153 {offsets = [0, 0], sizes = [8, 58], strides = [1, 1]} : vector<8x72xbf16> to vector<8x58xbf16>
    %155 = vector.extract_strided_slice %153 {offsets = [0, 1], sizes = [8, 58], strides = [1, 1]} : vector<8x72xbf16> to vector<8x58xbf16>
    %156 = vector.extract_strided_slice %153 {offsets = [0, 2], sizes = [8, 58], strides = [1, 1]} : vector<8x72xbf16> to vector<8x58xbf16>
    %157 = vector.extract_strided_slice %153 {offsets = [0, 6], sizes = [8, 58], strides = [1, 1]} : vector<8x72xbf16> to vector<8x58xbf16>
    %158 = vector.extract_strided_slice %153 {offsets = [0, 7], sizes = [8, 58], strides = [1, 1]} : vector<8x72xbf16> to vector<8x58xbf16>
    %159 = vector.extract_strided_slice %153 {offsets = [0, 8], sizes = [8, 58], strides = [1, 1]} : vector<8x72xbf16> to vector<8x58xbf16>
    %160 = vector.extract_strided_slice %153 {offsets = [0, 12], sizes = [8, 58], strides = [1, 1]} : vector<8x72xbf16> to vector<8x58xbf16>
    %161 = vector.extract_strided_slice %153 {offsets = [0, 13], sizes = [8, 58], strides = [1, 1]} : vector<8x72xbf16> to vector<8x58xbf16>
    %162 = vector.extract_strided_slice %153 {offsets = [0, 14], sizes = [8, 58], strides = [1, 1]} : vector<8x72xbf16> to vector<8x58xbf16>
    %163 = tpu.concatenate %154, %155, %156, %157, %158, %159, %160, %161, %162 in 0 : vector<8x58xbf16>, vector<8x58xbf16>, vector<8x58xbf16>, vector<8x58xbf16>, vector<8x58xbf16>, vector<8x58xbf16>, vector<8x58xbf16>, vector<8x58xbf16>, vector<8x58xbf16> -> vector<72x58xbf16>
    %c0_57 = arith.constant 0 : index
    %c0_58 = arith.constant 0 : index
    %164 = vector.load %arg16[%c0_57, %c0_58] : memref<8x72xbf16, #tpu.memory_space<vmem>>, vector<8x72xbf16>
    %cst_59 = arith.constant dense<0.000000e+00> : vector<8x58xf32>
    %165 = tpu.matmul %164, %163, %cst_59 {dimension_numbers = #tpu.dot_dimension_numbers<[1], [0], [0], [1], [0, 0, 1, 1], [], []>} : vector<8x72xbf16>, vector<72x58xbf16>, vector<8x58xf32> -> vector<8x58xf32>
    %c0_60 = arith.constant 0 : index
    %c0_61 = arith.constant 0 : index
    %166 = vector.load %arg19[%c0_60, %c0_61] : memref<1x58xf32, #tpu.memory_space<vmem>>, vector<1x58xf32>
    %167 = vector.broadcast %166 : vector<1x58xf32> to vector<8x58xf32>
    %168 = arith.mulf %165, %167 : vector<8x58xf32>
    %cst_62 = arith.constant dense<0.000000e+00> : vector<8xf32>
    %169 = vector.multi_reduction <add>, %168, %cst_62 [1] : vector<8x58xf32> to vector<8xf32>
    %170 = vector.shape_cast %169 : vector<8xf32> to vector<8x1xf32>
    %cst_63 = arith.constant 3.125000e-02 : f32
    %171 = vector.broadcast %cst_63 : f32 to vector<8x1xf32>
    %172 = arith.mulf %170, %171 : vector<8x1xf32>
    %173 = arith.mulf %168, %165 : vector<8x58xf32>
    %cst_64 = arith.constant dense<0.000000e+00> : vector<8xf32>
    %174 = vector.multi_reduction <add>, %173, %cst_64 [1] : vector<8x58xf32> to vector<8xf32>
    %175 = vector.shape_cast %174 : vector<8xf32> to vector<8x1xf32>
    %cst_65 = arith.constant 3.125000e-02 : f32
    %176 = vector.broadcast %cst_65 : f32 to vector<8x1xf32>
    %177 = arith.mulf %175, %176 : vector<8x1xf32>
    %178 = arith.mulf %172, %172 : vector<8x1xf32>
    %179 = arith.subf %177, %178 : vector<8x1xf32>
    %cst_66 = arith.constant 0.000000e+00 : f32
    %180 = vector.broadcast %cst_66 : f32 to vector<8x1xf32>
    %181 = arith.maximumf %179, %180 : vector<8x1xf32>
    %c0_67 = arith.constant 0 : index
    %c0_68 = arith.constant 0 : index
    %182 = vector.load %arg17[%c0_67, %c0_68] : memref<8x1xf32, #tpu.memory_space<vmem>>, vector<8x1xf32>
    %cst_69 = arith.constant 9.99999974E-6 : f32
    %183 = vector.broadcast %cst_69 : f32 to vector<8x1xf32>
    %184 = arith.addf %181, %183 : vector<8x1xf32>
    %185 = math.rsqrt %184 : vector<8x1xf32>
    %186 = arith.mulf %182, %185 : vector<8x1xf32>
    %c0_70 = arith.constant 0 : index
    %c0_71 = arith.constant 0 : index
    %187 = vector.load %arg18[%c0_70, %c0_71] : memref<8x1xf32, #tpu.memory_space<vmem>>, vector<8x1xf32>
    %188 = arith.mulf %172, %186 : vector<8x1xf32>
    %189 = arith.subf %187, %188 : vector<8x1xf32>
    %190 = vector.broadcast %186 : vector<8x1xf32> to vector<8x58xf32>
    %191 = arith.mulf %165, %190 : vector<8x58xf32>
    %192 = vector.broadcast %189 : vector<8x1xf32> to vector<8x58xf32>
    %193 = arith.addf %191, %192 : vector<8x58xf32>
    %cst_72 = arith.constant 0.000000e+00 : f32
    %194 = vector.broadcast %cst_72 : f32 to vector<8x58xf32>
    %195 = arith.maximumf %193, %194 : vector<8x58xf32>
    %196 = arith.truncf %195 : vector<8x58xf32> to vector<8x58xbf16>
    %c0_73 = arith.constant 0 : index
    %c0_74 = arith.constant 0 : index
    %197 = vector.load %arg20[%c0_73, %c0_74] : memref<58x128xbf16, #tpu.memory_space<vmem>>, vector<58x128xbf16>
    %cst_75 = arith.constant dense<0.000000e+00> : vector<8x128xf32>
    %198 = tpu.matmul %196, %197, %cst_75 {dimension_numbers = #tpu.dot_dimension_numbers<[1], [0], [0], [1], [0, 0, 1, 1], [], []>} : vector<8x58xbf16>, vector<58x128xbf16>, vector<8x128xf32> -> vector<8x128xf32>
    %c0_76 = arith.constant 0 : index
    %c0_77 = arith.constant 0 : index
    %199 = vector.load %arg21[%c0_76, %c0_77] : memref<8x128xf32, #tpu.memory_space<vmem>>, vector<8x128xf32>
    tpu.vector_store %arg21[%c0_76, %c0_77], %198 {strides = array<i32>} : memref<8x128xf32, #tpu.memory_space<vmem>>, vector<8x128xf32>,
    return
  }
}

</mosaic_0001>

<bundles_post_ra>
// kernel: tpu_custom_call.1
= control target key start
LH: loop header
LB: loop body
LE: loop exit
PB: predicated region body
PF: predicated region fallthrough
CT: control target
= control target key end

     0   :  { %s5034_s0 = inlined_call_operand.vmem [shape: f32[3,1152], index: 0, kind: input, shape index: {}]   ;;  %s5035_s1 = inlined_call_operand.vmem [shape: bf16[8,27], index: 1, kind: input, shape index: {}]   ;;  %s5036_s2 = inlined_call_operand.vmem [shape: f32[8,1], index: 2, kind: input, shape index: {}]   ;;  %s5037_s3 = inlined_call_operand.vmem [shape: f32[8,1], index: 3, kind: input, shape index: {}]   ;;  %s5038_s4 = inlined_call_operand.vmem [shape: f32[1,1102], index: 4, kind: input, shape index: {}]   ;;  %s5039_s5 = inlined_call_operand.hbm [shape: bf16[1077,242], index: 5, kind: input, shape index: {}]   ;;  %s5040_s6 = inlined_call_operand.vmem [shape: bf16[8,72], index: 6, kind: input, shape index: {}]   ;;  %s5041_s7 = inlined_call_operand.vmem [shape: f32[8,1], index: 7, kind: input, shape index: {}]   ;;  %s5042_s8 = inlined_call_operand.vmem [shape: f32[8,1], index: 8, kind: input, shape index: {}]   ;;  %s5043_s9 = inlined_call_operand.vmem [shape: f32[1,218], index: 9, kind: input, shape index: {}]   ;;  %s5044_s10 = inlined_call_operand.vmem [shape: bf16[206,72], index: 10, kind: input, shape index: {}]   ;;  %s5045_s11 = inlined_call_operand.vmem [shape: bf16[8,72], index: 11, kind: input, shape index: {}]   ;;  %s5046_s12 = inlined_call_operand.vmem [shape: f32[8,1], index: 12, kind: input, shape index: {}]   ;;  %s5047_s13 = inlined_call_operand.vmem [shape: f32[8,1], index: 13, kind: input, shape index: {}]   ;;  %s5048_s14 = inlined_call_operand.vmem [shape: f32[1,58], index: 14, kind: input, shape index: {}]   ;;  %s5049_s15 = inlined_call_operand.vmem [shape: bf16[58,72], index: 15, kind: input, shape index: {}]   ;;  %s5050_s16 = inlined_call_operand.vmem [shape: bf16[8,72], index: 16, kind: input, shape index: {}]   ;;  %s5051_s17 = inlined_call_operand.vmem [shape: f32[8,1], index: 17, kind: input, shape index: {}]   ;;  %s5052_s18 = inlined_call_operand.vmem [shape: f32[8,1], index: 18, kind: input, shape index: {}]   ;;  %s5053_s19 = inlined_call_operand.vmem [shape: f32[1,58], index: 19, kind: input, shape index: {}]   ;;  %s5054_s20 = inlined_call_operand.vmem [shape: bf16[58,128], index: 20, kind: input, shape index: {}]   ;;  %s5055_s21 = inlined_call_operand.hbm [shape: f32[8,128], index: 21, kind: output, shape index: {}]  }
   0x1   :  { %5064 = sst [smem:[#allocation8_spill]] %s5034_s0 }
   0x2   :  { %5065 = sst [smem:[#allocation9_spill]] %s5035_s1 }
   0x3   :  { %5066 = sst [smem:[#allocation10_spill]] %s5036_s2 }
   0x4   :  { %5067 = sst [smem:[#allocation11_spill]] %s5037_s3 }
   0x5   :  { %5068 = sst [smem:[#allocation12_spill]] %s5038_s4 }
   0x6   :  { %5069 = sst [smem:[#allocation13_spill]] %s5039_s5 }
   0x7   :  { %26 = vsyncpa [#allocation3], 0 }
   0x8   :  { %27 = vsyncpa [#allocation4], 0  ;;  %s5070_s26 = sld [smem:[#allocation13_spill]]  ;;  %s3827_s3 = smov [#allocation2]  }
   0x9   :  { %s44_s28 = sshll.u32 %s3827_s3, 4  ;;  %s3828_s29 = smov 128   ;;  %s45_s28 = int_to_ptr.vmem [resolvable:$true] %s44_s28 }
   0xa   :  { %s3829_s0 = smov 8  }
   0xe   :  { %s42_s27 = sshll.u32 %s5070_s26, 4  ;;  %s43_s27 = int_to_ptr.hbm [resolvable:$true] %s42_s27 }
   0xf   :  { %50 = dma.hbm_to_vmem [thread:$0]  %s43_s27, 17280, %s45_s28, [#allocation3], %s3828_s29, %s3828_s29, %s3829_s0  }
  0x10   :  { %3823 = dma.done.wait [#allocation3], 17280  }
  0x11   :  { %3824 = vsyncadd [#allocation3], 4294950016  ;;  %s5071_s5 = sld [smem:[#allocation8_spill]]  ;;  %s3830_s2 = smov 78   ;;  %vm620_vm0 = vcmask 1042432   ;;  %vm5062_vm1 = vcmask 1044480  }
  0x12   :  { %s3831_s25 = smov 126   ;;  %s3832_s3 = smov 80   ;;  %vm756_vm2 = vsmask.f32 2304  ;;  %vm509_vm3 = vcmask 654336   ;;  %vm456_vm4 = vcmask 834560  }
  0x13   :  { %s3833_s28 = smov 102   ;;  %s3834_s29 = smov 79   ;;  %vm563_vm5 = vcmask 646144   ;;  %vm718_vm6 = vcmask 1040384   ;;  %vm5063_vm7 = vcmask 1045504   ;;  %vm5061_vm8 = vcmask 637952   ;;  %vm4171_vm9 = vmand %vm620_vm0, %vm756_vm2 }
  0x14   :  { %s3835_s0 = smov 127   ;;  %s3836_s4 = smov 104   ;;  %vm5058_vm10 = vcmask 1043456   ;;  %vm5060_vm11 = vcmask 1039360   ;;  %vm5059_vm12 = vcmask 1041408   ;;  %vm294_vm14 = vcmask 1031168  }
  0x15   :  { %s3837_s30 = smov 103   ;;  %vm609_vm13 = vsmask.f32 1280  ;;  %vm348_vm2 = vcmask 850944   ;;  %s5094_s24 = sld [smem:[#allocation9_spill]] }
  0x16   :  { %vm4228_vm15 = vmand %vm5059_vm12, %vm609_vm13  ;;  %vm706_vm13 = vcmask 1047552   ;;  %vm707_vm12 = vsmask.f32 7424  ;;  %s5106_s27 = sld [smem:[#allocation12_spill]]  ;;  %s3842_s26 = smov 116  }
  0x17   :  { %v86_v0 = vld [vmem:[%s5071_s5] sm:$0x77]  ;;  %v87_v1 = vld [vmem:[%s5071_s5 + $0x8] sm:$0x77]  ;;  %v88_v19 = vld [vmem:[%s5071_s5 + $0x10] sm:$0x77] }
  0x18   :  { %96 = vst [vmem:[#allocation1] ss:$2 sm:$0xff] %v86_v0  ;;  %v90_v2 = vld [vmem:[%s5071_s5 + $0x20] sm:$0x7]  ;;  %s5109_s22 = sld [smem:[#allocation10_spill]]  ;;  %s3846_s23 = smov 121  }
  0x19   :  { %98 = vst [vmem:[#allocation1 + $0x10] ss:$2 sm:$0xff] %v87_v1  ;;  %s5110_s1 = sld [smem:[#allocation11_spill]] }
  0x1a   :  { %100 = vst [vmem:[#allocation1 + $0x20] ss:$2 sm:$0xff] %v88_v19 }
  0x1f   :  { %v103_v3 = vld.sshfl [vmem:[#allocation1] sm:$0xff pattern:$0x75316420]  ;;  %v104_v4 = vld.sshfl [vmem:[#allocation1 + $0x8] sm:$0xff pattern:$0x75316420] }
  0x20   :  { %v122_v5 = vpack.c.bf16 %v104_v4, %v103_v3  ;;  %111 = vst [vmem:[#allocation1] ss:$2 sm:$0xff] %v90_v2  ;;  %v105_v27 = vld.sshfl [vmem:[#allocation1 + $0x10] sm:$0xff pattern:$0x75316420] }
  0x21   :  { %v106_v28 = vld.sshfl [vmem:[#allocation1 + $0x18] sm:$0xff pattern:$0x75316420]  ;;  %v107_v51 = vld.sshfl [vmem:[#allocation1 + $0x20] sm:$0xff pattern:$0x75316420] }
  0x22   :  { %v133_v6 = vunpack.c.h.b16 %v122_v5  ;;  %v132_v7 = vunpack.c.l.b16 %v122_v5  ;;  %v123_v32 = vpack.c.bf16 %v106_v28, %v105_v27  ;;  %v108_v52 = vld.sshfl [vmem:[#allocation1 + $0x28] sm:$0xff pattern:$0x75316420] }
  0x23   :  { %v4035_v57 = vpack.c.bf16 %v108_v52, %v107_v51 }
  0x24   :  { %v3972_v8 = vpack.c.b16 %v133_v6, %v133_v6  ;;  %v3974_v9 = vpack.c.b16 %v132_v7, %v132_v7  ;;  %v134_v37 = vunpack.c.l.b16 %v123_v32  ;;  %v135_v39 = vunpack.c.h.b16 %v123_v32  ;;  %v89_v32 = vld [vmem:[%s5071_s5 + $0x18] sm:$0x77] }
  0x25   :  { %v136_v61 = vunpack.c.l.b16 %v4035_v57  ;;  %102 = vst [vmem:[#allocation1 + $0x30] ss:$2 sm:$0xff] %v89_v32 }
  0x26   :  { %583 = vrot.lane.b32.xlu1 %v3972_v8, %s3830_s2  ;;  %581 = vrot.lane.b32.xlu0 %v3974_v9, %s3830_s2  ;;  %v268_v10 = vrot.slane %v3972_v8, 5  ;;  %v160_v11 = vshrl.u32 %v3974_v9, 16  ;;  %v3983_v12 = vshll.u32 %v3974_v9, 16  ;;  %v482_v16 = vrot.slane %v3974_v9, 7 }
  0x27   :  { %v3992_v18 = vshll.u32 %v3972_v8, 16  ;;  %v168_v21 = vshrl.u32 %v3972_v8, 16  ;;  %v483_v25 = vrot.slane %v3972_v8, 7  ;;  %v267_v35 = vrot.slane %v3974_v9, 5 }
  0x28   :  { %278 = vrot.lane.b32.xlu2 %v268_v10, %s3831_s25  ;;  %v402_v13 = vrot.slane %v3983_v12, 1  ;;  %v518_v14 = vrot.slane %v160_v11, 5  ;;  %v519_v15 = vrot.slane %v3983_v12, 6  ;;  %v162_v33 = vrot.slane %v160_v11, 6 }
  0x29   :  { %v403_v22 = vrot.slane %v3992_v18, 1  ;;  %v521_v23 = vrot.slane %v168_v21, 5  ;;  %v522_v24 = vrot.slane %v3992_v18, 6  ;;  %v170_v30 = vrot.slane %v168_v21, 6 }
  0x2a   :  { %v411_v17 = vor.u32 %v402_v13, %v160_v11  ;;  %v520_v20 = vor.u32 %v519_v15, %v518_v14  ;;  %v173_v31 = vrot.slane %v3992_v18, 7  ;;  %v165_v34 = vrot.slane %v3983_v12, 7 }
  0x2b   :  { %v412_v26 = vor.u32 %v403_v22, %v168_v21  ;;  %v523_v29 = vor.u32 %v522_v24, %v521_v23  ;;  %v306_v40 = vrot.slane %v168_v21, 3  ;;  %v307_v41 = vrot.slane %v3992_v18, 4 }
  0x2c   :  { %v174_v36 = vor.u32 %v173_v31, %v170_v30  ;;  %v166_v38 = vor.u32 %v165_v34, %v162_v33  ;;  %v303_v42 = vrot.slane %v160_v11, 3  ;;  %v304_v43 = vrot.slane %v3983_v12, 4 }
  0x2d   :  { %v4014_v44 = vpack.c.b16 %v134_v37, %v134_v37  ;;  %v4017_v45 = vpack.c.b16 %v135_v39, %v135_v39  ;;  %v308_v46 = vor.u32 %v307_v41, %v306_v40  ;;  %v366_v49 = vrot.slane %v3974_v9, 2 }
  0x2e   :  { %491 = vrot.lane.b32.xlu1 %v482_v16, %s3832_s3  ;;  %438 = vrot.lane.b32.xlu0 %v411_v17, %s3833_s28  ;;  %v305_v47 = vor.u32 %v304_v43, %v303_v42  ;;  %v367_v59 = vrot.slane %v3972_v8, 2  ;;  %v4047_v62 = vpack.c.b16 %v136_v61, %v136_v61  ;;  %v3711_v1 = vpack.i.bf16 %v403_v22, %v402_v13 }
  0x2f   :  { %v4020_v48 = vshll.u32 %v4014_v44, 16  ;;  %v4024_v50 = vshll.u32 %v4017_v45, 16  ;;  %v4029_v53 = vshrl.u32 %v4014_v44, 16  ;;  %v184_v55 = vshrl.u32 %v4017_v45, 16 }
  0x30   :  { %545 = vrot.lane.b32.xlu2 %v520_v20, %s3834_s29  ;;  %v485_v63 = vrot.slane %v4017_v45, 7  ;;  %v484_v0 = vrot.slane %v4014_v44, 7  ;;  %v4054_v2 = vshll.u32 %v4047_v62, 16  ;;  %v192_v7 = vshrl.u32 %v4047_v62, 16 }
  0x31   :  { %v404_v54 = vrot.slane %v4020_v48, 1  ;;  %v405_v56 = vrot.slane %v4024_v50, 1  ;;  %v527_v3 = vrot.slane %v184_v55, 5  ;;  %v528_v4 = vrot.slane %v4024_v50, 6 }
  0x32   :  { %v524_v5 = vrot.slane %v4029_v53, 5  ;;  %v525_v6 = vrot.slane %v4020_v48, 6  ;;  %v406_v10 = vrot.slane %v4054_v2, 1  ;;  %v486_v14 = vrot.slane %v4047_v62, 7 }
  0x33   :  { %v413_v58 = vor.u32 %v404_v54, %v4029_v53  ;;  %v414_v60 = vor.u32 %v405_v56, %v184_v55  ;;  %v529_v11 = vor.u32 %v528_v4, %v527_v3  ;;  %v178_v15 = vrot.slane %v4029_v53, 6 }
  0x34   :  { %v526_v12 = vor.u32 %v525_v6, %v524_v5  ;;  %v415_v13 = vor.u32 %v406_v10, %v192_v7  ;;  %v181_v16 = vrot.slane %v4020_v48, 7  ;;  %v530_v17 = vrot.slane %v192_v7, 5 }
  0x35   :  { %v531_v18 = vrot.slane %v4054_v2, 6  ;;  %v186_v19 = vrot.slane %v184_v55, 6  ;;  %v189_v20 = vrot.slane %v4024_v50, 7  ;;  %v269_v24 = vrot.slane %v4014_v44, 5 }
  0x36   :  { %493 = vrot.lane.b32.xlu1 %v483_v25, %s3832_s3  ;;  %440 = vrot.lane.b32.xlu0 %v412_v26, %s3833_s28  ;;  %v182_v21 = vor.u32 %v181_v16, %v178_v15  ;;  %v270_v25 = vrot.slane %v4017_v45, 5  ;;  %v309_v26 = vrot.slane %v4029_v53, 3  ;;  %v310_v27 = vrot.slane %v4020_v48, 4 }
  0x37   :  { %v532_v22 = vor.u32 %v531_v18, %v530_v17  ;;  %v190_v23 = vor.u32 %v189_v20, %v186_v19  ;;  %v194_v28 = vrot.slane %v192_v7, 6  ;;  %v312_v30 = vrot.slane %v184_v55, 3 }
  0x38   :  { %547 = vrot.lane.b32.xlu2 %v523_v29, %s3834_s29  ;;  %v197_v29 = vrot.slane %v4054_v2, 7  ;;  %v313_v31 = vrot.slane %v4024_v50, 4  ;;  %v311_v33 = vor.u32 %v310_v27, %v309_v26  ;;  %v368_v37 = vrot.slane %v4014_v44, 2 }
  0x39   :  { %v137_v39 = vunpack.c.h.b16 %v4035_v57  ;;  %v369_v40 = vrot.slane %v4017_v45, 2  ;;  %v315_v41 = vrot.slane %v192_v7, 3  ;;  %v316_v42 = vrot.slane %v4054_v2, 4 }
  0x3a   :  { %v198_v34 = vor.u32 %v197_v29, %v194_v28  ;;  %v370_v52 = vrot.slane %v4047_v62, 2  ;;  %v3838_v28 = vmov 65535  }
  0x3b   :  { %v4107_v43 = vpack.c.b16 %v137_v39, %v137_v39  ;;  %v801_v29 = vsel %vm5062_vm1, 4294967295, %v3838_v28 }
  0x3d   :  { %v203_v51 = vshll.u32 %v4107_v43, 16  ;;  %v200_v53 = vshrl.u32 %v4107_v43, 16  ;;  %v487_v57 = vrot.slane %v4107_v43, 7  ;;  %v272_v20 = vrot.slane %v4107_v43, 5 }
  0x3e   :  { %276 = vrot.lane.b32.xlu1 %v267_v35, %s3831_s25  ;;  %233 = vrot.lane.b32.xlu0 %v174_v36, %s3835_s0  ;;  %v314_v35 = vor.u32 %v313_v31, %v312_v30 }
  0x3f   :  { %v407_v55 = vrot.slane %v203_v51, 1  ;;  %v534_v61 = vrot.slane %v203_v51, 6  ;;  %v205_v3 = vrot.slane %v203_v51, 7 }
  0x40   :  { %231 = vrot.lane.b32.xlu2 %v166_v38, %s3835_s0  ;;  %v271_v38 = vrot.slane %v4047_v62, 5 }
  0x41   :  { %v416_v50 = vor.u32 %v407_v55, %v200_v53 }
  0x46   :  { %332 = vrot.lane.b32.xlu1 %v308_v46, %s3836_s4  ;;  %330 = vrot.lane.b32.xlu0 %v305_v47, %s3836_s4  ;;  %v3716_v47 = vpack.i.bf16 %v405_v56, %v404_v54  ;;  %v109_v54 = vld.sshfl [vmem:[#allocation1 + $0x30] sm:$0xff pattern:$0x75316420]  ;;  %v110_v56 = vld.sshfl [vmem:[#allocation1 + $0x38] sm:$0xff pattern:$0x75316420] }
  0x48   :  { %375 = vrot.lane.b32.xlu2 %v366_v49, %s3837_s30  ;;  %v317_v49 = vor.u32 %v316_v42, %v315_v41  ;;  %v4192_v41 = vsel %vm5063_vm7, %v801_v29, 0 }
  0x4e   :  { %442 = vrot.lane.b32.xlu1 %v413_v58, %s3833_s28  ;;  %377 = vrot.lane.b32.xlu0 %v367_v59, %s3837_s30  ;;  %v3721_v58 = vpack.i.bf16 %v407_v55, %v406_v10  ;;  %v125_v59 = vpack.c.bf16 %v110_v56, %v109_v54 }
  0x50   :  { %444 = vrot.lane.b32.xlu2 %v414_v60, %s3833_s28  ;;  %v533_v60 = vrot.slane %v200_v53, 5  ;;  %v139_v4 = vunpack.c.h.b16 %v125_v59  ;;  %v138_v5 = vunpack.c.l.b16 %v125_v59 }
  0x52   :  { %v535_v2 = vor.u32 %v534_v61, %v533_v60  ;;  %v4134_v10 = vpack.c.b16 %v139_v4, %v139_v4 }
  0x54   :  { %v4143_v16 = vshll.u32 %v4134_v10, 16  ;;  %v489_v61 = vrot.slane %v4134_v10, 7 }
  0x56   :  { %497 = vrot.lane.b32.xlu1 %v485_v63, %s3832_s3  ;;  %495 = vrot.lane.b32.xlu0 %v484_v0, %s3832_s3 }
  0x58   :  { %3712 = vrot.lane.b32.xlu2 %v3711_v1, %s3833_s28  ;;  %v202_v1 = vrot.slane %v200_v53, 6 }
  0x5a   :  { %v206_v7 = vor.u32 %v205_v3, %v202_v1 }
  0x5e   :  { %551 = vrot.lane.b32.xlu1 %v529_v11, %s3834_s29  ;;  %549 = vrot.lane.b32.xlu0 %v526_v12, %s3834_s29  ;;  %v4136_v11 = vpack.c.b16 %v138_v5, %v138_v5  ;;  %v318_v12 = vrot.slane %v200_v53, 3 }
  0x60   :  { %446 = vrot.lane.b32.xlu2 %v415_v13, %s3833_s28  ;;  %v319_v13 = vrot.slane %v203_v51, 4  ;;  %v4146_v17 = vshll.u32 %v4136_v11, 16 }
  0x62   :  { %v320_v19 = vor.u32 %v319_v13, %v318_v12  ;;  %v408_v26 = vrot.slane %v4146_v17, 1  ;;  %v537_v55 = vrot.slane %v4146_v17, 6 }
  0x66   :  { %585 = vrot.lane.b32.xlu1 %v4014_v44, %s3830_s2  ;;  %499 = vrot.lane.b32.xlu0 %v486_v14, %s3832_s3 }
  0x68   :  { %587 = vrot.lane.b32.xlu2 %v4017_v45, %s3830_s2 }
  0x6e   :  { %235 = vrot.lane.b32.xlu1 %v182_v21, %s3835_s0  ;;  %553 = vrot.lane.b32.xlu0 %v532_v22, %s3834_s29  ;;  %v371_v21 = vrot.slane %v4107_v43, 2  ;;  %v112_v22 = vld.sshfl [vmem:[#allocation1] sm:$0xff pattern:$0x75316420] }
  0x6f   :  { %v126_v27 = vpack.c.bf16 %v112_v22, %v112_v22 }
  0x70   :  { %237 = vrot.lane.b32.xlu2 %v190_v23, %s3835_s0  ;;  %v4153_v23 = vshrl.u32 %v4134_v10, 16 }
  0x71   :  { %v140_v42 = vunpack.c.l.b16 %v126_v27 }
  0x72   :  { %v539_v56 = vrot.slane %v4153_v23, 5 }
  0x76   :  { %280 = vrot.lane.b32.xlu1 %v269_v24, %s3831_s25  ;;  %589 = vrot.lane.b32.xlu0 %v4047_v62, %s3830_s2  ;;  %v409_v24 = vrot.slane %v4143_v16, 1 }
  0x78   :  { %282 = vrot.lane.b32.xlu2 %v270_v25, %s3831_s25  ;;  %v4157_v25 = vshrl.u32 %v4136_v11, 16 }
  0x7a   :  { %v536_v53 = vrot.slane %v4157_v25, 5 }
  0x7c   :  { %v538_v60 = vor.u32 %v537_v55, %v536_v53 }
  0x7e   :  { %334 = vrot.lane.b32.xlu1 %v311_v33, %s3836_s4  ;;  %239 = vrot.lane.b32.xlu0 %v198_v34, %s3835_s0 }
  0x80   :  { %336 = vrot.lane.b32.xlu2 %v314_v35, %s3836_s4  ;;  %v418_v35 = vor.u32 %v409_v24, %v4153_v23 }
  0x82   :  { %v4098_v36 = vpop.permute.xlu2 %278 }
  0x86   :  { %379 = vrot.lane.b32.xlu1 %v368_v37, %s3837_s30  ;;  %284 = vrot.lane.b32.xlu0 %v271_v38, %s3831_s25  ;;  %v417_v37 = vor.u32 %v408_v26, %v4157_v25 }
  0x88   :  { %381 = vrot.lane.b32.xlu2 %v369_v40, %s3837_s30 }
  0x8a   :  { %v4110_v46 = vpop.permute.xlu2 %545 }
  0x8e   :  { %3717 = vrot.lane.b32.xlu1 %v3716_v47, %s3833_s28  ;;  %338 = vrot.lane.b32.xlu0 %v317_v49, %s3836_s4 }
  0x90   :  { %383 = vrot.lane.b32.xlu2 %v370_v52, %s3837_s30  ;;  %v488_v52 = vrot.slane %v4136_v11, 7 }
  0x92   :  { %v4123_v48 = vpop.permute.xlu2 %547 }
  0x93   :  { %v564_v38 = vsel %vm563_vm5, %v4110_v46, %v4123_v48 }
  0x96   :  { %501 = vrot.lane.b32.xlu1 %v487_v57, %s3832_s3  ;;  %448 = vrot.lane.b32.xlu0 %v416_v50, %s3833_s28  ;;  %v4205_v57 = vpack.c.b16 %v140_v42, %v140_v42  ;;  %v213_v42 = vrot.slane %v4146_v17, 7 }
  0x98   :  { %v4129_v63 = vpop.permute.xlu1 %583  ;;  %v582_v0 = vpop.permute.xlu0 %581  ;;  %3722 = vrot.lane.b32.xlu2 %v3721_v58, %s3833_s28  ;;  %v540_v58 = vrot.slane %v4143_v16, 6  ;;  %v4221_v3 = vshrl.u32 %v4205_v57, 16 }
  0x99   :  { %v600_v47 = vsel %vm5061_vm8, %v582_v0, %v4129_v63  ;;  %v4216_v0 = vshll.u32 %v4205_v57, 16  ;;  %vm393_vm8 = vcmask 842752  }
  0x9a   :  { %v4132_v6 = vpop.permute.xlu2 %231  ;;  %v541_v1 = vor.u32 %v540_v58, %v539_v56  ;;  %v542_v29 = vrot.slane %v4221_v3, 5  ;;  %v221_v56 = vrot.slane %v4143_v16, 7 }
  0x9b   :  { %v410_v4 = vrot.slane %v4216_v0, 1 }
  0x9e   :  { %591 = vrot.lane.b32.xlu1 %v4107_v43, %s3830_s2  ;;  %555 = vrot.lane.b32.xlu0 %v535_v2, %s3834_s29 }
  0xa0   :  { %v492_v14 = vpop.permute.xlu1 %491  ;;  %v439_v15 = vpop.permute.xlu0 %438  ;;  %241 = vrot.lane.b32.xlu2 %v206_v7, %s3835_s0 }
  0xa2   :  { %v4148_v18 = vpop.permute.xlu2 %375 }
  0xa6   :  { %340 = vrot.lane.b32.xlu1 %v320_v19, %s3836_s4  ;;  %286 = vrot.lane.b32.xlu0 %v272_v20, %s3831_s25 }
  0xa8   :  { %v4164_v30 = vpop.permute.xlu1 %493  ;;  %v4166_v31 = vpop.permute.xlu0 %440  ;;  %385 = vrot.lane.b32.xlu2 %v371_v21, %s3837_s30 }
  0xa9   :  { %v510_v33 = vsel %vm509_vm3, %v492_v14, %v4164_v30  ;;  %v465_v34 = vsel %vm456_vm4, %v439_v15, %v4166_v31  ;;  %v490_v14 = vrot.slane %v4205_v57, 7  ;;  %v419_v15 = vor.u32 %v410_v4, %v4221_v3 }
  0xaa   :  { %v721_v39 = vsel %vm718_vm6, %v465_v34, %v510_v33  ;;  %v4189_v40 = vpop.permute.xlu2 %444  ;;  %v543_v33 = vrot.slane %v4216_v0, 6 }
  0xab   :  { %v758_v49 = vsel %vm4171_vm9, %v721_v39, %v564_v38  ;;  %v210_v39 = vrot.slane %v4157_v25, 6 }
  0xac   :  { %v770_v51 = vsel %vm5058_vm10, %v758_v49, %v600_v47  ;;  %vm658_vm10 = vsmask.f32 4352 }
  0xad   :  { %v803_v46 = vand.u32 %v4192_v41, %v770_v51  ;;  %v214_v55 = vor.u32 %v213_v42, %v210_v39 }
  0xae   :  { %452 = vrot.lane.b32.xlu1 %v418_v35, %s3833_s28  ;;  %450 = vrot.lane.b32.xlu0 %v417_v37, %s3833_s28 }
  0xaf   :  { %827 = vmatpush.bf16.msra.mxu0 %v803_v46  ;;  %v544_v46 = vor.u32 %v543_v33, %v542_v29 }
  0xb0   :  { %v277_v50 = vpop.permute.xlu1 %276  ;;  %v4207_v54 = vpop.permute.xlu0 %233  ;;  %503 = vrot.lane.b32.xlu2 %v488_v52, %s3832_s3 }
  0xb1   :  { %v250_v12 = vsel %vm5060_vm11, %v4132_v6, %v4207_v54  ;;  %v295_v21 = vsel %vm294_vm14, %v277_v50, %v4098_v36  ;;  %vm4249_vm11 = vmand %vm5062_vm1, %vm658_vm10  ;;  %v218_v50 = vrot.slane %v4153_v23, 6  ;;  %vm5082_vm1 = vcmask 1043456  }
  0xb2   :  { %v4212_v59 = vpop.permute.xlu2 %3712  ;;  %v611_v6 = vsel %vm4228_vm15, %v3974_v9, %v250_v12  ;;  %vm4267_vm10 = vmand %vm706_vm13, %vm707_vm12  ;;  %v229_v12 = vrot.slane %v4216_v0, 7  ;;  %vm5080_vm12 = vcmask 637952  }
  0xb3   :  { %v3715_v19 = vunpack.i.h.bf16 %v4212_v59  ;;  %v3714_v20 = vunpack.i.l.bf16 %v4212_v59  ;;  %v623_v9 = vsel %vm620_vm0, %v611_v6, %v295_v21  ;;  %v322_v21 = vrot.slane %v4146_v17, 4  ;;  %vm5081_vm13 = vmmov %vm5080_vm12 }
  0xb5   :  { %v457_v37 = vsel %vm456_vm4, %v3714_v20, %v3715_v19  ;;  %v321_v20 = vrot.slane %v4157_v25, 3  ;;  %v324_v25 = vrot.slane %v4153_v23, 3 }
  0xb6   :  { %557 = vrot.lane.b32.xlu1 %v538_v60, %s3834_s29  ;;  %505 = vrot.lane.b32.xlu0 %v489_v61, %s3832_s3  ;;  %v222_v61 = vor.u32 %v221_v56, %v218_v50 }
  0xb7   :  { %v323_v33 = vor.u32 %v322_v21, %v321_v20  ;;  %v328_v20 = vrot.slane %v4216_v0, 4 }
  0xb8   :  { %v4224_v5 = vpop.permute.xlu1 %332  ;;  %v331_v2 = vpop.permute.xlu0 %330  ;;  %559 = vrot.lane.b32.xlu2 %v541_v1, %s3834_s29  ;;  %v273_v1 = vrot.slane %v4136_v11, 5 }
  0xb9   :  { %v349_v27 = vsel %vm348_vm2, %v331_v2, %v4224_v5  ;;  %v226_v2 = vrot.slane %v4221_v3, 6 }
  0xba   :  { %v4235_v13 = vpop.permute.xlu2 %446  ;;  %v660_v47 = vsel %vm4249_vm11, %v623_v9, %v349_v27  ;;  %v274_v27 = vrot.slane %v4134_v10, 5 }
  0xbb   :  { %v230_v29 = vor.u32 %v229_v12, %v226_v2  ;;  %v372_v12 = vrot.slane %v4136_v11, 2 }
  0xbe   :  { %507 = vrot.lane.b32.xlu1 %v490_v14, %s3832_s3  ;;  %454 = vrot.lane.b32.xlu0 %v419_v15, %s3833_s28 }
  0xc0   :  { %v443_v34 = vpop.permute.xlu1 %442  ;;  %v4260_v35 = vpop.permute.xlu0 %377  ;;  %593 = vrot.lane.b32.xlu2 %v4136_v11, %s3830_s2 }
  0xc1   :  { %v394_v49 = vsel %vm393_vm8, %v4148_v18, %v4260_v35 }
  0xc2   :  { %v4278_v51 = vpop.permute.xlu2 %587  ;;  %v672_v52 = vsel %vm5063_vm7, %v660_v47, %v394_v49  ;;  %v325_v47 = vrot.slane %v4143_v16, 4  ;;  %v466_v49 = vsel %vm456_vm4, %v4166_v31, %v443_v34  ;;  %vm5083_vm7 = vmmov %vm5082_vm1 }
  0xc3   :  { %v709_v53 = vsel %vm4267_vm10, %v672_v52, %v457_v37 }
  0xc4   :  { %828 = vmatpush.bf16.msra.mxu0 %v709_v53 }
  0xc6   :  { %561 = vrot.lane.b32.xlu1 %v544_v46, %s3834_s29  ;;  %595 = vrot.lane.b32.xlu0 %v4134_v10, %s3830_s2 }
  0xc8   :  { %v498_v18 = vpop.permute.xlu1 %497  ;;  %v496_v58 = vpop.permute.xlu0 %495  ;;  %243 = vrot.lane.b32.xlu2 %v214_v55, %s3835_s0 }
  0xc9   :  { %v511_v9 = vsel %vm509_vm3, %v4164_v30, %v496_v58  ;;  %v512_v37 = vsel %vm509_vm3, %v496_v58, %v498_v18  ;;  %v467_v30 = vsel %vm456_vm4, %v443_v34, %v4189_v40 }
  0xca   :  { %v4289_v60 = vpop.permute.xlu2 %237  ;;  %v725_v52 = vsel %vm718_vm6, %v466_v49, %v511_v9 }
  0xce   :  { %597 = vrot.lane.b32.xlu1 %v4205_v57, %s3830_s2  ;;  %245 = vrot.lane.b32.xlu0 %v222_v61, %s3835_s0  ;;  %v326_v61 = vor.u32 %v325_v47, %v324_v25  ;;  %s3841_s2 = smov 105  }
  0xd0   :  { %v552_v14 = vpop.permute.xlu1 %551  ;;  %v550_v15 = vpop.permute.xlu0 %549  ;;  %288 = vrot.lane.b32.xlu2 %v273_v1, %s3831_s25  ;;  %v275_v1 = vrot.slane %v4205_v57, 5 }
  0xd1   :  { %v565_v39 = vsel %vm563_vm5, %v4123_v48, %v550_v15  ;;  %v566_v42 = vsel %vm563_vm5, %v550_v15, %v552_v14  ;;  %v729_v48 = vsel %vm718_vm6, %v467_v30, %v512_v37  ;;  %v327_v15 = vrot.slane %v4221_v3, 3 }
  0xd2   :  { %v4300_v6 = vpop.permute.xlu2 %282  ;;  %v759_v31 = vsel %vm4171_vm9, %v725_v52, %v565_v39  ;;  %v760_v34 = vsel %vm4171_vm9, %v729_v48, %v566_v42  ;;  %v3726_v37 = vpack.i.bf16 %v409_v24, %v408_v26  ;;  %v468_v42 = vsel %vm456_vm4, %v4189_v40, %v4235_v13 }
  0xd3   :  { %v329_v9 = vor.u32 %v328_v20, %v327_v15  ;;  %v374_v40 = vrot.slane %v4205_v57, 2 }
  0xd6   :  { %290 = vrot.lane.b32.xlu0 %v274_v27, %s3831_s25  ;;  %247 = vrot.lane.b32.xlu1 %v230_v29, %s3835_s0 }
  0xd8   :  { %v586_v46 = vpop.permute.xlu1 %585  ;;  %v4319_v53 = vpop.permute.xlu0 %499  ;;  %342 = vrot.lane.b32.xlu2 %v323_v33, %s3836_s4  ;;  %v373_v33 = vrot.slane %v4134_v10, 2 }
  0xd9   :  { %v601_v23 = vsel %vm5080_vm12, %v4129_v63, %v586_v46  ;;  %v602_v55 = vsel %vm5081_vm13, %v586_v46, %v4278_v51  ;;  %v513_v39 = vsel %vm509_vm3, %v498_v18, %v4319_v53  ;;  %vm5086_vm13 = vcmask 1045504  }
  0xda   :  { %v4330_v50 = vpop.permute.xlu2 %336  ;;  %v773_v56 = vsel %vm5082_vm1, %v759_v31, %v601_v23  ;;  %v776_v58 = vsel %vm5083_vm7, %v760_v34, %v602_v55  ;;  %v733_v25 = vsel %vm718_vm6, %v468_v42, %v513_v39  ;;  %vm5084_vm1 = vmmov %vm5080_vm12  ;;  %vm5085_vm12 = vcmask 1039360  }
  0xdb   :  { %v805_v63 = vand.u32 %v4192_v41, %v773_v56  ;;  %v807_v2 = vand.u32 %v4192_v41, %v776_v58 }
  0xdd   :  { %840 = vmatpush.bf16.msra.mxu1 %v805_v63  ;;  %853 = vmatpush.bf16.msra.mxu2 %v807_v2 }
  0xde   :  { %344 = vrot.lane.b32.xlu0 %v326_v61, %s3836_s4  ;;  %292 = vrot.lane.b32.xlu1 %v275_v1, %s3831_s25 }
  0xe0   :  { %v236_v21 = vpop.permute.xlu1 %235  ;;  %v4342_v27 = vpop.permute.xlu0 %553  ;;  %387 = vrot.lane.b32.xlu2 %v372_v12, %s3837_s30 }
  0xe1   :  { %v567_v3 = vsel %vm563_vm5, %v552_v14, %v4342_v27  ;;  %v251_v49 = vsel %vm5085_vm12, %v4207_v54, %v236_v21 }
  0xe2   :  { %v382_v29 = vpop.permute.xlu2 %381  ;;  %v761_v24 = vsel %vm4171_vm9, %v733_v25, %v567_v3 }
  0xe6   :  { %389 = vrot.lane.b32.xlu0 %v373_v33, %s3837_s30  ;;  %346 = vrot.lane.b32.xlu1 %v329_v9, %s3836_s4 }
  0xe8   :  { %v281_v17 = vpop.permute.xlu1 %280  ;;  %v4360_v47 = vpop.permute.xlu0 %589  ;;  %3727 = vrot.lane.b32.xlu2 %v3726_v37, %s3833_s28 }
  0xe9   :  { %v603_v16 = vsel %vm5084_vm1, %v4278_v51, %v4360_v47  ;;  %v296_v30 = vsel %vm294_vm14, %v4098_v36, %v281_v17  ;;  %v612_v51 = vsel %vm4228_vm15, %v3972_v8, %v251_v49  ;;  %vm5087_vm1 = vmmov %vm5085_vm12 }
  0xea   :  { %v4368_v26 = vpop.permute.xlu2 %383  ;;  %v779_v18 = vsel %vm5083_vm7, %v761_v24, %v603_v16  ;;  %v627_v46 = vsel %vm620_vm0, %v612_v51, %v296_v30  ;;  %v252_v34 = vsel %vm5087_vm1, %v236_v21, %v4289_v60  ;;  %vm5088_vm7 = vmmov %vm5087_vm1  ;;  %vm5091_vm1 = vcmask 637952  }
  0xeb   :  { %v809_v14 = vand.u32 %v4192_v41, %v779_v18  ;;  %v397_v33 = vsel %vm393_vm8, %v382_v29, %v4368_v26  ;;  %vm5089_vm12 = vmmov %vm5086_vm13 }
  0xed   :  { %866 = vmatpush.bf16.msra.mxu3 %v809_v14 }
  0xee   :  { %391 = vrot.lane.b32.xlu0 %v374_v40, %s3837_s30  ;;  %436 = vrot.lane.b32.xlu1 %v410_v4, %s3833_s28 }
  0xf0   :  { %v335_v52 = vpop.permute.xlu1 %334  ;;  %v240_v48 = vpop.permute.xlu0 %239 }
  0xf1   :  { %v350_v54 = vsel %vm348_vm2, %v4224_v5, %v335_v52  ;;  %v297_v5 = vsel %vm294_vm14, %v281_v17, %v4300_v6  ;;  %v253_v56 = vsel %vm5088_vm7, %v4289_v60, %v240_v48  ;;  %v351_v61 = vsel %vm348_vm2, %v335_v52, %v4330_v50 }
  0xf2   :  { %v661_v36 = vsel %vm4249_vm11, %v627_v46, %v350_v54  ;;  %v4389_v23 = vpop.permute.xlu2 %3722  ;;  %v614_v2 = vsel %vm4228_vm15, %v4017_v45, %v253_v56  ;;  %vm5092_vm7 = vcmask 1043456  }
  0xf3   :  { %v3724_v1 = vunpack.i.l.bf16 %v4389_v23 }
  0xf8   :  { %v380_v55 = vpop.permute.xlu1 %379  ;;  %v285_v31 = vpop.permute.xlu0 %284 }
  0xf9   :  { %v395_v0 = vsel %vm393_vm8, %v4260_v35, %v380_v55  ;;  %v298_v58 = vsel %vm294_vm14, %v4300_v6, %v285_v31  ;;  %v613_v35 = vsel %vm4228_vm15, %v4014_v44, %v252_v34  ;;  %v396_v60 = vsel %vm393_vm8, %v380_v55, %v382_v29 }
  0xfa   :  { %v4393_v4 = vpop.permute.xlu2 %241  ;;  %v676_v8 = vsel %vm5086_vm13, %v661_v36, %v395_v0  ;;  %v631_v63 = vsel %vm620_vm0, %v613_v35, %v297_v5  ;;  %v635_v6 = vsel %vm620_vm0, %v614_v2, %v298_v58  ;;  %vm5090_vm13 = vmmov %vm5089_vm12  ;;  %v3725_v55 = vunpack.i.h.bf16 %v4389_v23 }
  0xfb   :  { %v662_v9 = vsel %vm4249_vm11, %v631_v63, %v351_v61 }
  0xfc   :  { %v680_v42 = vsel %vm5089_vm12, %v662_v9, %v396_v60  ;;  %vm5093_vm12 = vcmask 1039360   ;;  %v461_v35 = vsel %vm456_vm4, %v3724_v1, %v3725_v55 }
 0x100   :  { %v3718_v12 = vpop.permute.xlu1 %3717  ;;  %v339_v15 = vpop.permute.xlu0 %338 }
 0x101   :  { %v3720_v20 = vunpack.i.h.bf16 %v3718_v12  ;;  %v3719_v21 = vunpack.i.l.bf16 %v3718_v12  ;;  %v352_v44 = vsel %vm348_vm2, %v4330_v50, %v339_v15 }
 0x102   :  { %v663_v45 = vsel %vm4249_vm11, %v635_v6, %v352_v44  ;;  %v4424_v37 = vpop.permute.xlu2 %385 }
 0x103   :  { %v458_v39 = vsel %vm456_vm4, %v3715_v19, %v3719_v21  ;;  %v459_v3 = vsel %vm456_vm4, %v3719_v21, %v3720_v20  ;;  %v460_v50 = vsel %vm456_vm4, %v3720_v20, %v3724_v1  ;;  %v684_v17 = vsel %vm5090_vm13, %v663_v45, %v397_v33 }
 0x104   :  { %v710_v29 = vsel %vm4267_vm10, %v676_v8, %v458_v39  ;;  %v711_v25 = vsel %vm4267_vm10, %v680_v42, %v459_v3  ;;  %v712_v59 = vsel %vm4267_vm10, %v684_v17, %v460_v50 }
 0x105   :  { %841 = vmatpush.bf16.msra.mxu1 %v710_v29  ;;  %854 = vmatpush.bf16.msra.mxu2 %v711_v25 }
 0x106   :  { %867 = vmatpush.bf16.msra.mxu3 %v712_v59 }
 0x108   :  { %v502_v19 = vpop.permute.xlu1 %501  ;;  %v449_v16 = vpop.permute.xlu0 %448 }
 0x109   :  { %v514_v18 = vsel %vm509_vm3, %v4319_v53, %v502_v19  ;;  %v469_v40 = vsel %vm456_vm4, %v4235_v13, %v449_v16  ;;  %v254_v13 = vsel %vm5093_vm12, %v240_v48, %v4393_v4  ;;  %v398_v48 = vsel %vm393_vm8, %v4368_v26, %v4424_v37  ;;  %v4479_v26 = vld [vmem:[%s5094_s24] sm:$0xf]  ;;  %s3840_s24 = smov 106  }
 0x10a   :  { %v504_v24 = vpop.permute.xlu2 %503  ;;  %v737_v30 = vsel %vm718_vm6, %v469_v40, %v514_v18  ;;  %vm5096_vm12 = vcmask 1043456  }
 0x10b   :  { %v515_v60 = vsel %vm509_vm3, %v502_v19, %v504_v24 }
 0x110   :  { %v592_v14 = vpop.permute.xlu1 %591  ;;  %v556_v49 = vpop.permute.xlu0 %555 }
 0x111   :  { %v604_v51 = vsel %vm5091_vm1, %v4360_v47, %v592_v14  ;;  %v568_v52 = vsel %vm563_vm5, %v4342_v27, %v556_v49  ;;  %v615_v27 = vsel %vm4228_vm15, %v4047_v62, %v254_v13  ;;  %vm796_vm1 = vcmask 220160  }
 0x112   :  { %v762_v46 = vsel %vm4171_vm9, %v737_v30, %v568_v52  ;;  %v4450_v54 = vpop.permute.xlu2 %559  ;;  %2895 = vmatmul.msk.bf16.vlgmr.msra.gmra.mxu0 %vm796_vm1, %v4479_v26  ;;  %2896 = vmatmul.msk.bf16.vlgmr.msra.gmra.mxu1 %vm796_vm1, %v4479_v26 }
 0x113   :  { %v782_v53 = vsel %vm5092_vm7, %v762_v46, %v604_v51  ;;  %2897 = vmatmul.msk.bf16.vlgmr.msra.gmra.mxu2 %vm796_vm1, %v4479_v26  ;;  %2898 = vmatmul.msk.bf16.vlgmr.msra.gmra.mxu3 %vm796_vm1, %v4479_v26  ;;  %vm5095_vm7 = vcmask 637952  }
 0x114   :  { %v811_v36 = vand.u32 %v4192_v41, %v782_v53 }
 0x116   :  { %879 = vmatpush.bf16.msrb.mxu0 %v811_v36 }
 0x118   :  { %v341_v0 = vpop.permute.xlu1 %340  ;;  %v287_v47 = vpop.permute.xlu0 %286 }
 0x119   :  { %v353_v8 = vsel %vm348_vm2, %v339_v15, %v341_v0  ;;  %v299_v34 = vsel %vm294_vm14, %v285_v31, %v287_v47 }
 0x11a   :  { %v639_v5 = vsel %vm620_vm0, %v615_v27, %v299_v34  ;;  %v594_v56 = vpop.permute.xlu2 %593 }
 0x11b   :  { %v664_v58 = vsel %vm4249_vm11, %v639_v5, %v353_v8  ;;  %v605_v21 = vsel %vm5095_vm7, %v592_v14, %v594_v56 }
 0x11c   :  { %v688_v62 = vsel %vm5090_vm13, %v664_v58, %v398_v48  ;;  %vm5097_vm13 = vcmask 1039360  }
 0x11d   :  { %v713_v61 = vsel %vm4267_vm10, %v688_v62, %v461_v35 }
 0x11e   :  { %880 = vmatpush.bf16.msrb.mxu0 %v713_v61 }
 0x120   :  { %v453_v31 = vpop.permute.xlu1 %452  ;;  %v451_v63 = vpop.permute.xlu0 %450 }
 0x121   :  { %v470_v1 = vsel %vm456_vm4, %v449_v16, %v451_v63  ;;  %v471_v29 = vsel %vm456_vm4, %v451_v63, %v453_v31 }
 0x122   :  { %v4474_v2 = vpop.permute.xlu2 %243  ;;  %v741_v6 = vsel %vm718_vm6, %v470_v1, %v515_v60  ;;  %2899 = vmatmul.msk.bf16.vlgmr.msrb.gmra.mxu0 %vm796_vm1, %v4479_v26 }
 0x123   :  { %v255_v25 = vsel %vm5097_vm13, %v4393_v4, %v4474_v2  ;;  %vm5098_vm13 = vcmask 1045504  }
 0x124   :  { %v616_v40 = vsel %vm4228_vm15, %v4107_v43, %v255_v25 }
 0x128   :  { %v558_v12 = vpop.permute.xlu1 %557  ;;  %v506_v15 = vpop.permute.xlu0 %505 }
 0x129   :  { %v569_v20 = vsel %vm563_vm5, %v556_v49, %v558_v12  ;;  %v516_v50 = vsel %vm509_vm3, %v504_v24, %v506_v15  ;;  %v570_v17 = vsel %vm563_vm5, %v558_v12, %v4450_v54 }
 0x12a   :  { %v763_v44 = vsel %vm4171_vm9, %v741_v6, %v569_v20  ;;  %v289_v33 = vpop.permute.xlu2 %288  ;;  %v745_v59 = vsel %vm718_vm6, %v471_v29, %v516_v50 }
 0x12b   :  { %v785_v9 = vsel %vm5096_vm12, %v763_v44, %v605_v21  ;;  %v300_v19 = vsel %vm294_vm14, %v287_v47, %v289_v33  ;;  %v764_v4 = vsel %vm4171_vm9, %v745_v59, %v570_v17 }
 0x12c   :  { %v813_v45 = vand.u32 %v4192_v41, %v785_v9  ;;  %v643_v49 = vsel %vm620_vm0, %v616_v40, %v300_v19 }
 0x12e   :  { %892 = vmatpush.bf16.msrb.mxu1 %v813_v45 }
 0x130   :  { %v508_v39 = vpop.permute.xlu1 %507  ;;  %v455_v3 = vpop.permute.xlu0 %454 }
 0x131   :  { %v517_v36 = vsel %vm509_vm3, %v506_v15, %v508_v39  ;;  %v472_v13 = vsel %vm456_vm4, %v453_v31, %v455_v3  ;;  %v753_v47 = vsel %vm718_vm6, %v455_v3, %v508_v39  ;;  %vm5099_vm3 = vmmov %vm5096_vm12 }
 0x132   :  { %v343_v42 = vpop.permute.xlu2 %342  ;;  %v749_v27 = vsel %vm718_vm6, %v472_v13, %v517_v36  ;;  %vm5101_vm6 = vcmask 1039360  }
 0x133   :  { %v354_v16 = vsel %vm348_vm2, %v341_v0, %v343_v42 }
 0x134   :  { %v665_v52 = vsel %vm4249_vm11, %v643_v49, %v354_v16 }
 0x138   :  { %v562_v18 = vpop.permute.xlu1 %561  ;;  %v596_v24 = vpop.permute.xlu0 %595 }
 0x139   :  { %v606_v14 = vsel %vm5095_vm7, %v594_v56, %v596_v24  ;;  %v571_v0 = vsel %vm563_vm5, %v4450_v54, %v562_v18  ;;  %v766_v8 = vsel %vm4171_vm9, %v753_v47, %v562_v18  ;;  %vm5100_vm5 = vmmov %vm5099_vm3 }
 0x13a   :  { %v388_v30 = vpop.permute.xlu2 %387  ;;  %v788_v51 = vsel %vm5096_vm12, %v764_v4, %v606_v14  ;;  %v765_v5 = vsel %vm4171_vm9, %v749_v27, %v571_v0  ;;  %vm5102_vm9 = vmmov %vm5098_vm13 }
 0x13b   :  { %v399_v46 = vsel %vm393_vm8, %v4424_v37, %v388_v30  ;;  %v815_v53 = vand.u32 %v4192_v41, %v788_v51  ;;  %vm5103_vm12 = vmmov %vm5101_vm6 }
 0x13c   :  { %v692_v43 = vsel %vm5098_vm13, %v665_v52, %v399_v46  ;;  %vm5104_vm13 = vmmov %vm5102_vm9 }
 0x13d   :  { %905 = vmatpush.bf16.msrb.mxu2 %v815_v53 }
 0x140   :  { %v598_v37 = vpop.permute.xlu1 %597  ;;  %v246_v34 = vpop.permute.xlu0 %245 }
 0x141   :  { %v607_v56 = vsel %vm5095_vm7, %v596_v24, %v598_v37  ;;  %v794_v48 = vsel %vm5099_vm3, %v766_v8, %v598_v37  ;;  %vm5112_vm3 = vmmov %vm5101_vm6 }
 0x142   :  { %v819_v58 = vand.u32 %v4192_v41, %v794_v48  ;;  %v3728_v35 = vpop.permute.xlu2 %3727  ;;  %v791_v54 = vsel %vm5100_vm5, %v765_v5, %v607_v56  ;;  %vm5113_vm5 = vmmov %vm5112_vm3 }
 0x143   :  { %v3729_v62 = vunpack.i.l.bf16 %v3728_v35  ;;  %v817_v61 = vand.u32 %v4192_v41, %v791_v54  ;;  %v256_v41 = vsel %vm5101_vm6, %v4474_v2, %v246_v34  ;;  %v3730_v15 = vunpack.i.h.bf16 %v3728_v35 }
 0x144   :  { %931 = vmatpush.bf16.msra.mxu0 %v819_v58 }
 0x145   :  { %918 = vmatpush.bf16.msrb.mxu3 %v817_v61  ;;  %v462_v31 = vsel %vm456_vm4, %v3725_v55, %v3729_v62  ;;  %v617_v55 = vsel %vm4228_vm15, %v4136_v11, %v256_v41  ;;  %v463_v9 = vsel %vm456_vm4, %v3729_v62, %v3730_v15 }
 0x146   :  { %v714_v32 = vsel %vm4267_vm10, %v692_v43, %v462_v31 }
 0x147   :  { %893 = vmatpush.bf16.msrb.mxu1 %v714_v32 }
 0x148   :  { %v291_v63 = vpop.permute.xlu0 %290  ;;  %v248_v1 = vpop.permute.xlu1 %247 }
 0x149   :  { %v301_v6 = vsel %vm294_vm14, %v289_v33, %v291_v63  ;;  %v257_v3 = vsel %vm5103_vm12, %v246_v34, %v248_v1  ;;  %vm5116_vm12 = vmmov %vm5112_vm3 }
 0x14a   :  { %2900 = vmatmul.msk.bf16.vlgmr.msrb.gmra.mxu1 %vm796_vm1, %v4479_v26  ;;  %v647_v20 = vsel %vm620_vm0, %v617_v55, %v301_v6  ;;  %v618_v29 = vsel %vm4228_vm15, %v4134_v10, %v257_v3 }
 0x150   :  { %v345_v60 = vpop.permute.xlu0 %344  ;;  %v293_v12 = vpop.permute.xlu1 %292 }
 0x151   :  { %v355_v23 = vsel %vm348_vm2, %v343_v42, %v345_v60  ;;  %v302_v11 = vsel %vm294_vm14, %v291_v63, %v293_v12  ;;  %v619_v42 = vsel %vm4228_vm15, %v4205_v57, %v248_v1  ;;  %vm5105_vm15 = vmmov %vm5102_vm9 }
 0x152   :  { %v666_v45 = vsel %vm4249_vm11, %v647_v20, %v355_v23  ;;  %v655_v25 = vsel %vm620_vm0, %v619_v42, %v293_v12  ;;  %v651_v17 = vsel %vm620_vm0, %v618_v29, %v302_v11 }
 0x158   :  { %v390_v21 = vpop.permute.xlu0 %389  ;;  %v347_v44 = vpop.permute.xlu1 %346 }
 0x159   :  { %v400_v2 = vsel %vm393_vm8, %v388_v30, %v390_v21  ;;  %v356_v50 = vsel %vm348_vm2, %v345_v60, %v347_v44  ;;  %v668_v59 = vsel %vm4249_vm11, %v655_v25, %v347_v44 }
 0x15a   :  { %v696_v39 = vsel %vm5102_vm9, %v666_v45, %v400_v2  ;;  %v667_v57 = vsel %vm4249_vm11, %v651_v17, %v356_v50  ;;  %vm5115_vm9 = vmmov %vm5112_vm3 }
 0x15b   :  { %v715_v33 = vsel %vm4267_vm10, %v696_v39, %v463_v9 }
 0x15c   :  { %906 = vmatpush.bf16.msrb.mxu2 %v715_v33 }
 0x15f   :  { %2901 = vmatmul.msk.bf16.vlgmr.msrb.gmra.mxu2 %vm796_vm1, %v4479_v26 }
 0x160   :  { %v392_v19 = vpop.permute.xlu0 %391  ;;  %v437_v16 = vpop.permute.xlu1 %436 }
 0x161   :  { %v401_v18 = vsel %vm393_vm8, %v390_v21, %v392_v19  ;;  %v704_v7 = vsel %vm5104_vm13, %v668_v59, %v392_v19  ;;  %v464_v10 = vsel %vm456_vm4, %v3730_v15, %v437_v16  ;;  %v3764_v21 = vld [vmem:[%s5106_s27 + $0x8] ss:$0 sm:$0xff]  ;;  %vm5107_vm4 = vmmov %vm5095_vm7 }
 0x162   :  { %v717_v24 = vsel %vm4267_vm10, %v704_v7, %v437_v16  ;;  %v700_v40 = vsel %vm5105_vm15, %v667_v57, %v401_v18  ;;  %vm5108_vm8 = vmmov %vm5107_vm4 }
 0x163   :  { %932 = vmatpush.bf16.msra.mxu0 %v717_v24  ;;  %v716_v14 = vsel %vm4267_vm10, %v700_v40, %v464_v10  ;;  %vm5111_vm7 = vmmov %vm5101_vm6 }
 0x164   :  { %919 = vmatpush.bf16.msrb.mxu3 %v716_v14  ;;  %vm5114_vm6 = vmmov %vm5112_vm3 }
 0x165   :  { %vm5117_vm13 = vmmov %vm5112_vm3 }
 0x166   :  { %2903 = vmatmul.msk.bf16.vlgmr.msra.gmra.mxu0 %vm796_vm1, %v4479_v26  ;;  %vm5118_vm15 = vmmov %vm5112_vm3 }
 0x167   :  { %2902 = vmatmul.msk.bf16.vlgmr.msrb.gmra.mxu3 %vm796_vm1, %v4479_v26  ;;  %v938_v26 = vld [vmem:[%s5106_s27] sm:$0xff]  ;;  %s3843_s27 = smov 115  }
 0x168   :  { %v942_v13 = vperm.slane %v938_v26, 0  ;;  %v943_v0 = vperm.slane %v938_v26, 1  ;;  %v944_v37 = vperm.slane %v938_v26, 2  ;;  %v945_v48 = vperm.slane %v938_v26, 3 }
 0x169   :  { %v946_v61 = vperm.slane %v938_v26, 4  ;;  %v947_v60 = vperm.slane %v938_v26, 5  ;;  %v948_v41 = vperm.slane %v938_v26, 6  ;;  %v949_v39 = vperm.slane %v938_v26, 7 }
 0x18f   :  { %v4590_v22 = vpop.f32.mrf.mxu0  ;;  %v4592_v4 = vpop.f32.mrf.mxu1 }
 0x190   :  { %v960_v27 = vmul.f32 %v942_v13, %v4590_v22  ;;  %v961_v8 = vmul.f32 %v943_v0, %v4592_v4 }
 0x192   :  { %v982_v34 = vmul.f32 %v960_v27, %v4590_v22  ;;  %v983_v5 = vmul.f32 %v961_v8, %v4592_v4  ;;  %v969_v58 = vadd.f32 %v961_v8, %v960_v27 }
 0x194   :  { %v991_v35 = vadd.f32 %v983_v5, %v982_v34 }
 0x196   :  { %v4594_v49 = vpop.f32.mrf.mxu2  ;;  %v4596_v30 = vpop.f32.mrf.mxu3 }
 0x197   :  { %v832_v51 = vpop.f32.mrf.mxu0  ;;  %v845_v52 = vpop.f32.mrf.mxu1  ;;  %v962_v56 = vmul.f32 %v944_v37, %v4594_v49  ;;  %v963_v62 = vmul.f32 %v945_v48, %v4596_v30  ;;  %v1006_v48 = vld [vmem:[%s5109_s22] sm:$0xff] }
 0x198   :  { %v3839_v52 = vmov 0  }
 0x199   :  { %v984_v54 = vmul.f32 %v962_v56, %v4594_v49  ;;  %v970_v31 = vadd.f32 %v969_v58, %v962_v56  ;;  %v985_v63 = vmul.f32 %v963_v62, %v4596_v30  ;;  %3731 = vset.pattern.permute.xlu1 %v3839_v52  ;;  %3762 = vset.pattern.permute.xlu0 %v3839_v52 }
 0x19a   :  { %3763 = vset.pattern.permute.xlu2 %v3839_v52  ;;  %v3580_v52 = vld [vmem:[#allocation2 + $0x174] sm:$0xf0] }
 0x19b   :  { %v992_v32 = vadd.f32 %v991_v35, %v984_v54  ;;  %v971_v12 = vadd.f32 %v970_v31, %v963_v62 }
 0x19d   :  { %v993_v6 = vadd.f32 %v992_v32, %v985_v63 }
 0x19e   :  { %v858_v46 = vpop.f32.mrf.mxu2  ;;  %v871_v38 = vpop.f32.mrf.mxu3 }
 0x19f   :  { %v4598_v53 = vpop.f32.mrf.mxu0 }
 0x1a0   :  { %v964_v1 = vmul.f32 %v946_v61, %v4598_v53  ;;  %v1019_v61 = vld [vmem:[%s5110_s1] sm:$0xff] }
 0x1a2   :  { %v986_v23 = vmul.f32 %v964_v1, %v4598_v53  ;;  %v972_v44 = vadd.f32 %v971_v12, %v964_v1 }
 0x1a4   :  { %v994_v45 = vadd.f32 %v993_v6, %v986_v23 }
 0x1a7   :  { %v884_v43 = vpop.f32.mrf.mxu0 }
 0x1c7   :  { %v4600_v36 = vpop.f32.mrf.mxu1 }
 0x1c8   :  { %v965_v55 = vmul.f32 %v947_v60, %v4600_v36 }
 0x1ca   :  { %v987_v2 = vmul.f32 %v965_v55, %v4600_v36  ;;  %v973_v3 = vadd.f32 %v972_v44, %v965_v55 }
 0x1cc   :  { %v995_v29 = vadd.f32 %v994_v45, %v987_v2 }
 0x1cf   :  { %v897_v47 = vpop.f32.mrf.mxu1 }
 0x1e2   :  { %v4614_v15 = vpop.f32.mrf.mxu2 }
 0x1e3   :  { %v934_v20 = vpop.f32.mrf.mxu0  ;;  %v966_v9 = vmul.f32 %v948_v41, %v4614_v15 }
 0x1e4   :  { %v968_v33 = vmul.f32 %v3764_v21, %v934_v20 }
 0x1e5   :  { %v988_v11 = vmul.f32 %v966_v9, %v4614_v15  ;;  %v974_v59 = vadd.f32 %v973_v3, %v966_v9 }
 0x1e6   :  { %v990_v19 = vmul.f32 %v968_v33, %v934_v20  ;;  %v977_v16 = vsel %vm5107_vm4, %v968_v33, 0.0  ;;  %vm5119_vm4 = vcmask 1041408  }
 0x1e7   :  { %v996_v7 = vadd.f32 %v995_v29, %v988_v11 }
 0x1e8   :  { %v998_v40 = vsel %vm5108_vm8, %v990_v19, 0.0  ;;  %vm5120_vm8 = vcmask 1043456  }
 0x1ea   :  { %v910_v42 = vpop.f32.mrf.mxu2  ;;  %v4624_v50 = vpop.f32.mrf.mxu3 }
 0x1eb   :  { %v967_v25 = vmul.f32 %v949_v39, %v4624_v50  ;;  %v936_v17 = vpop.f32.mrf.mxu0 }
 0x1ed   :  { %v989_v57 = vmul.f32 %v967_v25, %v4624_v50  ;;  %v975_v18 = vadd.f32 %v974_v59, %v967_v25 }
 0x1ef   :  { %v978_v10 = vadd.f32 %v977_v16, %v975_v18  ;;  %v997_v24 = vadd.f32 %v996_v7, %v989_v57 }
 0x1f1   :  { %979 = vadd.xlane.f32.xlu2 %v978_v10  ;;  %v999_v14 = vadd.f32 %v998_v40, %v997_v24  ;;  %v3026_v10 = vld [vmem:[#allocation2 + $0xf0] sm:$0xf]  ;;  %v3564_v24 = vld [vmem:[#allocation2 + $0xf4] sm:$0xf0] }
 0x1f2   :  { %v923_v51 = vpop.f32.mrf.mxu3  ;;  %v3090_v40 = vld [vmem:[#allocation2 + $0x170] sm:$0xf] }
 0x1f3   :  { %1000 = vadd.xlane.f32.xlu0 %v999_v14  ;;  %v3027_v51 = vor.u32 %v3564_v24, %v3026_v10  ;;  %v3556_v24 = vld [vmem:[#allocation2 + $0xb4] sm:$0xf0] }
 0x1f5   :  { %2012 = vmatpush.bf16.msra.mxu2 %v3027_v51 }
 0x264   :  { %v980_v46 = vpop.xlane.xlu2 %979 }
 0x265   :  { %v981_v38 = vmul.f32 0.0010330578, %v980_v46  ;;  %v3018_v46 = vld [vmem:[#allocation2 + $0xe0] sm:$0xf] }
 0x266   :  { %v1001_v43 = vpop.xlane.xlu0 %1000 }
 0x267   :  { %v1003_v26 = vmul.f32 %v981_v38, %v981_v38  ;;  %v1002_v13 = vmul.f32 0.0010330578, %v1001_v43 }
 0x269   :  { %v1004_v0 = vsub.f32 %v1002_v13, %v1003_v26  ;;  %v3091_v13 = vor.u32 %v3580_v52, %v3090_v40  ;;  %v2938_v40 = vld [vmem:[#allocation2 + $0x40] sm:$0xf]  ;;  %v3058_v52 = vld [vmem:[#allocation2 + $0x130] sm:$0xf] }
 0x26b   :  { %v1005_v47 = vmax.f32 %v1004_v0, 0.0  ;;  %v3082_v0 = vld [vmem:[#allocation2 + $0x160] sm:$0xf]  ;;  %2025 = vmatpush.bf16.msra.mxu3 %v3091_v13 }
 0x26c   :  { %v2986_v13 = vld [vmem:[#allocation2 + $0xa0] sm:$0xf] }
 0x26d   :  { %v1007_v27 = vadd.f32 1e-05, %v1005_v47  ;;  %v3578_v47 = vld [vmem:[#allocation2 + $0x164] sm:$0xf0] }
 0x26f   :  { %3767 = vrsqrt.f32 %v1007_v27  ;;  %vm1014_vm10 = vweird.f32 %v1007_v27 }
 0x275   :  { %v3768_v8 = vpop.eup %3767 }
 0x276   :  { %v1009_v37 = vmul.f32 %v3768_v8, %v1007_v27  ;;  %vm1015_vm11 = vweird.f32 %v3768_v8 }
 0x277   :  { %vm1016_vm1 = vmor %vm1014_vm10, %vm1015_vm11  ;;  %vm2277_vm10 = vcmask 859136  }
 0x278   :  { %v1010_v34 = vmul.f32 %v3768_v8, %v1009_v37  ;;  %vm5121_vm11 = vmmov %vm5120_vm8 }
 0x27a   :  { %v1011_v5 = vmul.f32 0.5, %v1010_v34  ;;  %v3083_v34 = vor.u32 %v3578_v47, %v3082_v0  ;;  %v3138_v0 = vld [vmem:[#allocation2 + $0x1d0] sm:$0xf]  ;;  %v3592_v47 = vld [vmem:[#allocation2 + $0x1d4] sm:$0xf0] }
 0x27c   :  { %v1012_v56 = vsub.f32 1.5, %v1011_v5  ;;  %v3560_v5 = vld [vmem:[#allocation2 + $0xd4] sm:$0xf0]  ;;  %2026 = vmatpush.bf16.msra.mxu3 %v3083_v34 }
 0x27d   :  { %v3540_v34 = vld [vmem:[#allocation2 + $0x34] sm:$0xf0] }
 0x27e   :  { %v1013_v58 = vmul.f32 %v3768_v8, %v1012_v56  ;;  %v2962_v56 = vld [vmem:[#allocation2 + $0x70] sm:$0xf] }
 0x280   :  { %v1017_v35 = vsel %vm1016_vm1, %v3768_v8, %v1013_v58  ;;  %v3010_v8 = vld [vmem:[#allocation2 + $0xd0] sm:$0xf]  ;;  %vm2271_vm1 = vcmask 867328  }
 0x281   :  { %v1018_v54 = vmul.f32 %v1017_v35, %v1006_v48  ;;  %v3548_v48 = vld [vmem:[#allocation2 + $0x74] sm:$0xf0]  ;;  %v3074_v58 = vld [vmem:[#allocation2 + $0x150] sm:$0xf] }
 0x282   :  { %v3576_v35 = vld [vmem:[#allocation2 + $0x154] sm:$0xf0] }
 0x283   :  { %1024 = vperm.xlu1 %3731, %v1018_v54   ;;  %v1020_v62 = vmul.f32 %v1018_v54, %v981_v38  ;;  %v3562_v38 = vld [vmem:[#allocation2 + $0xe4] sm:$0xf0]  ;;  %v2963_v54 = vor.u32 %v3548_v48, %v2962_v56  ;;  %v3139_v48 = vor.u32 %v3592_v47, %v3138_v0  ;;  %v3274_v47 = vld [vmem:[#allocation2 + $0x2e0] sm:$0xf] }
 0x284   :  { %v3019_v27 = vor.u32 %v3562_v38, %v3018_v46  ;;  %v3572_v46 = vld [vmem:[#allocation2 + $0x134] sm:$0xf0] }
 0x285   :  { %v1021_v31 = vsub.f32 %v1019_v61, %v1020_v62  ;;  %v2954_v62 = vld [vmem:[#allocation2 + $0x60] sm:$0xf]  ;;  %v3546_v61 = vld [vmem:[#allocation2 + $0x64] sm:$0xf0]  ;;  %1999 = vmatpush.bf16.msra.mxu1 %v2963_v54  ;;  %v3059_v56 = vor.u32 %v3572_v46, %v3058_v52  ;;  %v3346_v46 = vld [vmem:[#allocation2 + $0x370] sm:$0xf] }
 0x286   :  { %2013 = vmatpush.bf16.msra.mxu2 %v3019_v27  ;;  %v3554_v27 = vld [vmem:[#allocation2 + $0xa4] sm:$0xf0]  ;;  %v3050_v54 = vld [vmem:[#allocation2 + $0x120] sm:$0xf] }
 0x28b   :  { %1038 = vperm.xlu1 %3731, %v1021_v31  }
 0x2f5   :  { %v1025_v32 = vpop.permute.xlu1 %1024 }
 0x2f6   :  { %v1035_v63 = vmul.f32 %v1025_v32, %v934_v20  ;;  %v1031_v1 = vmul.f32 %v1025_v32, %v4598_v53  ;;  %v1032_v60 = vmul.f32 %v1025_v32, %v4600_v36  ;;  %v1028_v12 = vmul.f32 %v1025_v32, %v4592_v4 }
 0x2f7   :  { %v1029_v6 = vmul.f32 %v1025_v32, %v4594_v49  ;;  %v1030_v39 = vmul.f32 %v1025_v32, %v4596_v30  ;;  %v1027_v11 = vmul.f32 %v1025_v32, %v4590_v22  ;;  %v1033_v29 = vmul.f32 %v1025_v32, %v4614_v15 }
 0x2f8   :  { %v1034_v25 = vmul.f32 %v1025_v32, %v4624_v50  ;;  %v3011_v32 = vor.u32 %v3560_v5, %v3010_v8 }
 0x2fa   :  { %2014 = vmatpush.bf16.msra.mxu2 %v3011_v32  ;;  %v3570_v32 = vld [vmem:[#allocation2 + $0x124] sm:$0xf0] }
 0x2fd   :  { %v1039_v41 = vpop.permute.xlu1 %1038 }
 0x2fe   :  { %v4640_v23 = vadd.f32 %v1039_v41, %v1035_v63  ;;  %v4642_v55 = vadd.f32 %v1039_v41, %v1031_v1  ;;  %v4644_v21 = vadd.f32 %v1039_v41, %v1032_v60  ;;  %v1042_v44 = vadd.f32 %v1039_v41, %v1028_v12  ;;  %v3002_v63 = vld [vmem:[#allocation2 + $0xc0] sm:$0xf]  ;;  %v3558_v1 = vld [vmem:[#allocation2 + $0xc4] sm:$0xf0] }
 0x2ff   :  { %v1043_v9 = vadd.f32 %v1039_v41, %v1029_v6  ;;  %v4659_v33 = vadd.f32 %v1039_v41, %v1030_v39  ;;  %v4666_v42 = vadd.f32 %v1039_v41, %v1027_v11  ;;  %v4671_v59 = vadd.f32 %v1039_v41, %v1033_v29  ;;  %v2946_v6 = vld [vmem:[#allocation2 + $0x50] sm:$0xf] }
 0x300   :  { %v1058_v45 = vmax.f32 %v4640_v23, 0.0  ;;  %v1054_v20 = vmax.f32 %v4642_v55, 0.0  ;;  %v1055_v53 = vmax.f32 %v4644_v21, 0.0  ;;  %v1051_v36 = vmax.f32 %v1042_v44, 0.0  ;;  %v3544_v44 = vld [vmem:[#allocation2 + $0x54] sm:$0xf0] }
 0x301   :  { %v1052_v2 = vmax.f32 %v1043_v9, 0.0  ;;  %v1053_v3 = vmax.f32 %v4659_v33, 0.0  ;;  %v1050_v17 = vmax.f32 %v4666_v42, 0.0  ;;  %v4673_v30 = vadd.f32 %v1039_v41, %v1034_v25  ;;  %v3154_v9 = vld [vmem:[#allocation2 + $0x1f0] sm:$0xf] }
 0x302   :  { %1084 = vrot.lane.b32.xlu0 %v1058_v45, %s3835_s0  ;;  %v3737_v4 = vpack.i.bf16 %v1055_v53, %v1054_v20  ;;  %v1056_v19 = vmax.f32 %v4671_v59, 0.0  ;;  %v2955_v60 = vor.u32 %v3546_v61, %v2954_v62  ;;  %v3075_v41 = vor.u32 %v3576_v35, %v3074_v58  ;;  %v2978_v33 = vld [vmem:[#allocation2 + $0x90] sm:$0xf]  ;;  %v3568_v21 = vld [vmem:[#allocation2 + $0x114] sm:$0xf0] }
 0x303   :  { %v3732_v49 = vpack.i.bf16 %v1052_v2, %v1051_v36  ;;  %v1057_v22 = vmax.f32 %v4673_v30, 0.0  ;;  %v3003_v25 = vor.u32 %v3558_v1, %v3002_v63  ;;  %v3130_v1 = vld [vmem:[#allocation2 + $0x1c0] sm:$0xf] }
 0x304   :  { %3738 = vrot.lane.b32.xlu2 %v3737_v4, %s3835_s0  ;;  %v3574_v4 = vld [vmem:[#allocation2 + $0x144] sm:$0xf0]  ;;  %2000 = vmatpush.bf16.msra.mxu1 %v2955_v60 }
 0x305   :  { %3733 = vrot.lane.b32.xlu1 %v3732_v49, %s3835_s0  ;;  %v3742_v15 = vpack.i.bf16 %v1057_v22, %v1056_v19  ;;  %v3596_v49 = vld [vmem:[#allocation2 + $0x1f4] sm:$0xf0]  ;;  %2027 = vmatpush.bf16.msra.mxu3 %v3075_v41  ;;  %v3590_v60 = vld [vmem:[#allocation2 + $0x1c4] sm:$0xf0] }
 0x306   :  { %v3155_v29 = vor.u32 %v3596_v49, %v3154_v9  ;;  %2015 = vmatpush.bf16.msra.mxu2 %v3003_v25  ;;  %v2922_v9 = vld [vmem:[#allocation2 + $0x20] sm:$0xf]  ;;  %v3131_v49 = vor.u32 %v3590_v60, %v3130_v1  ;;  %v2914_v25 = vld [vmem:[#allocation2 + $0x10] sm:$0xf] }
 0x307   :  { %v3266_v1 = vld [vmem:[#allocation2 + $0x2d0] sm:$0xf] }
 0x308   :  { %2038 = vmatpush.bf16.msrb.mxu0 %v3155_v29  ;;  %v3550_v29 = vld [vmem:[#allocation2 + $0x84] sm:$0xf0] }
 0x30d   :  { %1074 = vrot.lane.b32.xlu1 %v1053_v3, %s3835_s0 }
 0x315   :  { %1068 = vrot.lane.b32.xlu1 %v1050_v17, %s3835_s0 }
 0x31d   :  { %3743 = vrot.lane.b32.xlu1 %v3742_v15, %s3835_s0  ;;  %v2994_v15 = vld [vmem:[#allocation2 + $0xb0] sm:$0xf] }
 0x35e   :  { %v4697_v31 = vpop.permute.xlu2 %3738 }
 0x35f   :  { %v3741_v39 = vunpack.i.h.bf16 %v4697_v31  ;;  %v3740_v11 = vunpack.i.l.bf16 %v4697_v31  ;;  %v2987_v31 = vor.u32 %v3554_v27, %v2986_v13 }
 0x361   :  { %v1091_v38 = vsel %vm5114_vm6, %v3740_v11, %v3741_v39 }
 0x362   :  { %v4719_v61 = vmax.f32 %v1054_v20, %v1091_v38  ;;  %v3644_v38 = vld [vmem:[#allocation2 + $0x374] sm:$0xf0] }
 0x374   :  { %v4711_v62 = vpop.permute.xlu0 %1084 }
 0x377   :  { %v3734_v50 = vpop.permute.xlu1 %3733 }
 0x378   :  { %v3736_v16 = vunpack.i.h.bf16 %v3734_v50  ;;  %v3735_v57 = vunpack.i.l.bf16 %v3734_v50  ;;  %v2947_v50 = vor.u32 %v3544_v44, %v2946_v6  ;;  %v3552_v44 = vld [vmem:[#allocation2 + $0x94] sm:$0xf0] }
 0x37a   :  { %v1088_v18 = vsel %vm5111_vm7, %v3735_v57, %v3736_v16  ;;  %2001 = vmatpush.bf16.msra.mxu1 %v2947_v50  ;;  %vm5122_vm7 = vmmov %vm5120_vm8 }
 0x37b   :  { %v4692_v26 = vmax.f32 %v1051_v36, %v1088_v18  ;;  %v3594_v18 = vld [vmem:[#allocation2 + $0x1e4] sm:$0xf0] }
 0x37f   :  { %v4686_v7 = vpop.permute.xlu1 %1074 }
 0x380   :  { %v1089_v14 = vsel %vm5112_vm3, %v3736_v16, %v4686_v7  ;;  %v3146_v16 = vld [vmem:[#allocation2 + $0x1e0] sm:$0xf]  ;;  %v1090_v42 = vsel %vm5115_vm9, %v4686_v7, %v3740_v11  ;;  %vm5123_vm3 = vmmov %vm5122_vm7 }
 0x381   :  { %v4690_v43 = vmax.f32 %v1052_v2, %v1089_v14  ;;  %v3066_v2 = vld [vmem:[#allocation2 + $0x140] sm:$0xf]  ;;  %v3542_v14 = vld [vmem:[#allocation2 + $0x44] sm:$0xf0]  ;;  %v3147_v51 = vor.u32 %v3594_v18, %v3146_v16  ;;  %v4715_v7 = vmax.f32 %v1053_v3, %v1090_v42  ;;  %v3282_v18 = vld [vmem:[#allocation2 + $0x2f0] sm:$0xf] }
 0x382   :  { %v2939_v8 = vor.u32 %v3542_v14, %v2938_v40  ;;  %v3034_v16 = vld [vmem:[#allocation2 + $0x100] sm:$0xf]  ;;  %v3566_v40 = vld [vmem:[#allocation2 + $0x104] sm:$0xf0]  ;;  %vm5124_vm6 = vmmov %vm5123_vm3 }
 0x383   :  { %v3747_v37 = vpack.i.bf16 %v4690_v43, %v4692_v26  ;;  %2039 = vmatpush.bf16.msrb.mxu0 %v3147_v51  ;;  %v3114_v14 = vld [vmem:[#allocation2 + $0x1a0] sm:$0xf]  ;;  %v3586_v51 = vld [vmem:[#allocation2 + $0x1a4] sm:$0xf0]  ;;  %v3035_v27 = vor.u32 %v3566_v40, %v3034_v16  ;;  %v3202_v16 = vld [vmem:[#allocation2 + $0x250] sm:$0xf] }
 0x384   :  { %2002 = vmatpush.bf16.msra.mxu1 %v2939_v8  ;;  %v2906_v42 = vld [vmem:[#allocation2] sm:$0xf]  ;;  %v3626_v8 = vld [vmem:[#allocation2 + $0x2e4] sm:$0xf0]  ;;  %v3660_v40 = vld [vmem:[#allocation2 + $0x3f4] sm:$0xf0] }
 0x385   :  { %3748 = vrot.lane.b32.xlu1 %v3747_v37, %s3836_s4  ;;  %v2930_v37 = vld [vmem:[#allocation2 + $0x30] sm:$0xf]  ;;  %vm5125_vm9 = vmmov %vm5123_vm3 }
 0x386   :  { %v2931_v63 = vor.u32 %v3540_v34, %v2930_v37  ;;  %v3115_v37 = vor.u32 %v3586_v51, %v3114_v14  ;;  %v3218_v34 = vld [vmem:[#allocation2 + $0x270] sm:$0xf]  ;;  %v3242_v14 = vld [vmem:[#allocation2 + $0x2a0] sm:$0xf]  ;;  %v3618_v51 = vld [vmem:[#allocation2 + $0x2a4] sm:$0xf0] }
 0x387   :  { %v1069_v12 = vpop.permute.xlu1 %1068  ;;  %2040 = vmatpush.bf16.msrb.mxu0 %v3139_v48  ;;  %v3347_v48 = vor.u32 %v3644_v38, %v3346_v46  ;;  %v3243_v46 = vor.u32 %v3618_v51, %v3242_v14  ;;  %v3306_v38 = vld [vmem:[#allocation2 + $0x320] sm:$0xf] }
 0x388   :  { %v1087_v36 = vsel %vm5113_vm5, %v1069_v12, %v3735_v57  ;;  %v3067_v57 = vor.u32 %v3574_v4, %v3066_v2  ;;  %v3051_v2 = vor.u32 %v3570_v32, %v3050_v54  ;;  %v3042_v4 = vld [vmem:[#allocation2 + $0x110] sm:$0xf]  ;;  %2003 = vmatpush.bf16.msra.mxu1 %v2931_v63  ;;  %v3338_v54 = vld [vmem:[#allocation2 + $0x360] sm:$0xf]  ;;  %v3275_v63 = vor.u32 %v3626_v8, %v3274_v47  ;;  %v3658_v8 = vld [vmem:[#allocation2 + $0x3e4] sm:$0xf0] }
 0x389   :  { %v4704_v10 = vmax.f32 %v1050_v17, %v1087_v36  ;;  %v2995_v17 = vor.u32 %v3556_v24, %v2994_v15  ;;  %v3538_v36 = vld [vmem:[#allocation2 + $0x24] sm:$0xf0]  ;;  %v3536_v15 = vld [vmem:[#allocation2 + $0x14] sm:$0xf0]  ;;  %v3043_v50 = vor.u32 %v3568_v21, %v3042_v4  ;;  %vm2265_vm5 = vcmask 941056  }
 0x38a   :  { %2028 = vmatpush.bf16.msra.mxu3 %v3067_v57  ;;  %v2923_v11 = vor.u32 %v3538_v36, %v2922_v9  ;;  %v3628_v57 = vld [vmem:[#allocation2 + $0x2f4] sm:$0xf0]  ;;  %v2915_v13 = vor.u32 %v3536_v15, %v2914_v25  ;;  %v3258_v36 = vld [vmem:[#allocation2 + $0x2c0] sm:$0xf]  ;;  %v3582_v25 = vld [vmem:[#allocation2 + $0x184] sm:$0xf0] }
 0x38b   :  { %2016 = vmatpush.bf16.msra.mxu2 %v2995_v17  ;;  %2041 = vmatpush.bf16.msrb.mxu0 %v3131_v49  ;;  %v3283_v0 = vor.u32 %v3628_v57, %v3282_v18  ;;  %v3534_v17 = vld [vmem:[#allocation2 + $0x4] sm:$0xf0]  ;;  %v3322_v49 = vld [vmem:[#allocation2 + $0x340] sm:$0xf]  ;;  %v3608_v18 = vld [vmem:[#allocation2 + $0x254] sm:$0xf0] }
 0x38c   :  { %2004 = vmatpush.bf16.msra.mxu1 %v2923_v11  ;;  %v2907_v32 = vor.u32 %v3534_v17, %v2906_v42  ;;  %v3636_v11 = vld [vmem:[#allocation2 + $0x334] sm:$0xf0]  ;;  %v3410_v57 = vld [vmem:[#allocation2 + $0x3f0] sm:$0xf]  ;;  %v3606_v42 = vld [vmem:[#allocation2 + $0x244] sm:$0xf0] }
 0x38d   :  { %1122 = vrot.lane.b32.xlu1 %v4704_v10, %s3836_s4 }
 0x38e   :  { %2029 = vmatpush.bf16.msra.mxu3 %v3059_v56  ;;  %v4748_v56 = vmax.f32 %v1058_v45, %v4711_v62  ;;  %v3210_v45 = vld [vmem:[#allocation2 + $0x260] sm:$0xf] }
 0x38f   :  { %v3744_v5 = vpop.permute.xlu1 %3743  ;;  %2017 = vmatpush.bf16.msra.mxu2 %v2987_v31  ;;  %v3642_v31 = vld [vmem:[#allocation2 + $0x364] sm:$0xf0] }
 0x390   :  { %v3746_v58 = vunpack.i.h.bf16 %v3744_v5  ;;  %v3745_v35 = vunpack.i.l.bf16 %v3744_v5  ;;  %v3612_v5 = vld [vmem:[#allocation2 + $0x274] sm:$0xf0]  ;;  %2005 = vmatpush.bf16.msra.mxu1 %v2915_v13  ;;  %v3634_v13 = vld [vmem:[#allocation2 + $0x324] sm:$0xf0] }
 0x391   :  { %v3219_v60 = vor.u32 %v3612_v5, %v3218_v34  ;;  %v3307_v47 = vor.u32 %v3634_v13, %v3306_v38  ;;  %v3234_v34 = vld [vmem:[#allocation2 + $0x290] sm:$0xf]  ;;  %v3616_v5 = vld [vmem:[#allocation2 + $0x294] sm:$0xf0] }
 0x392   :  { %v1092_v12 = vsel %vm5116_vm12, %v3741_v39, %v3745_v35  ;;  %v1093_v41 = vsel %vm5117_vm13, %v3745_v35, %v3746_v58  ;;  %v1094_v6 = vsel %vm5118_vm15, %v3746_v58, %v4711_v62  ;;  %v2970_v39 = vld [vmem:[#allocation2 + $0x80] sm:$0xf]  ;;  %2030 = vmatpush.bf16.msra.mxu3 %v3051_v2  ;;  %v3106_v58 = vld [vmem:[#allocation2 + $0x190] sm:$0xf]  ;;  %v3584_v35 = vld [vmem:[#allocation2 + $0x194] sm:$0xf0] }
 0x393   :  { %v4727_v55 = vmax.f32 %v1057_v22, %v1094_v6  ;;  %v4731_v20 = vmax.f32 %v1056_v19, %v1093_v41  ;;  %v4735_v3 = vmax.f32 %v1055_v53, %v1092_v12  ;;  %v3122_v53 = vld [vmem:[#allocation2 + $0x1b0] sm:$0xf]  ;;  %v3588_v19 = vld [vmem:[#allocation2 + $0x1b4] sm:$0xf0]  ;;  %v2979_v22 = vor.u32 %v3552_v44, %v2978_v33  ;;  %v3610_v62 = vld [vmem:[#allocation2 + $0x264] sm:$0xf0] }
 0x394   :  { %v3123_v24 = vor.u32 %v3588_v19, %v3122_v53  ;;  %v2971_v52 = vor.u32 %v3550_v29, %v2970_v39  ;;  %v3624_v12 = vld [vmem:[#allocation2 + $0x2d4] sm:$0xf0]  ;;  %v3107_v23 = vor.u32 %v3584_v35, %v3106_v58  ;;  %v3339_v41 = vor.u32 %v3642_v31, %v3338_v54  ;;  %2006 = vmatpush.bf16.msra.mxu1 %v2907_v32  ;;  %v3330_v6 = vld [vmem:[#allocation2 + $0x350] sm:$0xf]  ;;  %v3622_v2 = vld [vmem:[#allocation2 + $0x2c4] sm:$0xf0] }
 0x395   :  { %1136 = vrot.lane.b32.xlu1 %v4727_v55, %s3836_s4  ;;  %v3757_v59 = vpack.i.bf16 %v4719_v61, %v4731_v20  ;;  %v3752_v30 = vpack.i.bf16 %v4735_v3, %v4715_v7  ;;  %2018 = vmatpush.bf16.msra.mxu2 %v2979_v22  ;;  %v3640_v33 = vld [vmem:[#allocation2 + $0x354] sm:$0xf0]  ;;  %v3267_v44 = vor.u32 %v3624_v12, %v3266_v1  ;;  %v3250_v53 = vld [vmem:[#allocation2 + $0x2b0] sm:$0xf]  ;;  %v3098_v29 = vld [vmem:[#allocation2 + $0x180] sm:$0xf] }
 0x396   :  { %2031 = vmatpush.bf16.msra.mxu3 %v3043_v50  ;;  %2042 = vmatpush.bf16.msrb.mxu0 %v3123_v24  ;;  %v3211_v9 = vor.u32 %v3610_v62, %v3210_v45  ;;  %v3331_v4 = vor.u32 %v3640_v33, %v3330_v6  ;;  %v3620_v19 = vld [vmem:[#allocation2 + $0x2b4] sm:$0xf0]  ;;  %v3314_v22 = vld [vmem:[#allocation2 + $0x330] sm:$0xf]  ;;  %v3099_v50 = vor.u32 %v3582_v25, %v3098_v29  ;;  %v3614_v45 = vld [vmem:[#allocation2 + $0x284] sm:$0xf0] }
 0x397   :  { %3758 = vrot.lane.b32.xlu0 %v3757_v59, %s3836_s4  ;;  %3753 = vrot.lane.b32.xlu2 %v3752_v30, %s3836_s4  ;;  %v3638_v59 = vld [vmem:[#allocation2 + $0x344] sm:$0xf0]  ;;  %v3259_v30 = vor.u32 %v3622_v2, %v3258_v36  ;;  %v3251_v39 = vor.u32 %v3620_v19, %v3250_v53  ;;  %v3315_v15 = vor.u32 %v3636_v11, %v3314_v22  ;;  %v3632_v35 = vld [vmem:[#allocation2 + $0x314] sm:$0xf0]  ;;  %v3186_v54 = vld [vmem:[#allocation2 + $0x230] sm:$0xf] }
 0x398   :  { %2051 = vmatpush.bf16.msrb.mxu1 %v3219_v60  ;;  %v3323_v21 = vor.u32 %v3638_v59, %v3322_v49  ;;  %v3203_v24 = vor.u32 %v3608_v18, %v3202_v16  ;;  %v3235_v58 = vor.u32 %v3616_v5, %v3234_v34  ;;  %v3604_v31 = vld [vmem:[#allocation2 + $0x234] sm:$0xf0]  ;;  %v3394_v1 = vld [vmem:[#allocation2 + $0x3d0] sm:$0xf]  ;;  %v3290_v62 = vld [vmem:[#allocation2 + $0x300] sm:$0xf] }
 0x399   :  { %2019 = vmatpush.bf16.msra.mxu2 %v2971_v52  ;;  %v3411_v52 = vor.u32 %v3660_v40, %v3410_v57  ;;  %v3656_v60 = vld [vmem:[#allocation2 + $0x3d4] sm:$0xf0]  ;;  %v3630_v6 = vld [vmem:[#allocation2 + $0x304] sm:$0xf0]  ;;  %v3178_v33 = vld [vmem:[#allocation2 + $0x220] sm:$0xf] }
 0x39a   :  { %2032 = vmatpush.bf16.msra.mxu3 %v3035_v27  ;;  %2043 = vmatpush.bf16.msrb.mxu0 %v3115_v37  ;;  %v3402_v27 = vld [vmem:[#allocation2 + $0x3e0] sm:$0xf]  ;;  %v3395_v12 = vor.u32 %v3656_v60, %v3394_v1  ;;  %v3170_v59 = vld [vmem:[#allocation2 + $0x210] sm:$0xf]  ;;  %v3652_v19 = vld [vmem:[#allocation2 + $0x3b4] sm:$0xf0] }
 0x39b   :  { %v3403_v37 = vor.u32 %v3658_v8, %v3402_v27  ;;  %v3386_v2 = vld [vmem:[#allocation2 + $0x3c0] sm:$0xf]  ;;  %v3378_v53 = vld [vmem:[#allocation2 + $0x3b0] sm:$0xf]  ;;  %v3598_v11 = vld [vmem:[#allocation2 + $0x204] sm:$0xf0] }
 0x39c   :  { %2052 = vmatpush.bf16.msrb.mxu1 %v3211_v9  ;;  %v3291_v9 = vor.u32 %v3630_v6, %v3290_v62  ;;  %v3379_v22 = vor.u32 %v3652_v19, %v3378_v53  ;;  %v3370_v25 = vld [vmem:[#allocation2 + $0x3a0] sm:$0xf]  ;;  %v3362_v16 = vld [vmem:[#allocation2 + $0x390] sm:$0xf]  ;;  %v3648_v18 = vld [vmem:[#allocation2 + $0x394] sm:$0xf0] }
 0x39d   :  { %2064 = vmatpush.bf16.msrb.mxu2 %v3283_v0  ;;  %v3194_v0 = vld [vmem:[#allocation2 + $0x240] sm:$0xf]  ;;  %v3363_v57 = vor.u32 %v3648_v18, %v3362_v16  ;;  %v3646_v40 = vld [vmem:[#allocation2 + $0x384] sm:$0xf0]  ;;  %v3028_v27 = vld [vmem:[#allocation2 + $0xf8] sm:$0xf0] }
 0x39e   :  { %2077 = vmatpush.bf16.msrb.mxu3 %v3347_v48  ;;  %2044 = vmatpush.bf16.msrb.mxu0 %v3107_v23  ;;  %v3195_v17 = vor.u32 %v3606_v42, %v3194_v0  ;;  %v3298_v48 = vld [vmem:[#allocation2 + $0x310] sm:$0xf]  ;;  %v3226_v23 = vld [vmem:[#allocation2 + $0x280] sm:$0xf]  ;;  %v2964_v42 = vld [vmem:[#allocation2 + $0x78] sm:$0xf0] }
 0x39f   :  { %1138 = vrot.lane.b32.xlu2 %v4748_v56, %s3836_s4  ;;  %v3299_v32 = vor.u32 %v3632_v35, %v3298_v48  ;;  %v2956_v1 = vld [vmem:[#allocation2 + $0x68] sm:$0xf0]  ;;  %v3561_v60 = vld [vmem:[#allocation2 + $0xe4] sm:$0xf]  ;;  %vm2253_vm12 = vcmask 957440   ;;  %vm5126_vm13 = vmmov %vm5123_vm3 }
 0x3a0   :  { %2053 = vmatpush.bf16.msrb.mxu1 %v3203_v24  ;;  %v3354_v24 = vld [vmem:[#allocation2 + $0x380] sm:$0xf]  ;;  %v2940_v53 = vld [vmem:[#allocation2 + $0x48] sm:$0xf0]  ;;  %v3557_v19 = vld [vmem:[#allocation2 + $0xc4] sm:$0xf] }
 0x3a1   :  { %2065 = vmatpush.bf16.msrb.mxu2 %v3275_v63  ;;  %v3187_v63 = vor.u32 %v3604_v31, %v3186_v54  ;;  %v3355_v14 = vor.u32 %v3646_v40, %v3354_v24  ;;  %v3545_v54 = vld [vmem:[#allocation2 + $0x64] sm:$0xf]  ;;  %v1991_v31 = vsel %vm5119_vm4, 4294967295, %v3838_v28  ;;  %v3555_v40 = vld [vmem:[#allocation2 + $0xb4] sm:$0xf]  ;;  %vm5127_vm15 = vmmov %vm5123_vm3  ;;  %vm5128_vm4 = vcmask 1039360  }
 0x3a2   :  { %2078 = vmatpush.bf16.msrb.mxu3 %v3339_v41  ;;  %2045 = vmatpush.bf16.msrb.mxu0 %v3099_v50  ;;  %v3227_v41 = vor.u32 %v3614_v45, %v3226_v23  ;;  %v2959_v28 = vor.u32 %v3545_v54, %v2956_v1  ;;  %v3553_v1 = vld [vmem:[#allocation2 + $0xa4] sm:$0xf] }
 0x3a4   :  { %2054 = vmatpush.bf16.msrb.mxu1 %v3195_v17  ;;  %v3563_v17 = vld [vmem:[#allocation2 + $0xf4] sm:$0xf] }
 0x3a5   :  { %2066 = vmatpush.bf16.msrb.mxu2 %v3267_v44  ;;  %v3602_v44 = vld [vmem:[#allocation2 + $0x224] sm:$0xf0]  ;;  %v3031_v35 = vor.u32 %v3563_v17, %v3028_v27  ;;  %v3418_v17 = vld [vmem:[#allocation2 + $0x400] sm:$0xf] }
 0x3a6   :  { %2079 = vmatpush.bf16.msrb.mxu3 %v3331_v4  ;;  %2090 = vmatpush.bf16.msra.mxu0 %v3411_v52  ;;  %v3179_v36 = vor.u32 %v3602_v44, %v3178_v33  ;;  %v3654_v4 = vld [vmem:[#allocation2 + $0x3c4] sm:$0xf0]  ;;  %v2948_v33 = vld [vmem:[#allocation2 + $0x58] sm:$0xf0]  ;;  %v3559_v44 = vld [vmem:[#allocation2 + $0xd4] sm:$0xf] }
 0x3a7   :  { %v3387_v49 = vor.u32 %v3654_v4, %v3386_v2  ;;  %v3434_v4 = vld [vmem:[#allocation2 + $0x420] sm:$0xf]  ;;  %v3662_v27 = vld [vmem:[#allocation2 + $0x404] sm:$0xf0] }
 0x3a8   :  { %2055 = vmatpush.bf16.msrb.mxu1 %v3187_v63 }
 0x3a9   :  { %2067 = vmatpush.bf16.msrb.mxu2 %v3259_v30  ;;  %v3600_v30 = vld [vmem:[#allocation2 + $0x214] sm:$0xf0] }
 0x3aa   :  { %2080 = vmatpush.bf16.msrb.mxu3 %v3323_v21  ;;  %2091 = vmatpush.bf16.msra.mxu0 %v3403_v37  ;;  %v3171_v21 = vor.u32 %v3600_v30, %v3170_v59 }
 0x3ac   :  { %2056 = vmatpush.bf16.msrb.mxu1 %v3179_v36 }
 0x3ad   :  { %2068 = vmatpush.bf16.msrb.mxu2 %v3251_v39  ;;  %v3162_v39 = vld [vmem:[#allocation2 + $0x200] sm:$0xf] }
 0x3ae   :  { %2081 = vmatpush.bf16.msrb.mxu3 %v3315_v15  ;;  %2092 = vmatpush.bf16.msra.mxu0 %v3395_v12  ;;  %v3163_v29 = vor.u32 %v3598_v11, %v3162_v39  ;;  %v3650_v15 = vld [vmem:[#allocation2 + $0x3a4] sm:$0xf0]  ;;  %v3020_v12 = vld [vmem:[#allocation2 + $0xe8] sm:$0xf0]  ;;  %v3426_v39 = vld [vmem:[#allocation2 + $0x410] sm:$0xf] }
 0x3af   :  { %v3371_v50 = vor.u32 %v3650_v15, %v3370_v25  ;;  %v3023_v62 = vor.u32 %v3561_v60, %v3020_v12  ;;  %v3664_v11 = vld [vmem:[#allocation2 + $0x414] sm:$0xf0]  ;;  %v3539_v25 = vld [vmem:[#allocation2 + $0x34] sm:$0xf]  ;;  %v2932_v15 = vld [vmem:[#allocation2 + $0x38] sm:$0xf0]  ;;  %v3419_v12 = vor.u32 %v3662_v27, %v3418_v17 }
 0x3b0   :  { %2057 = vmatpush.bf16.msrb.mxu1 %v3171_v21  ;;  %v3541_v21 = vld [vmem:[#allocation2 + $0x44] sm:$0xf]  ;;  %v2988_v60 = vld [vmem:[#allocation2 + $0xa8] sm:$0xf0] }
 0x3b1   :  { %2069 = vmatpush.bf16.msrb.mxu2 %v3243_v46  ;;  %v4754_v46 = vld [vmem:[#allocation2 + $0x430] sm:$0x77] }
 0x3b2   :  { %2082 = vmatpush.bf16.msrb.mxu3 %v3307_v47  ;;  %2093 = vmatpush.bf16.msra.mxu0 %v3387_v49  ;;  %v3547_v47 = vld [vmem:[#allocation2 + $0x74] sm:$0xf]  ;;  %v1714_v34 = vunpack.c.l.b16 %v4754_v46  ;;  %v3666_v49 = vld [vmem:[#allocation2 + $0x424] sm:$0xf0] }
 0x3b4   :  { %2058 = vmatpush.bf16.msrb.mxu1 %v3163_v29  ;;  %v1850_v23 = vpack.c.b16 %v1714_v34, %v1714_v34  ;;  %v2943_v29 = vor.u32 %v3541_v21, %v2940_v53  ;;  %v3575_v53 = vld [vmem:[#allocation2 + $0x154] sm:$0xf] }
 0x3b5   :  { %2070 = vmatpush.bf16.msrb.mxu2 %v3235_v58  ;;  %v2967_v58 = vor.u32 %v3547_v47, %v2964_v42  ;;  %v2935_v47 = vor.u32 %v3539_v25, %v2932_v15  ;;  %v3092_v42 = vld [vmem:[#allocation2 + $0x178] sm:$0xf0]  ;;  %v3611_v15 = vld [vmem:[#allocation2 + $0x274] sm:$0xf] }
 0x3b6   :  { %2083 = vmatpush.bf16.msrb.mxu3 %v3299_v32  ;;  %2094 = vmatpush.bf16.msra.mxu0 %v3379_v22  ;;  %v3435_v22 = vor.u32 %v3666_v49, %v3434_v4 }
 0x3b9   :  { %2071 = vmatpush.bf16.msrb.mxu2 %v3227_v41  ;;  %v3543_v41 = vld [vmem:[#allocation2 + $0x54] sm:$0xf] }
 0x3ba   :  { %2084 = vmatpush.bf16.msrb.mxu3 %v3291_v9  ;;  %2095 = vmatpush.bf16.msra.mxu0 %v3371_v50  ;;  %v3012_v9 = vld [vmem:[#allocation2 + $0xd8] sm:$0xf0]  ;;  %v2951_v59 = vor.u32 %v3543_v41, %v2948_v33  ;;  %v3084_v41 = vld [vmem:[#allocation2 + $0x168] sm:$0xf0]  ;;  %v3535_v33 = vld [vmem:[#allocation2 + $0x14] sm:$0xf] }
 0x3bb   :  { %v3015_v30 = vor.u32 %v3559_v44, %v3012_v9  ;;  %v2916_v44 = vld [vmem:[#allocation2 + $0x18] sm:$0xf0]  ;;  %v3551_v9 = vld [vmem:[#allocation2 + $0x94] sm:$0xf] }
 0x3bc   :  { %v2919_v21 = vor.u32 %v3535_v33, %v2916_v44  ;;  %v3052_v33 = vld [vmem:[#allocation2 + $0x128] sm:$0xf0] }
 0x3be   :  { %2096 = vmatpush.bf16.msra.mxu0 %v3363_v57 }
 0x3c2   :  { %2097 = vmatpush.bf16.msra.mxu0 %v3355_v14  ;;  %v2996_v14 = vld [vmem:[#allocation2 + $0xb8] sm:$0xf0] }
 0x3c3   :  { %v2999_v54 = vor.u32 %v3555_v40, %v2996_v14  ;;  %v3591_v40 = vld [vmem:[#allocation2 + $0x1d4] sm:$0xf]  ;;  %v3140_v14 = vld [vmem:[#allocation2 + $0x1d8] sm:$0xf0] }
 0x3f1   :  { %v4752_v51 = vpop.permute.xlu2 %3753 }
 0x3f2   :  { %v3755_v38 = vunpack.i.l.bf16 %v4752_v51  ;;  %v3756_v18 = vunpack.i.h.bf16 %v4752_v51  ;;  %v2924_v51 = vld [vmem:[#allocation2 + $0x28] sm:$0xf0] }
 0x3f7   :  { %v3749_v52 = vpop.permute.xlu1 %3748 }
 0x3f8   :  { %v3751_v13 = vunpack.i.h.bf16 %v3749_v52  ;;  %v3750_v0 = vunpack.i.l.bf16 %v3749_v52  ;;  %v3427_v52 = vor.u32 %v3664_v11, %v3426_v39  ;;  %v2908_v39 = vld [vmem:[#allocation2 + $0x8] sm:$0xf0]  ;;  %v3549_v11 = vld [vmem:[#allocation2 + $0x84] sm:$0xf] }
 0x3fa   :  { %v1142_v8 = vsel %vm348_vm2, %v3750_v0, %v3751_v13  ;;  %v1143_v37 = vsel %vm348_vm2, %v3751_v13, %v3755_v38  ;;  %v3579_v13 = vld [vmem:[#allocation2 + $0x174] sm:$0xf] }
 0x3fb   :  { %v1159_v5 = vmax.f32 %v4692_v26, %v1142_v8  ;;  %v1160_v48 = vmax.f32 %v4690_v43, %v1143_v37  ;;  %v4773_v43 = vsel %vm620_vm0, %v1991_v31, 0  ;;  %v3537_v31 = vld [vmem:[#allocation2 + $0x24] sm:$0xf]  ;;  %vm1986_vm0 = vcmask 433152  }
 0x3fc   :  { %v1994_v36 = vand.u32 %v4773_v43, %v1850_v23 }
 0x3fd   :  { %v4766_v32 = vpack.c.bf16 %v1159_v5, %v1159_v5  ;;  %v4768_v63 = vpack.c.bf16 %v1160_v48, %v1160_v48 }
 0x3ff   :  { %v1123_v45 = vpop.permute.xlu1 %1122  ;;  %2020 = vmatmul.bf16.vlgmr.msra.gmra.mxu2 %v4766_v32  ;;  %2033 = vmatmul.bf16.vlgmr.msra.gmra.mxu3 %v4768_v63 }
 0x400   :  { %v1141_v26 = vsel %vm348_vm2, %v1123_v45, %v3750_v0  ;;  %2116 = vmatpush.bf16.msra.mxu2 %v2967_v58  ;;  %2129 = vmatpush.bf16.msra.mxu3 %v3031_v35 }
 0x401   :  { %v1158_v6 = vmax.f32 %v4704_v10, %v1141_v26  ;;  %v3004_v10 = vld [vmem:[#allocation2 + $0xc8] sm:$0xf0] }
 0x402   :  { %v3007_v16 = vor.u32 %v3557_v19, %v3004_v10  ;;  %v3076_v19 = vld [vmem:[#allocation2 + $0x158] sm:$0xf0]  ;;  %v3533_v10 = vld [vmem:[#allocation2 + $0x4] sm:$0xf] }
 0x403   :  { %v4778_v2 = vpack.c.bf16 %v1158_v6, %v1158_v6  ;;  %v2991_v6 = vor.u32 %v3553_v1, %v2988_v60  ;;  %v3132_v1 = vld [vmem:[#allocation2 + $0x1c8] sm:$0xf0] }
 0x404   :  { %2117 = vmatpush.bf16.msra.mxu2 %v2959_v28  ;;  %2130 = vmatpush.bf16.msra.mxu3 %v3023_v62  ;;  %v3156_v28 = vld [vmem:[#allocation2 + $0x1f8] sm:$0xf0]  ;;  %v3577_v62 = vld [vmem:[#allocation2 + $0x164] sm:$0xf] }
 0x405   :  { %2007 = vmatmul.bf16.vlgmr.msra.gmra.mxu1 %v4778_v2  ;;  %v3087_v49 = vor.u32 %v3577_v62, %v3084_v41  ;;  %v3268_v62 = vld [vmem:[#allocation2 + $0x2d8] sm:$0xf0] }
 0x406   :  { %2107 = vmatpush.bf16.msra.mxu1 %v1994_v36  ;;  %v2980_v36 = vld [vmem:[#allocation2 + $0x98] sm:$0xf0] }
 0x407   :  { %v4782_v0 = vpop.permute.xlu1 %1136 }
 0x408   :  { %2118 = vmatpush.bf16.msra.mxu2 %v2951_v59  ;;  %2131 = vmatpush.bf16.msra.mxu3 %v3015_v30  ;;  %v3593_v59 = vld [vmem:[#allocation2 + $0x1e4] sm:$0xf]  ;;  %v3148_v30 = vld [vmem:[#allocation2 + $0x1e8] sm:$0xf0] }
 0x409   :  { %v3759_v50 = vpop.permute.xlu0 %3758  ;;  %v3151_v25 = vor.u32 %v3593_v59, %v3148_v30 }
 0x40a   :  { %v3761_v57 = vunpack.i.h.bf16 %v3759_v50  ;;  %v3760_v24 = vunpack.i.l.bf16 %v3759_v50  ;;  %2108 = vmatpush.bf16.msra.mxu1 %v3435_v22  ;;  %v2983_v22 = vor.u32 %v3551_v9, %v2980_v36  ;;  %v3220_v50 = vld [vmem:[#allocation2 + $0x278] sm:$0xf0] }
 0x40b   :  { %v3223_v27 = vor.u32 %v3611_v15, %v3220_v50  ;;  %v3124_v9 = vld [vmem:[#allocation2 + $0x1b8] sm:$0xf0]  ;;  %v3619_v50 = vld [vmem:[#allocation2 + $0x2b4] sm:$0xf] }
 0x40c   :  { %v1144_v8 = vsel %vm348_vm2, %v3755_v38, %v3761_v57  ;;  %v1145_v37 = vsel %vm348_vm2, %v3761_v57, %v3756_v18  ;;  %v1146_v34 = vsel %vm348_vm2, %v3756_v18, %v3760_v24  ;;  %v1147_v5 = vsel %vm348_vm2, %v3760_v24, %v4782_v0  ;;  %2119 = vmatpush.bf16.msra.mxu2 %v2943_v29  ;;  %v2972_v29 = vld [vmem:[#allocation2 + $0x88] sm:$0xf0]  ;;  %v1139_v18 = vpop.permute.xlu2 %1138  ;;  %v3284_v24 = vld [vmem:[#allocation2 + $0x2f8] sm:$0xf0] }
 0x40d   :  { %v1161_v48 = vmax.f32 %v4715_v7, %v1144_v8  ;;  %v1163_v58 = vmax.f32 %v4735_v3, %v1146_v34  ;;  %v1164_v35 = vmax.f32 %v4731_v20, %v1147_v5  ;;  %2132 = vmatpush.bf16.msra.mxu3 %v3007_v16  ;;  %v3095_v38 = vor.u32 %v3579_v13, %v3092_v42  ;;  %v3595_v3 = vld [vmem:[#allocation2 + $0x1f4] sm:$0xf]  ;;  %v3068_v42 = vld [vmem:[#allocation2 + $0x148] sm:$0xf0]  ;;  %v3609_v34 = vld [vmem:[#allocation2 + $0x264] sm:$0xf] }
 0x40e   :  { %2109 = vmatpush.bf16.msra.mxu1 %v3427_v52  ;;  %v1162_v23 = vmax.f32 %v4719_v61, %v1145_v37  ;;  %v2927_v20 = vor.u32 %v3537_v31, %v2924_v51  ;;  %v3159_v61 = vor.u32 %v3595_v3, %v3156_v28  ;;  %v3627_v16 = vld [vmem:[#allocation2 + $0x2f4] sm:$0xf]  ;;  %v3079_v57 = vor.u32 %v3575_v53, %v3076_v19  ;;  %v3212_v5 = vld [vmem:[#allocation2 + $0x268] sm:$0xf0]  ;;  %v3060_v31 = vld [vmem:[#allocation2 + $0x138] sm:$0xf0] }
 0x40f   :  { %v4795_v45 = vpack.c.bf16 %v1161_v48, %v1161_v48  ;;  %v4797_v26 = vpack.c.bf16 %v1163_v58, %v1163_v58  ;;  %v4799_v7 = vpack.c.bf16 %v1164_v35, %v1164_v35  ;;  %v1148_v52 = vsel %vm348_vm2, %v4782_v0, %v1139_v18  ;;  %v3625_v35 = vld [vmem:[#allocation2 + $0x2e4] sm:$0xf]  ;;  %v3571_v0 = vld [vmem:[#allocation2 + $0x134] sm:$0xf]  ;;  %v3260_v53 = vld [vmem:[#allocation2 + $0x2c8] sm:$0xf0] }
 0x410   :  { %2120 = vmatpush.bf16.msra.mxu2 %v2935_v47  ;;  %v4804_v4 = vpack.c.bf16 %v1162_v23, %v1162_v23  ;;  %v2911_v13 = vor.u32 %v3533_v10, %v2908_v39  ;;  %v3573_v47 = vld [vmem:[#allocation2 + $0x144] sm:$0xf]  ;;  %v2975_v17 = vor.u32 %v3549_v11, %v2972_v29  ;;  %v3287_v8 = vor.u32 %v3627_v16, %v3284_v24  ;;  %v3204_v23 = vld [vmem:[#allocation2 + $0x258] sm:$0xf0]  ;;  %v3567_v10 = vld [vmem:[#allocation2 + $0x114] sm:$0xf] }
 0x411   :  { %2133 = vmatpush.bf16.msra.mxu3 %v2999_v54  ;;  %2046 = vmatmul.bf16.vlgmr.msrb.gmra.mxu0 %v4795_v45  ;;  %v3143_v37 = vor.u32 %v3591_v40, %v3140_v14  ;;  %v1165_v48 = vmax.f32 %v4727_v55, %v1148_v52  ;;  %v3071_v58 = vor.u32 %v3573_v47, %v3068_v42  ;;  %v3276_v54 = vld [vmem:[#allocation2 + $0x2e8] sm:$0xf0]  ;;  %v3585_v39 = vld [vmem:[#allocation2 + $0x1a4] sm:$0xf]  ;;  %v3188_v15 = vld [vmem:[#allocation2 + $0x238] sm:$0xf0] }
 0x412   :  { %2072 = vmatmul.bf16.vlgmr.msrb.gmra.mxu2 %v4797_v26  ;;  %2085 = vmatmul.bf16.vlgmr.msrb.gmra.mxu3 %v4799_v7  ;;  %v3215_v51 = vor.u32 %v3609_v34, %v3212_v5  ;;  %v3279_v60 = vor.u32 %v3625_v35, %v3276_v54  ;;  %v1166_v3 = vmax.f32 %v4748_v56, %v1139_v18  ;;  %v3605_v56 = vld [vmem:[#allocation2 + $0x244] sm:$0xf]  ;;  %v3116_v11 = vld [vmem:[#allocation2 + $0x1a8] sm:$0xf0]  ;;  %v3252_v16 = vld [vmem:[#allocation2 + $0x2b8] sm:$0xf0] }
 0x413   :  { %2142 = vmatpush.bf16.msrb.mxu0 %v3095_v38  ;;  %2110 = vmatpush.bf16.msra.mxu1 %v3419_v12  ;;  %v3589_v38 = vld [vmem:[#allocation2 + $0x1c4] sm:$0xf]  ;;  %v3607_v12 = vld [vmem:[#allocation2 + $0x254] sm:$0xf]  ;;  %v4811_v55 = vpack.c.bf16 %v1165_v48, %v1165_v48  ;;  %v3063_v28 = vor.u32 %v3571_v0, %v3060_v31  ;;  %v3119_v18 = vor.u32 %v3585_v39, %v3116_v11  ;;  %v3036_v24 = vld [vmem:[#allocation2 + $0x108] sm:$0xf0] }
 0x414   :  { %2121 = vmatpush.bf16.msra.mxu2 %v2927_v20  ;;  %v3623_v20 = vld [vmem:[#allocation2 + $0x2d4] sm:$0xf]  ;;  %v3135_v41 = vor.u32 %v3589_v38, %v3132_v1  ;;  %v3207_v44 = vor.u32 %v3607_v12, %v3204_v23  ;;  %v4815_v59 = vpack.c.bf16 %v1166_v3, %v1166_v3  ;;  %v3108_v52 = vld [vmem:[#allocation2 + $0x198] sm:$0xf0]  ;;  %v3255_v42 = vor.u32 %v3619_v50, %v3252_v16  ;;  %v3244_v34 = vld [vmem:[#allocation2 + $0x2a8] sm:$0xf0] }
 0x415   :  { %2134 = vmatpush.bf16.msra.mxu3 %v2991_v6  ;;  %2059 = vmatmul.bf16.vlgmr.msrb.gmra.mxu1 %v4804_v4  ;;  %v3569_v6 = vld [vmem:[#allocation2 + $0x124] sm:$0xf]  ;;  %v3271_v36 = vor.u32 %v3623_v20, %v3268_v62  ;;  %v3583_v40 = vld [vmem:[#allocation2 + $0x194] sm:$0xf]  ;;  %v3348_v47 = vld [vmem:[#allocation2 + $0x378] sm:$0xf0]  ;;  %v1715_v23 = vunpack.c.h.b16 %v4754_v46 }
 0x416   :  { %v3055_v30 = vor.u32 %v3569_v6, %v3052_v33  ;;  %v3111_v5 = vor.u32 %v3583_v40, %v3108_v52  ;;  %v3100_v35 = vld [vmem:[#allocation2 + $0x188] sm:$0xf0]  ;;  %v3641_v0 = vld [vmem:[#allocation2 + $0x364] sm:$0xf]  ;;  %v3412_v1 = vld [vmem:[#allocation2 + $0x3f8] sm:$0xf0] }
 0x417   :  { %2155 = vmatpush.bf16.msrb.mxu1 %v3159_v61  ;;  %2143 = vmatpush.bf16.msrb.mxu0 %v3087_v49  ;;  %v3587_v61 = vld [vmem:[#allocation2 + $0x1b4] sm:$0xf]  ;;  %v3196_v49 = vld [vmem:[#allocation2 + $0x248] sm:$0xf0]  ;;  %v3172_v12 = vld [vmem:[#allocation2 + $0x218] sm:$0xf0] }
 0x418   :  { %2122 = vmatpush.bf16.msra.mxu2 %v2919_v21  ;;  %v3621_v21 = vld [vmem:[#allocation2 + $0x2c4] sm:$0xf]  ;;  %v3127_v19 = vor.u32 %v3587_v61, %v3124_v9  ;;  %v3340_v31 = vld [vmem:[#allocation2 + $0x368] sm:$0xf0]  ;;  %v3615_v3 = vld [vmem:[#allocation2 + $0x294] sm:$0xf] }
 0x419   :  { %2135 = vmatpush.bf16.msra.mxu3 %v2983_v22  ;;  %v3044_v22 = vld [vmem:[#allocation2 + $0x118] sm:$0xf0]  ;;  %v3263_v29 = vor.u32 %v3621_v21, %v3260_v53  ;;  %v3343_v62 = vor.u32 %v3641_v0, %v3340_v31  ;;  %v3639_v33 = vld [vmem:[#allocation2 + $0x354] sm:$0xf]  ;;  %v3657_v61 = vld [vmem:[#allocation2 + $0x3e4] sm:$0xf] }
 0x41a   :  { %v3164_v46 = vld [vmem:[#allocation2 + $0x208] sm:$0xf0]  ;;  %v3655_v11 = vld [vmem:[#allocation2 + $0x3d4] sm:$0xf]  ;;  %v3428_v52 = vld [vmem:[#allocation2 + $0x418] sm:$0xf0] }
 0x41b   :  { %2156 = vmatpush.bf16.msrb.mxu1 %v3151_v25  ;;  %2144 = vmatpush.bf16.msrb.mxu0 %v3079_v57  ;;  %v3603_v25 = vld [vmem:[#allocation2 + $0x234] sm:$0xf]  ;;  %v3565_v57 = vld [vmem:[#allocation2 + $0x104] sm:$0xf]  ;;  %v3228_v21 = vld [vmem:[#allocation2 + $0x288] sm:$0xf0] }
 0x41c   :  { %2123 = vmatpush.bf16.msra.mxu2 %v2911_v13  ;;  %v3191_v14 = vor.u32 %v3603_v25, %v3188_v15  ;;  %v3643_v13 = vld [vmem:[#allocation2 + $0x374] sm:$0xf]  ;;  %v3665_v25 = vld [vmem:[#allocation2 + $0x424] sm:$0xf]  ;;  %v3436_v15 = vld [vmem:[#allocation2 + $0x428] sm:$0xf0] }
 0x41d   :  { %2136 = vmatpush.bf16.msra.mxu3 %v2975_v17  ;;  %v3601_v17 = vld [vmem:[#allocation2 + $0x224] sm:$0xf]  ;;  %v3351_v48 = vor.u32 %v3643_v13, %v3348_v47  ;;  %v3635_v16 = vld [vmem:[#allocation2 + $0x334] sm:$0xf]  ;;  %v3439_v40 = vor.u32 %v3665_v25, %v3436_v15  ;;  %v3308_v47 = vld [vmem:[#allocation2 + $0x328] sm:$0xf0] }
 0x41e   :  { %v3633_v13 = vld [vmem:[#allocation2 + $0x324] sm:$0xf] }
 0x41f   :  { %2157 = vmatpush.bf16.msrb.mxu1 %v3143_v37  ;;  %2145 = vmatpush.bf16.msrb.mxu0 %v3071_v58  ;;  %v3617_v37 = vld [vmem:[#allocation2 + $0x2a4] sm:$0xf] }
 0x420   :  { %2168 = vmatpush.bf16.msrb.mxu2 %v3223_v27  ;;  %v3180_v27 = vld [vmem:[#allocation2 + $0x228] sm:$0xf0]  ;;  %v3581_v58 = vld [vmem:[#allocation2 + $0x184] sm:$0xf]  ;;  %v3247_v38 = vor.u32 %v3617_v37, %v3244_v34  ;;  %v3311_v34 = vor.u32 %v3633_v13, %v3308_v47 }
 0x421   :  { %2181 = vmatpush.bf16.msrb.mxu3 %v3287_v8  ;;  %2098 = vmatmul.bf16.vlgmr.msra.gmra.mxu0 %v4811_v55  ;;  %v3039_v8 = vor.u32 %v3565_v57, %v3036_v24  ;;  %v3183_v54 = vor.u32 %v3601_v17, %v3180_v27  ;;  %v3103_v20 = vor.u32 %v3581_v58, %v3100_v35  ;;  %v3653_v57 = vld [vmem:[#allocation2 + $0x3c4] sm:$0xf]  ;;  %v3388_v24 = vld [vmem:[#allocation2 + $0x3c8] sm:$0xf0]  ;;  %v3380_v17 = vld [vmem:[#allocation2 + $0x3b8] sm:$0xf0] }
 0x422   :  { %2124 = vmatmul.bf16.vlgmr.msra.gmra.mxu2 %v4778_v2  ;;  %2137 = vmatmul.bf16.vlgmr.msra.gmra.mxu3 %v4766_v32  ;;  %v3199_v2 = vor.u32 %v3605_v56, %v3196_v49  ;;  %v3047_v32 = vor.u32 %v3567_v10, %v3044_v22  ;;  %v3597_v56 = vld [vmem:[#allocation2 + $0x204] sm:$0xf]  ;;  %v1851_v49 = vpack.c.b16 %v1715_v23, %v1715_v23  ;;  %v3420_v37 = vld [vmem:[#allocation2 + $0x408] sm:$0xf0]  ;;  %v3300_v58 = vld [vmem:[#allocation2 + $0x318] sm:$0xf0] }
 0x423   :  { %2146 = vmatpush.bf16.msrb.mxu0 %v3063_v28  ;;  %2158 = vmatpush.bf16.msrb.mxu1 %v3135_v41  ;;  %v3236_v28 = vld [vmem:[#allocation2 + $0x298] sm:$0xf0]  ;;  %v3167_v10 = vor.u32 %v3597_v56, %v3164_v46  ;;  %v3637_v22 = vld [vmem:[#allocation2 + $0x344] sm:$0xf]  ;;  %v3372_v35 = vld [vmem:[#allocation2 + $0x3a8] sm:$0xf0] }
 0x424   :  { %2169 = vmatpush.bf16.msrb.mxu2 %v3215_v51  ;;  %v3659_v51 = vld [vmem:[#allocation2 + $0x3f4] sm:$0xf]  ;;  %v3239_v9 = vor.u32 %v3615_v3, %v3236_v28  ;;  %v3629_v31 = vld [vmem:[#allocation2 + $0x304] sm:$0xf]  ;;  %v3356_v3 = vld [vmem:[#allocation2 + $0x388] sm:$0xf0] }
 0x425   :  { %2182 = vmatpush.bf16.msrb.mxu3 %v3279_v60  ;;  %3440 = vmatmul.msk.bf16.vlgmr.msra.gmra.mxu1 %vm1986_vm0, %v4815_v59  ;;  %v3599_v60 = vld [vmem:[#allocation2 + $0x214] sm:$0xf]  ;;  %v3415_v41 = vor.u32 %v3659_v51, %v3412_v1  ;;  %v3292_v51 = vld [vmem:[#allocation2 + $0x308] sm:$0xf0]  ;;  %v3364_v1 = vld [vmem:[#allocation2 + $0x398] sm:$0xf0] }
 0x426   :  { %v3175_v6 = vor.u32 %v3599_v60, %v3172_v12  ;;  %v3295_v60 = vor.u32 %v3629_v31, %v3292_v51  ;;  %v3645_v23 = vld [vmem:[#allocation2 + $0x384] sm:$0xf] }
 0x427   :  { %2147 = vmatpush.bf16.msrb.mxu0 %v3055_v30  ;;  %2159 = vmatpush.bf16.msrb.mxu1 %v3127_v19  ;;  %v3613_v30 = vld [vmem:[#allocation2 + $0x284] sm:$0xf]  ;;  %v3359_v28 = vor.u32 %v3645_v23, %v3356_v3 }
 0x428   :  { %2170 = vmatpush.bf16.msrb.mxu2 %v3207_v44  ;;  %v3332_v44 = vld [vmem:[#allocation2 + $0x358] sm:$0xf0]  ;;  %v3231_v39 = vor.u32 %v3613_v30, %v3228_v21 }
 0x429   :  { %2183 = vmatpush.bf16.msrb.mxu3 %v3271_v36  ;;  %v3404_v36 = vld [vmem:[#allocation2 + $0x3e8] sm:$0xf0]  ;;  %v3335_v53 = vor.u32 %v3639_v33, %v3332_v44 }
 0x42a   :  { %v3407_v19 = vor.u32 %v3657_v61, %v3404_v36 }
 0x42b   :  { %2148 = vmatpush.bf16.msrb.mxu0 %v3047_v32  ;;  %2160 = vmatpush.bf16.msrb.mxu1 %v3119_v18  ;;  %v3316_v18 = vld [vmem:[#allocation2 + $0x338] sm:$0xf0] }
 0x42c   :  { %2171 = vmatpush.bf16.msrb.mxu2 %v3199_v2  ;;  %v3324_v2 = vld [vmem:[#allocation2 + $0x348] sm:$0xf0] }
 0x42d   :  { %2184 = vmatpush.bf16.msrb.mxu3 %v3263_v29  ;;  %v1997_v29 = vand.u32 %v4773_v43, %v1851_v49  ;;  %v3327_v32 = vor.u32 %v3637_v22, %v3324_v2  ;;  %v3319_v43 = vor.u32 %v3635_v16, %v3316_v18 }
 0x42f   :  { %2149 = vmatpush.bf16.msrb.mxu0 %v3039_v8  ;;  %2161 = vmatpush.bf16.msrb.mxu1 %v3111_v5  ;;  %v3661_v8 = vld [vmem:[#allocation2 + $0x404] sm:$0xf] }
 0x430   :  { %2172 = vmatpush.bf16.msrb.mxu2 %v3191_v14  ;;  %v3663_v14 = vld [vmem:[#allocation2 + $0x414] sm:$0xf] }
 0x431   :  { %2185 = vmatpush.bf16.msrb.mxu3 %v3255_v42  ;;  %v3651_v42 = vld [vmem:[#allocation2 + $0x3b4] sm:$0xf]  ;;  %v3431_v27 = vor.u32 %v3663_v14, %v3428_v52 }
 0x432   :  { %2150 = vmatmul.bf16.vlgmr.msrb.gmra.mxu0 %v4768_v63  ;;  %v3396_v63 = vld [vmem:[#allocation2 + $0x3d8] sm:$0xf0]  ;;  %v3383_v5 = vor.u32 %v3651_v42, %v3380_v17 }
 0x433   :  { %2194 = vmatpush.bf16.msra.mxu0 %v3351_v48  ;;  %2162 = vmatpush.bf16.msrb.mxu1 %v3103_v20  ;;  %v3399_v50 = vor.u32 %v3655_v11, %v3396_v63  ;;  %v3631_v48 = vld [vmem:[#allocation2 + $0x314] sm:$0xf] }
 0x434   :  { %2173 = vmatpush.bf16.msrb.mxu2 %v3183_v54  ;;  %v3423_v54 = vor.u32 %v3661_v8, %v3420_v37 }
 0x435   :  { %2186 = vmatpush.bf16.msrb.mxu3 %v3247_v38  ;;  %v3647_v38 = vld [vmem:[#allocation2 + $0x394] sm:$0xf] }
 0x436   :  { %2163 = vmatmul.bf16.vlgmr.msrb.gmra.mxu1 %v4795_v45  ;;  %v3391_v45 = vor.u32 %v3653_v57, %v3388_v24  ;;  %v3367_v12 = vor.u32 %v3647_v38, %v3364_v1 }
 0x437   :  { %2195 = vmatpush.bf16.msra.mxu0 %v3343_v62  ;;  %2207 = vmatpush.bf16.msra.mxu1 %v3415_v41 }
 0x438   :  { %2174 = vmatpush.bf16.msrb.mxu2 %v3175_v6 }
 0x439   :  { %2187 = vmatpush.bf16.msrb.mxu3 %v3239_v9 }
 0x43b   :  { %2196 = vmatpush.bf16.msra.mxu0 %v3335_v53  ;;  %2208 = vmatpush.bf16.msra.mxu1 %v3407_v19 }
 0x43c   :  { %2175 = vmatpush.bf16.msrb.mxu2 %v3167_v10 }
 0x43d   :  { %2188 = vmatpush.bf16.msrb.mxu3 %v3231_v39 }
 0x43f   :  { %2197 = vmatpush.bf16.msra.mxu0 %v3327_v32  ;;  %2176 = vmatmul.bf16.vlgmr.msrb.gmra.mxu2 %v4804_v4  ;;  %v3649_v4 = vld [vmem:[#allocation2 + $0x3a4] sm:$0xf] }
 0x440   :  { %2224 = vmatpush.bf16.msra.mxu2 %v1997_v29  ;;  %2209 = vmatpush.bf16.msra.mxu1 %v3399_v50  ;;  %v3375_v0 = vor.u32 %v3649_v4, %v3372_v35 }
 0x441   :  { %2189 = vmatmul.bf16.vlgmr.msrb.gmra.mxu3 %v4797_v26  ;;  %v3303_v26 = vor.u32 %v3631_v48, %v3300_v58 }
 0x443   :  { %2198 = vmatpush.bf16.msra.mxu0 %v3319_v43 }
 0x444   :  { %2225 = vmatpush.bf16.msra.mxu2 %v3439_v40  ;;  %2210 = vmatpush.bf16.msra.mxu1 %v3391_v45 }
 0x447   :  { %2199 = vmatpush.bf16.msra.mxu0 %v3311_v34 }
 0x448   :  { %2226 = vmatpush.bf16.msra.mxu2 %v3431_v27  ;;  %2211 = vmatpush.bf16.msra.mxu1 %v3383_v5 }
 0x44b   :  { %2200 = vmatpush.bf16.msra.mxu0 %v3303_v26 }
 0x44c   :  { %2227 = vmatpush.bf16.msra.mxu2 %v3423_v54  ;;  %2212 = vmatpush.bf16.msra.mxu1 %v3375_v0 }
 0x44f   :  { %2201 = vmatpush.bf16.msra.mxu0 %v3295_v60  ;;  %3441 = vmatmul.msk.bf16.vlgmr.msra.gmra.mxu2 %vm1986_vm0, %v4815_v59  ;;  %vm5129_vm0 = vmmov %vm5123_vm3 }
 0x450   :  { %2213 = vmatpush.bf16.msra.mxu1 %v3367_v12 }
 0x452   :  { %2202 = vmatmul.bf16.vlgmr.msra.gmra.mxu0 %v4799_v7 }
 0x454   :  { %2214 = vmatpush.bf16.msra.mxu1 %v3359_v28 }
 0x457   :  { %2215 = vmatmul.bf16.vlgmr.msra.gmra.mxu1 %v4811_v55 }
 0x482   :  { %v2008_v20 = vpop.f32.mrf.mxu1  ;;  %v2021_v62 = vpop.f32.mrf.mxu2 }
 0x483   :  { %v2022_v41 = vadd.f32 %v2021_v62, %v2008_v20  ;;  %v2034_v6 = vpop.f32.mrf.mxu3 }
 0x485   :  { %v2035_v33 = vadd.f32 %v2034_v6, %v2022_v41 }
 0x48a   :  { %v2010_v44 = vpop.f32.mrf.mxu1  ;;  %v2023_v61 = vpop.f32.mrf.mxu2 }
 0x48b   :  { %v2036_v9 = vpop.f32.mrf.mxu3 }
 0x48e   :  { %v2047_v36 = vpop.f32.mrf.mxu0 }
 0x48f   :  { %v2048_v18 = vadd.f32 %v2047_v36, %v2035_v33 }
 0x492   :  { %v2060_v56 = vpop.f32.mrf.mxu1 }
 0x493   :  { %v2061_v40 = vadd.f32 %v2060_v56, %v2048_v18 }
 0x495   :  { %v2073_v46 = vpop.f32.mrf.mxu2  ;;  %v2086_v49 = vpop.f32.mrf.mxu3 }
 0x496   :  { %v2049_v59 = vpop.f32.mrf.mxu0  ;;  %v2074_v45 = vadd.f32 %v2073_v46, %v2061_v40 }
 0x498   :  { %v2087_v17 = vadd.f32 %v2086_v49, %v2074_v45 }
 0x49a   :  { %v2062_v30 = vpop.f32.mrf.mxu1 }
 0x49d   :  { %v2075_v21 = vpop.f32.mrf.mxu2  ;;  %v2088_v53 = vpop.f32.mrf.mxu3 }
 0x49e   :  { %v2099_v7 = vpop.f32.mrf.mxu0 }
 0x49f   :  { %v2100_v37 = vadd.f32 %v2099_v7, %v2087_v17 }
 0x4a2   :  { %v2112_v19 = vpop.f32.mrf.mxu1 }
 0x4a3   :  { %v2113_v5 = vadd.f32 %v2112_v19, %v2100_v37 }
 0x4a5   :  { %v2125_v10 = vpop.f32.mrf.mxu2  ;;  %v2138_v55 = vpop.f32.mrf.mxu3 }
 0x4a6   :  { %v2101_v22 = vpop.f32.mrf.mxu0  ;;  %v2139_v16 = vadd.f32 %v2138_v55, %v2125_v10 }
 0x4aa   :  { %v2114_v2 = vpop.f32.mrf.mxu1 }
 0x4ad   :  { %v2127_v39 = vpop.f32.mrf.mxu2  ;;  %v2140_v11 = vpop.f32.mrf.mxu3 }
 0x4af   :  { %v2151_v63 = vpop.f32.mrf.mxu0 }
 0x4b0   :  { %v2152_v57 = vadd.f32 %v2151_v63, %v2139_v16 }
 0x4b3   :  { %v2164_v29 = vpop.f32.mrf.mxu1 }
 0x4b4   :  { %v2165_v14 = vadd.f32 %v2164_v29, %v2152_v57 }
 0x4b7   :  { %v2153_v25 = vpop.f32.mrf.mxu0 }
 0x4bb   :  { %v2166_v15 = vpop.f32.mrf.mxu1 }
 0x4bc   :  { %v2316_v15 = vld [vmem:[%s5040_s6] sm:$0xf]  ;;  %s2885_s6 = sshll.u32 %s5055_s21, 4  ;;  %s2886_s6 = int_to_ptr.hbm [resolvable:$true] %s2885_s6 }
 0x4c2   :  { %v2177_v32 = vpop.f32.mrf.mxu2 }
 0x4c3   :  { %v2178_v43 = vadd.f32 %v2177_v32, %v2165_v14  ;;  %v2353_v32 = vld [vmem:[%s5043_s9] sm:$0x3] }
 0x4c4   :  { %v2190_v50 = vpop.f32.mrf.mxu3  ;;  %v2355_v57 = vperm.slane %v2353_v32, 0 }
 0x4c5   :  { %v2191_v47 = vadd.f32 %v2190_v50, %v2178_v43  ;;  %v2356_v50 = vperm.slane %v2353_v32, 1 }
 0x4ca   :  { %v2179_v24 = vpop.f32.mrf.mxu2 }
 0x4cc   :  { %v2192_v52 = vpop.f32.mrf.mxu3 }
 0x4cf   :  { %v2203_v13 = vpop.f32.mrf.mxu0 }
 0x4d0   :  { %v2204_v27 = vadd.f32 %v2203_v13, %v2191_v47 }
 0x4d2   :  { %v2229_v42 = vpop.f32.mrf.mxu2 }
 0x4d4   :  { %v2216_v8 = vpop.f32.mrf.mxu1 }
 0x4d5   :  { %v2217_v34 = vadd.f32 %v2216_v8, %v2204_v27 }
 0x4d7   :  { %v2230_v48 = vadd.f32 %v2229_v42, %v2217_v34  ;;  %v2205_v58 = vpop.f32.mrf.mxu0 }
 0x4d9   :  { %v2233_v4 = vpack.c.bf16 %v2230_v48, %v2113_v5 }
 0x4da   :  { %v2231_v35 = vpop.f32.mrf.mxu2 }
 0x4db   :  { %v2235_v54 = vunpack.c.l.b16 %v2233_v4  ;;  %v2236_v26 = vunpack.c.h.b16 %v2233_v4 }
 0x4dc   :  { %v2218_v0 = vpop.f32.mrf.mxu1 }
 0x4dd   :  { %v4830_v31 = vpack.c.b16 %v2235_v54, %v2235_v54  ;;  %v4832_v51 = vpack.c.b16 %v2236_v26, %v2236_v26 }
 0x4df   :  { %2281 = vrot.lane.b32.xlu1 %v4832_v51, %s3836_s4  ;;  %2267 = vrot.lane.b32.xlu2 %v4830_v31, %s3840_s24 }
 0x4e0   :  { %2279 = vrot.lane.b32.xlu0 %v4830_v31, %s3836_s4  ;;  %s3844_s4 = smov 117  }
 0x4e7   :  { %2273 = vrot.lane.b32.xlu1 %v4830_v31, %s3841_s2  ;;  %2275 = vrot.lane.b32.xlu2 %v4832_v51, %s3841_s2 }
 0x4e8   :  { %2269 = vrot.lane.b32.xlu0 %v4832_v51, %s3840_s24 }
 0x4ef   :  { %2257 = vrot.lane.b32.xlu1 %v4832_v51, %s3842_s26  ;;  %2261 = vrot.lane.b32.xlu2 %v4830_v31, %s3843_s27 }
 0x4f0   :  { %2255 = vrot.lane.b32.xlu0 %v4830_v31, %s3842_s26 }
 0x4f7   :  { %2244 = vrot.lane.b32.xlu1 %v4830_v31, %s3831_s25  ;;  %2246 = vrot.lane.b32.xlu2 %v4832_v51, %s3831_s25 }
 0x4f8   :  { %2263 = vrot.lane.b32.xlu0 %v4832_v51, %s3843_s27 }
 0x4ff   :  { %2251 = vrot.lane.b32.xlu1 %v4832_v51, %s3844_s4  ;;  %2239 = vrot.lane.b32.xlu2 %v4830_v31, %s3835_s0 }
 0x500   :  { %2249 = vrot.lane.b32.xlu0 %v4830_v31, %s3844_s4 }
 0x508   :  { %2241 = vrot.lane.b32.xlu0 %v4832_v51, %s3835_s0 }
 0x539   :  { %v2268_v38 = vpop.permute.xlu2 %2267 }
 0x541   :  { %v2276_v28 = vpop.permute.xlu2 %2275 }
 0x549   :  { %v2262_v36 = vpop.permute.xlu2 %2261 }
 0x551   :  { %v2282_v1 = vpop.permute.xlu1 %2281  ;;  %v2247_v53 = vpop.permute.xlu2 %2246 }
 0x552   :  { %v2325_v60 = vsel %vm5120_vm8, %v2282_v1, 0  ;;  %v2280_v12 = vpop.permute.xlu0 %2279  ;;  %vm5130_vm8 = vmmov %vm5129_vm0 }
 0x553   :  { %v2283_v23 = vsel %vm348_vm2, %v2280_v12, %v2282_v1  ;;  %2343 = vmatpush.bf16.msrb.mxu0 %v2325_v60  ;;  %vm2259_vm2 = vcmask 949248  }
 0x554   :  { %v2322_v3 = vsel %vm5121_vm11, %v2283_v23, 0  ;;  %vm2361_vm11 = vcmask 736256   ;;  %v2390_v23 = vld [vmem:[%s5042_s8] sm:$0xff] }
 0x555   :  { %2330 = vmatpush.bf16.msra.mxu3 %v2322_v3 }
 0x559   :  { %v2274_v20 = vpop.permute.xlu1 %2273  ;;  %v2240_v39 = vpop.permute.xlu2 %2239 }
 0x55a   :  { %v2278_v62 = vsel %vm2277_vm10, %v2274_v20, %v2276_v28  ;;  %v2270_v41 = vpop.permute.xlu0 %2269 }
 0x55b   :  { %v2272_v6 = vsel %vm2271_vm1, %v2268_v38, %v2270_v41  ;;  %v2314_v33 = vsel %vm5122_vm7, %v2270_v41, %v2276_v28 }
 0x55c   :  { %2344 = vmatpush.bf16.msrb.mxu0 %v2314_v33  ;;  %v2310_v44 = vsel %vm5123_vm3, %v2272_v6, %v2278_v62  ;;  %vm5131_vm3 = vmmov %vm5128_vm4 }
 0x55d   :  { %2331 = vmatpush.bf16.msra.mxu3 %v2310_v44 }
 0x561   :  { %v2258_v61 = vpop.permute.xlu1 %2257 }
 0x562   :  { %v2256_v9 = vpop.permute.xlu0 %2255 }
 0x563   :  { %v2260_v49 = vsel %vm2259_vm2, %v2256_v9, %v2258_v61  ;;  %v3674_v9 = vld [vmem:[%s5044_s10 + $0x38] sm:$0xff]  ;;  %vm2540_vm2 = vcmask 1046528  }
 0x564   :  { %2544 = vmatpush.bf16.msrb.mxu1 %v3674_v9  ;;  %v3512_v9 = vld [vmem:[%s5049_s15 + $0x18] sm:$0xf] }
 0x569   :  { %v2245_v56 = vpop.permute.xlu1 %2244 }
 0x56a   :  { %v2264_v46 = vpop.permute.xlu0 %2263  ;;  %v2248_v55 = vsel %vm294_vm14, %v2245_v56, %v2247_v53  ;;  %vm2317_vm14 = vcmask 588800   ;;  %v3672_v56 = vld [vmem:[%s5044_s10 + $0x28] sm:$0xff] }
 0x56b   :  { %v2266_v59 = vsel %vm2265_vm5, %v2262_v36, %v2264_v46  ;;  %v2306_v30 = vsel %vm5124_vm6, %v2258_v61, %v2264_v46  ;;  %v3673_v36 = vld [vmem:[%s5044_s10 + $0x30] sm:$0xff]  ;;  %vm5132_vm5 = vcmask 637952   ;;  %vm5133_vm6 = vmmov %vm5129_vm0 }
 0x56c   :  { %2345 = vmatpush.bf16.msrb.mxu0 %v2306_v30  ;;  %v2302_v21 = vsel %vm5125_vm9, %v2260_v49, %v2266_v59  ;;  %2545 = vmatpush.bf16.msrb.mxu1 %v3673_v36  ;;  %vm5134_vm9 = vmmov %vm5129_vm0  ;;  %v3683_v36 = vld [vmem:[%s5049_s15 + $0x18] sm:$0x10] }
 0x56d   :  { %2332 = vmatpush.bf16.msra.mxu3 %v2302_v21 }
 0x570   :  { %2546 = vmatpush.bf16.msrb.mxu1 %v3672_v56  ;;  %v3513_v56 = vor.u32 %v3683_v36, %v3512_v9 }
 0x571   :  { %v2252_v7 = vpop.permute.xlu1 %2251 }
 0x572   :  { %v2250_v19 = vpop.permute.xlu0 %2249  ;;  %v2298_v10 = vsel %vm5126_vm13, %v2247_v53, %v2252_v7  ;;  %v3494_v53 = vld [vmem:[%s5044_s10 + $0x60] sm:$0xf]  ;;  %vm5136_vm13 = vmmov %vm5129_vm0 }
 0x573   :  { %v2254_v22 = vsel %vm2253_vm12, %v2250_v19, %v2252_v7  ;;  %2346 = vmatpush.bf16.msrb.mxu0 %v2298_v10  ;;  %v3679_v7 = vld [vmem:[%s5044_s10 + $0x60] sm:$0x70] }
 0x574   :  { %v2294_v2 = vsel %vm5127_vm15, %v2248_v55, %v2254_v22  ;;  %v3495_v19 = vor.u32 %v3679_v7, %v3494_v53  ;;  %v3671_v55 = vld [vmem:[%s5044_s10 + $0x20] sm:$0xff]  ;;  %v3678_v22 = vld [vmem:[%s5044_s10 + $0x58] sm:$0xff]  ;;  %vm5137_vm15 = vmmov %vm5129_vm0 }
 0x575   :  { %2333 = vmatpush.bf16.msra.mxu3 %v2294_v2  ;;  %2547 = vmatpush.bf16.msrb.mxu1 %v3671_v55  ;;  %v3670_v2 = vld [vmem:[%s5044_s10 + $0x18] sm:$0xff] }
 0x576   :  { %v2542_v10 = vsel %vm2540_vm2, %v3495_v19, 0  ;;  %v2644_v19 = vld [vmem:[%s5046_s12] sm:$0xff] }
 0x577   :  { %2560 = vmatpush.bf16.msrb.mxu2 %v2542_v10 }
 0x579   :  { %2548 = vmatpush.bf16.msrb.mxu1 %v3670_v2 }
 0x57a   :  { %v2242_v11 = vpop.permute.xlu0 %2241 }
 0x57b   :  { %v2243_v63 = vsel %vm5128_vm4, %v2240_v39, %v2242_v11  ;;  %v2290_v29 = vsel %vm5129_vm0, %v4832_v51, %v2242_v11  ;;  %v2377_v51 = vld [vmem:[%s5041_s7] sm:$0xff]  ;;  %2561 = vmatpush.bf16.msrb.mxu2 %v3678_v22  ;;  %v3677_v39 = vld [vmem:[%s5044_s10 + $0x50] sm:$0xff]  ;;  %s3848_s7 = smov 122   ;;  %vm2631_vm4 = vcmask 474112  }
 0x57c   :  { %2347 = vmatpush.bf16.msrb.mxu0 %v2290_v29  ;;  %v2286_v25 = vsel %vm5130_vm8, %v4830_v31, %v2243_v63  ;;  %v3669_v11 = vld [vmem:[%s5044_s10 + $0x10] sm:$0xff]  ;;  %v3676_v63 = vld [vmem:[%s5044_s10 + $0x48] sm:$0xff] }
 0x57d   :  { %2334 = vmatpush.bf16.msra.mxu3 %v2286_v25  ;;  %2549 = vmatpush.bf16.msrb.mxu1 %v3669_v11  ;;  %v3668_v29 = vld [vmem:[%s5044_s10 + $0x8] sm:$0xff]  ;;  %v3675_v25 = vld [vmem:[%s5044_s10 + $0x40] sm:$0xff] }
 0x57f   :  { %3443 = vmatmul.msk.bf16.vlgmr.msrb.gmra.mxu0 %vm2317_vm14, %v2316_v15  ;;  %2562 = vmatpush.bf16.msrb.mxu2 %v3677_v39  ;;  %v2657_v39 = vld [vmem:[%s5047_s13] sm:$0xff] }
 0x580   :  { %3442 = vmatmul.msk.bf16.vlgmr.msra.gmra.mxu3 %vm2317_vm14, %v2316_v15  ;;  %v3667_v15 = vld [vmem:[%s5044_s10] sm:$0xff]  ;;  %s3845_s10 = smov 120  }
 0x581   :  { %2550 = vmatpush.bf16.msrb.mxu1 %v3668_v29  ;;  %v3681_v29 = vld [vmem:[%s5049_s15 + $0x8] sm:$0xff] }
 0x583   :  { %2563 = vmatpush.bf16.msrb.mxu2 %v3676_v63  ;;  %v3682_v63 = vld [vmem:[%s5049_s15 + $0x10] sm:$0xff] }
 0x585   :  { %2551 = vmatpush.bf16.msrb.mxu1 %v3667_v15 }
 0x587   :  { %2564 = vmatpush.bf16.msrb.mxu2 %v3675_v25  ;;  %v3680_v25 = vld [vmem:[%s5049_s15] sm:$0xff] }
 0x5fc   :  { %v2349_v16 = vpop.f32.mrf.mxu0 }
 0x5fd   :  { %v2360_v18 = vmul.f32 %v2356_v50, %v2349_v16 }
 0x5ff   :  { %v2368_v24 = vmul.f32 %v2360_v18, %v2349_v16  ;;  %v2362_v14 = vsel %vm2361_vm11, %v2360_v18, 0.0 }
 0x601   :  { %v2369_v47 = vsel %vm2361_vm11, %v2368_v24, 0.0 }
 0x603   :  { %v2336_v40 = vpop.f32.mrf.mxu3 }
 0x604   :  { %v2351_v52 = vpop.f32.mrf.mxu0  ;;  %v2359_v43 = vmul.f32 %v2355_v57, %v2336_v40 }
 0x606   :  { %v2363_v45 = vadd.f32 %v2362_v14, %v2359_v43  ;;  %v2367_v13 = vmul.f32 %v2359_v43, %v2336_v40 }
 0x608   :  { %2364 = vadd.xlane.f32.xlu1 %v2363_v45  ;;  %v2370_v42 = vadd.f32 %v2369_v47, %v2367_v13 }
 0x60a   :  { %2371 = vadd.xlane.f32.xlu2 %v2370_v42 }
 0x60b   :  { %v2338_v17 = vpop.f32.mrf.mxu3 }
 0x67b   :  { %v2365_v27 = vpop.xlane.xlu1 %2364 }
 0x67c   :  { %v2366_v8 = vmul.f32 0.0061728396, %v2365_v27 }
 0x67d   :  { %v2372_v37 = vpop.xlane.xlu2 %2371 }
 0x67e   :  { %v2374_v34 = vmul.f32 %v2366_v8, %v2366_v8  ;;  %v2373_v5 = vmul.f32 0.0061728396, %v2372_v37 }
 0x680   :  { %v2375_v48 = vsub.f32 %v2373_v5, %v2374_v34 }
 0x682   :  { %v2376_v58 = vmax.f32 %v2375_v48, 0.0 }
 0x684   :  { %v2378_v4 = vadd.f32 1e-05, %v2376_v58 }
 0x686   :  { %3769 = vrsqrt.f32 %v2378_v4  ;;  %vm2385_vm1 = vweird.f32 %v2378_v4 }
 0x68c   :  { %v3770_v35 = vpop.eup %3769 }
 0x68d   :  { %v2380_v54 = vmul.f32 %v3770_v35, %v2378_v4  ;;  %vm2386_vm10 = vweird.f32 %v3770_v35 }
 0x68e   :  { %vm2387_vm7 = vmor %vm2385_vm1, %vm2386_vm10 }
 0x68f   :  { %v2381_v26 = vmul.f32 %v3770_v35, %v2380_v54  ;;  %vm5139_vm1 = vmmov %vm5133_vm6 }
 0x690   :  { %vm5142_vm2 = vmmov %vm5139_vm1 }
 0x691   :  { %v2382_v0 = vmul.f32 0.5, %v2381_v26 }
 0x693   :  { %v2383_v31 = vsub.f32 1.5, %v2382_v0 }
 0x695   :  { %v2384_v38 = vmul.f32 %v3770_v35, %v2383_v31 }
 0x697   :  { %v2388_v1 = vsel %vm2387_vm7, %v3770_v35, %v2384_v38  ;;  %v3765_v38 = vld [vmem:[%s5048_s14] ss:$0 sm:$0xff]  ;;  %vm5140_vm7 = vmmov %vm5139_vm1 }
 0x698   :  { %v2389_v60 = vmul.f32 %v2388_v1, %v2377_v51  ;;  %v2606_v51 = vld [vmem:[%s5045_s11] sm:$0xf] }
 0x69a   :  { %2395 = vperm.xlu0 %3762, %v2389_v60   ;;  %v2391_v12 = vmul.f32 %v2389_v60, %v2366_v8 }
 0x69c   :  { %v2392_v3 = vsub.f32 %v2390_v23, %v2391_v12 }
 0x6a2   :  { %2402 = vperm.xlu0 %3762, %v2392_v3  }
 0x70c   :  { %v2396_v28 = vpop.permute.xlu0 %2395 }
 0x70d   :  { %v2399_v20 = vmul.f32 %v2396_v28, %v2349_v16  ;;  %v2398_v33 = vmul.f32 %v2396_v28, %v2336_v40 }
 0x714   :  { %v2403_v62 = vpop.permute.xlu0 %2402 }
 0x715   :  { %v2406_v41 = vadd.f32 %v2403_v62, %v2399_v20  ;;  %v2405_v44 = vadd.f32 %v2403_v62, %v2398_v33 }
 0x717   :  { %v2408_v6 = vmax.f32 %v2406_v41, 0.0  ;;  %v2407_v61 = vmax.f32 %v2405_v44, 0.0 }
 0x719   :  { %2413 = vrot.lane.b32.xlu0 %v2408_v6, %s3835_s0 }
 0x721   :  { %2411 = vrot.lane.b32.xlu0 %v2407_v61, %s3835_s0 }
 0x78b   :  { %v2414_v46 = vpop.permute.xlu0 %2413 }
 0x78c   :  { %v2419_v49 = vmax.f32 %v2408_v6, %v2414_v46 }
 0x78e   :  { %2424 = vrot.lane.b32.xlu1 %v2419_v49, %s3844_s4 }
 0x793   :  { %v2412_v59 = vpop.permute.xlu0 %2411 }
 0x794   :  { %v2415_v30 = vsel %vm5131_vm3, %v2412_v59, %v2414_v46  ;;  %vm5141_vm3 = vmmov %vm5139_vm1 }
 0x795   :  { %v2418_v21 = vmax.f32 %v2407_v61, %v2415_v30 }
 0x797   :  { %2422 = vrot.lane.b32.xlu2 %v2418_v21, %s3844_s4  ;;  %s3847_s4 = smov 114  }
 0x7f1   :  { %v2423_v32 = vpop.permute.xlu2 %2422 }
 0x800   :  { %v2425_v50 = vpop.permute.xlu1 %2424 }
 0x801   :  { %v2427_v16 = vsel %vm2253_vm12, %v2423_v32, %v2425_v50  ;;  %v2431_v18 = vmax.f32 %v2419_v49, %v2425_v50  ;;  %vm5135_vm12 = vmmov %vm5129_vm0  ;;  %vm5138_vm0 = vcmask 1044480  }
 0x802   :  { %v2430_v57 = vmax.f32 %v2418_v21, %v2427_v16  ;;  %v2709_v49 = vsel %vm5138_vm0, %v3513_v56, 0 }
 0x803   :  { %v2433_v24 = vpack.c.bf16 %v2431_v18, %v2431_v18  ;;  %2715 = vmatpush.bf16.msra.mxu0 %v2709_v49 }
 0x804   :  { %v2432_v40 = vpack.c.bf16 %v2430_v57, %v2430_v57 }
 0x805   :  { %3496 = vmatmul.msk.bf16.vlgmr.msrb.gmra.mxu2 %vm5132_vm5, %v2433_v24  ;;  %vm5143_vm5 = vmmov %vm5139_vm1 }
 0x806   :  { %2552 = vmatmul.bf16.vlgmr.msrb.gmra.mxu1 %v2432_v40 }
 0x807   :  { %2716 = vmatpush.bf16.msra.mxu0 %v3682_v63 }
 0x80b   :  { %2717 = vmatpush.bf16.msra.mxu0 %v3681_v29 }
 0x80f   :  { %2718 = vmatpush.bf16.msra.mxu0 %v3680_v25 }
 0x883   :  { %v2553_v14 = vpop.f32.mrf.mxu1 }
 0x888   :  { %v2566_v52 = vpop.f32.mrf.mxu2 }
 0x889   :  { %v2567_v43 = vadd.f32 %v2566_v52, %v2553_v14 }
 0x88b   :  { %v2570_v45 = vpack.c.bf16 %v2567_v43, %v2567_v43  ;;  %v2555_v13 = vpop.f32.mrf.mxu1 }
 0x88d   :  { %v2572_v47 = vunpack.c.l.b16 %v2570_v45 }
 0x88f   :  { %v2573_v42 = vpack.c.b16 %v2572_v47, %v2572_v47 }
 0x890   :  { %v2568_v17 = vpop.f32.mrf.mxu2 }
 0x891   :  { %2582 = vrot.lane.b32.xlu1 %v2573_v42, %s3845_s10  ;;  %2580 = vrot.lane.b32.xlu2 %v2573_v42, %s3846_s23 }
 0x892   :  { %2588 = vrot.lane.b32.xlu0 %v2573_v42, %s3847_s4 }
 0x899   :  { %2574 = vrot.lane.b32.xlu1 %v2573_v42, %s3835_s0  ;;  %2578 = vrot.lane.b32.xlu2 %v2573_v42, %s3848_s7 }
 0x89a   :  { %2584 = vrot.lane.b32.xlu0 %v2573_v42, %s3842_s26 }
 0x8a2   :  { %2586 = vrot.lane.b32.xlu0 %v2573_v42, %s3843_s27 }
 0x8aa   :  { %2576 = vrot.lane.b32.xlu0 %v2573_v42, %s3831_s25 }
 0x8eb   :  { %v2581_v34 = vpop.permute.xlu2 %2580 }
 0x8f3   :  { %v2579_v35 = vpop.permute.xlu2 %2578 }
 0x903   :  { %v2583_v5 = vpop.permute.xlu1 %2582 }
 0x904   :  { %v2589_v27 = vpop.permute.xlu0 %2588  ;;  %v2600_v4 = vsel %vm5135_vm12, %v2581_v34, %v2583_v5 }
 0x905   :  { %v2611_v8 = vsel %vm5133_vm6, %v2589_v27, 0 }
 0x906   :  { %2616 = vmatpush.bf16.msrb.mxu3 %v2611_v8 }
 0x90b   :  { %v2575_v0 = vpop.permute.xlu1 %2574 }
 0x90c   :  { %v2585_v37 = vpop.permute.xlu0 %2584  ;;  %v2592_v31 = vsel %vm5137_vm15, %v2570_v45, %v2575_v0 }
 0x914   :  { %v2587_v48 = vpop.permute.xlu0 %2586 }
 0x915   :  { %v2604_v58 = vsel %vm5134_vm9, %v2585_v37, %v2587_v48 }
 0x916   :  { %2617 = vmatpush.bf16.msrb.mxu3 %v2604_v58 }
 0x91a   :  { %2618 = vmatpush.bf16.msrb.mxu3 %v2600_v4 }
 0x91c   :  { %v2577_v54 = vpop.permute.xlu0 %2576 }
 0x91d   :  { %v2596_v26 = vsel %vm5136_vm13, %v2577_v54, %v2579_v35  ;;  %v2760_v35 = vld [vmem:[%s5050_s16] sm:$0xf] }
 0x91e   :  { %2619 = vmatpush.bf16.msrb.mxu3 %v2596_v26  ;;  %v3766_v54 = vld [vmem:[%s5053_s19] ss:$0 sm:$0xff] }
 0x922   :  { %2620 = vmatpush.bf16.msrb.mxu3 %v2592_v31 }
 0x925   :  { %3497 = vmatmul.msk.bf16.vlgmr.msrb.gmra.mxu3 %vm2317_vm14, %v2606_v51 }
 0x9a8   :  { %v2622_v1 = vpop.f32.mrf.mxu3 }
 0x9a9   :  { %v2630_v60 = vmul.f32 %v3765_v38, %v2622_v1 }
 0x9ab   :  { %v2632_v12 = vsel %vm2631_vm4, %v2630_v60, 0.0  ;;  %v2636_v23 = vmul.f32 %v2630_v60, %v2622_v1 }
 0x9ac   :  { %2633 = vadd.xlane.f32.xlu0 %v2632_v12 }
 0x9ad   :  { %v2637_v3 = vsel %vm2631_vm4, %v2636_v23, 0.0 }
 0x9ae   :  { %2638 = vadd.xlane.f32.xlu2 %v2637_v3 }
 0x9b0   :  { %v2624_v28 = vpop.f32.mrf.mxu3 }
 0xa1f   :  { %v2634_v20 = vpop.xlane.xlu0 %2633 }
 0xa20   :  { %v2635_v62 = vmul.f32 0.03125, %v2634_v20 }
 0xa21   :  { %v2639_v41 = vpop.xlane.xlu2 %2638 }
 0xa22   :  { %v2641_v6 = vmul.f32 %v2635_v62, %v2635_v62  ;;  %v2640_v33 = vmul.f32 0.03125, %v2639_v41  ;;  %v3530_v41 = vld [vmem:[%s5054_s20 + $0x18] sm:$0xf] }
 0xa24   :  { %v2642_v44 = vsub.f32 %v2640_v33, %v2641_v6  ;;  %v3687_v6 = vld [vmem:[%s5054_s20 + $0x18] sm:$0x10] }
 0xa25   :  { %v3531_v33 = vor.u32 %v3687_v6, %v3530_v41 }
 0xa26   :  { %v2643_v61 = vmax.f32 %v2642_v44, 0.0 }
 0xa28   :  { %v2645_v46 = vadd.f32 1e-05, %v2643_v61 }
 0xa2a   :  { %3771 = vrsqrt.f32 %v2645_v46  ;;  %vm2652_vm11 = vweird.f32 %v2645_v46 }
 0xa30   :  { %v3772_v59 = vpop.eup %3771 }
 0xa31   :  { %v2647_v30 = vmul.f32 %v3772_v59, %v2645_v46  ;;  %vm2653_vm8 = vweird.f32 %v3772_v59 }
 0xa32   :  { %vm2654_vm10 = vmor %vm2652_vm11, %vm2653_vm8 }
 0xa33   :  { %v2648_v21 = vmul.f32 %v3772_v59, %v2647_v30 }
 0xa35   :  { %v2649_v53 = vmul.f32 0.5, %v2648_v21 }
 0xa37   :  { %v2650_v7 = vsub.f32 1.5, %v2649_v53 }
 0xa39   :  { %v2651_v10 = vmul.f32 %v3772_v59, %v2650_v7 }
 0xa3b   :  { %v2655_v55 = vsel %vm2654_vm10, %v3772_v59, %v2651_v10  ;;  %v2797_v59 = vld [vmem:[%s5051_s17] sm:$0xff] }
 0xa3c   :  { %v2656_v22 = vmul.f32 %v2655_v55, %v2644_v19  ;;  %v2810_v19 = vld [vmem:[%s5052_s18] sm:$0xff]  ;;  %v3686_v55 = vld [vmem:[%s5054_s20 + $0x10] sm:$0xff]  ;;  %s3849_s18 = smov [#allocation5]  }
 0xa3d   :  { %s2883_s28 = sshll.u32 %s3849_s18, 4  ;;  %s2884_s28 = int_to_ptr.vmem [resolvable:$true] %s2883_s28 }
 0xa3e   :  { %2662 = vperm.xlu1 %3731, %v2656_v22   ;;  %v2658_v2 = vmul.f32 %v2656_v22, %v2635_v62  ;;  %v3685_v22 = vld [vmem:[%s5054_s20 + $0x8] sm:$0xff] }
 0xa40   :  { %v2659_v11 = vsub.f32 %v2657_v39, %v2658_v2  ;;  %v3684_v2 = vld [vmem:[%s5054_s20] sm:$0xff] }
 0xa46   :  { %2668 = vperm.xlu1 %3731, %v2659_v11  }
 0xab0   :  { %v2663_v15 = vpop.permute.xlu1 %2662 }
 0xab1   :  { %v2665_v32 = vmul.f32 %v2663_v15, %v2622_v1 }
 0xab8   :  { %v2669_v50 = vpop.permute.xlu1 %2668 }
 0xab9   :  { %v2671_v16 = vadd.f32 %v2669_v50, %v2665_v32 }
 0xabb   :  { %v2672_v18 = vmax.f32 %v2671_v16, 0.0 }
 0xabd   :  { %v2673_v57 = vpack.c.bf16 %v2672_v18, %v2672_v18 }
 0xabf   :  { %3514 = vmatmul.msk.bf16.vlgmr.msra.gmra.mxu0 %vm2631_vm4, %v2673_v57 }
 0xb3c   :  { %v2720_v24 = vpop.f32.mrf.mxu0 }
 0xb3d   :  { %v2724_v40 = vpack.c.bf16 %v2720_v24, %v2720_v24 }
 0xb3f   :  { %v2726_v14 = vunpack.c.l.b16 %v2724_v40 }
 0xb41   :  { %v2727_v52 = vpack.c.b16 %v2726_v14, %v2726_v14 }
 0xb43   :  { %2730 = vrot.lane.b32.xlu2 %v2727_v52, %s3831_s25  ;;  %2734 = vrot.lane.b32.xlu0 %v2727_v52, %s3846_s23 }
 0xb44   :  { %2742 = vrot.lane.b32.xlu1 %v2727_v52, %s3847_s4  ;;  %v2722_v43 = vpop.f32.mrf.mxu0 }
 0xb4c   :  { %2738 = vrot.lane.b32.xlu1 %v2727_v52, %s3842_s26 }
 0xb54   :  { %2740 = vrot.lane.b32.xlu1 %v2727_v52, %s3843_s27 }
 0xb5c   :  { %2736 = vrot.lane.b32.xlu1 %v2727_v52, %s3845_s10 }
 0xb64   :  { %2732 = vrot.lane.b32.xlu1 %v2727_v52, %s3848_s7 }
 0xb6c   :  { %2728 = vrot.lane.b32.xlu1 %v2727_v52, %s3835_s0 }
 0xb9d   :  { %v2731_v34 = vpop.permute.xlu2 %2730 }
 0xbb5   :  { %v2735_v27 = vpop.permute.xlu0 %2734 }
 0xbb6   :  { %v2743_v45 = vpop.permute.xlu1 %2742 }
 0xbb7   :  { %v2765_v13 = vsel %vm5139_vm1, %v2743_v45, 0 }
 0xbb8   :  { %2770 = vmatpush.bf16.msra.mxu2 %v2765_v13 }
 0xbbe   :  { %v2739_v47 = vpop.permute.xlu1 %2738 }
 0xbc6   :  { %v2741_v42 = vpop.permute.xlu1 %2740 }
 0xbc7   :  { %v2758_v17 = vsel %vm5140_vm7, %v2739_v47, %v2741_v42 }
 0xbc8   :  { %2771 = vmatpush.bf16.msra.mxu2 %v2758_v17 }
 0xbce   :  { %v2737_v8 = vpop.permute.xlu1 %2736 }
 0xbcf   :  { %v2754_v37 = vsel %vm5141_vm3, %v2735_v27, %v2737_v8 }
 0xbd0   :  { %2772 = vmatpush.bf16.msra.mxu2 %v2754_v37 }
 0xbd6   :  { %v2733_v5 = vpop.permute.xlu1 %2732 }
 0xbd7   :  { %v2750_v48 = vsel %vm5142_vm2, %v2731_v34, %v2733_v5 }
 0xbd8   :  { %2773 = vmatpush.bf16.msra.mxu2 %v2750_v48 }
 0xbde   :  { %v2729_v58 = vpop.permute.xlu1 %2728 }
 0xbdf   :  { %v2746_v4 = vsel %vm5143_vm5, %v2724_v40, %v2729_v58 }
 0xbe0   :  { %2774 = vmatpush.bf16.msra.mxu2 %v2746_v4 }
 0xbe3   :  { %3515 = vmatmul.msk.bf16.vlgmr.msra.gmra.mxu2 %vm2317_vm14, %v2760_v35  ;;  %vm5144_vm14 = vmmov %vm5138_vm0 }
 0xbe4   :  { %v2862_v61 = vsel %vm5144_vm14, %v3531_v33, 0 }
 0xbe5   :  { %2868 = vmatpush.bf16.msra.mxu3 %v2862_v61 }
 0xbe9   :  { %2869 = vmatpush.bf16.msra.mxu3 %v3686_v55 }
 0xbed   :  { %2870 = vmatpush.bf16.msra.mxu3 %v3685_v22 }
 0xbf1   :  { %2871 = vmatpush.bf16.msra.mxu3 %v3684_v2 }
 0xc66   :  { %v2776_v26 = vpop.f32.mrf.mxu2 }
 0xc67   :  { %v2784_v0 = vmul.f32 %v3766_v54, %v2776_v26 }
 0xc69   :  { %v2785_v31 = vsel %vm2631_vm4, %v2784_v0, 0.0  ;;  %v2789_v51 = vmul.f32 %v2784_v0, %v2776_v26 }
 0xc6a   :  { %2786 = vadd.xlane.f32.xlu0 %v2785_v31 }
 0xc6b   :  { %v2790_v38 = vsel %vm2631_vm4, %v2789_v51, 0.0 }
 0xc6c   :  { %2791 = vadd.xlane.f32.xlu1 %v2790_v38 }
 0xc6e   :  { %v2778_v1 = vpop.f32.mrf.mxu2 }
 0xcdd   :  { %v2787_v60 = vpop.xlane.xlu0 %2786 }
 0xcde   :  { %v2788_v12 = vmul.f32 0.03125, %v2787_v60 }
 0xcdf   :  { %v2792_v23 = vpop.xlane.xlu1 %2791 }
 0xce0   :  { %v2794_v3 = vmul.f32 %v2788_v12, %v2788_v12  ;;  %v2793_v28 = vmul.f32 0.03125, %v2792_v23 }
 0xce2   :  { %v2795_v20 = vsub.f32 %v2793_v28, %v2794_v3 }
 0xce4   :  { %v2796_v62 = vmax.f32 %v2795_v20, 0.0 }
 0xce6   :  { %v2798_v44 = vadd.f32 1e-05, %v2796_v62 }
 0xce8   :  { %3773 = vrsqrt.f32 %v2798_v44  ;;  %vm2805_vm9 = vweird.f32 %v2798_v44 }
 0xcee   :  { %v3774_v9 = vpop.eup %3773 }
 0xcef   :  { %v2800_v36 = vmul.f32 %v3774_v9, %v2798_v44  ;;  %vm2806_vm6 = vweird.f32 %v3774_v9 }
 0xcf0   :  { %vm2807_vm12 = vmor %vm2805_vm9, %vm2806_vm6 }
 0xcf1   :  { %v2801_v56 = vmul.f32 %v3774_v9, %v2800_v36 }
 0xcf3   :  { %v2802_v46 = vmul.f32 0.5, %v2801_v56 }
 0xcf5   :  { %v2803_v49 = vsub.f32 1.5, %v2802_v46 }
 0xcf7   :  { %v2804_v30 = vmul.f32 %v3774_v9, %v2803_v49 }
 0xcf9   :  { %v2808_v21 = vsel %vm2807_vm12, %v3774_v9, %v2804_v30 }
 0xcfa   :  { %v2809_v53 = vmul.f32 %v2808_v21, %v2797_v59 }
 0xcfc   :  { %2815 = vperm.xlu2 %3763, %v2809_v53   ;;  %v2811_v7 = vmul.f32 %v2809_v53, %v2788_v12 }
 0xcfe   :  { %v2812_v10 = vsub.f32 %v2810_v19, %v2811_v7 }
 0xd04   :  { %2821 = vperm.xlu2 %3763, %v2812_v10  }
 0xd56   :  { %v2816_v39 = vpop.permute.xlu2 %2815 }
 0xd57   :  { %v2818_v11 = vmul.f32 %v2816_v39, %v2776_v26 }
 0xd5e   :  { %v2822_v63 = vpop.permute.xlu2 %2821 }
 0xd5f   :  { %v2824_v29 = vadd.f32 %v2822_v63, %v2818_v11 }
 0xd61   :  { %v2825_v25 = vmax.f32 %v2824_v29, 0.0 }
 0xd63   :  { %v2826_v15 = vpack.c.bf16 %v2825_v25, %v2825_v25 }
 0xd65   :  { %3532 = vmatmul.msk.bf16.vlgmr.msra.gmra.mxu3 %vm2631_vm4, %v2826_v15 }
 0xde8   :  { %v2873_v32 = vpop.f32.mrf.mxu3 }
 0xde9   :  { %2877 = vst [vmem:[#allocation5] sm:$0xff] %v2873_v32 }
 0xdea   :  { %2888 = dma.vmem_to_hbm [thread:$0]  %s2884_s28, 128, %s2886_s6, [#allocation4]  }
 0xdf0   :  { %v2875_v50 = vpop.f32.mrf.mxu3 }
 0xdf1   :  { %3825 = dma.done.wait [#allocation4], 128  }
 0xdf2   :  { %3826 = vsyncadd [#allocation4], 4294967168 }
 0xdf3   :  { %2893 = vsyncpa [#allocation3], 1 }
 0xdf4   :  { %2894 = vsyncpa [#allocation4], 1 }

</bundles_post_ra>
